<compile_context>
chip_gen: v5e
topology: v5e:2x2
jax: 0.10.0
libtpu: 0.0.40
codegen_flags: <defaults>
</compile_context>

<pallas_src>
import jax
import jax.numpy as jnp
from jax.experimental import pallas as pl
from jax.experimental.pallas import tpu as pltpu

IN_FEATURES = 196608   # 3 * 256 * 256, as in the PyTorch module
OUT_FEATURES = 10
TK = 32768             # K tile; 196608 / 32768 = 6 grid steps total
NCORES = 2             # leading "parallel" axis (v7x dual TensorCore)


def _linear_kernel(x_ref, w_ref, o_ref, acc_ref):
    # x_ref: (B, TK)  w_ref: (N, TK)  o_ref: (B, N) partial  acc_ref: (B, N) f32
    k = pl.program_id(1)

    @pl.when(k == 0)
    def _():
        acc_ref[...] = jnp.zeros_like(acc_ref)

    # Lane-dense contraction: both operands keep K on the 128-lane axis.
    acc_ref[...] += jax.lax.dot_general(
        x_ref[...],
        w_ref[...],
        dimension_numbers=(((1,), (1,)), ((), ())),
        preferred_element_type=jnp.float32,
    )

    @pl.when(k == pl.num_programs(1) - 1)
    def _():
        o_ref[...] = acc_ref[...]


def kiki_forward(x, w, b, *, stream_dtype=jnp.bfloat16):
    """y = x @ w.T + b, equivalent to torch.nn.Linear(196608, 10).

    x: (B, K) activations, w: (N, K) weight in native PyTorch layout, b: (N,).
    Returns float32 (B, N).
    """
    B, K = x.shape
    N, Kw = w.shape
    assert K == Kw == IN_FEATURES and N == OUT_FEATURES
    assert b.shape == (N,)
    assert K % TK == 0
    k_blocks = K // TK
    assert k_blocks % NCORES == 0
    steps = k_blocks // NCORES  # K-steps per core

    xs = x.astype(stream_dtype)
    ws = w.astype(stream_dtype)

    itemsize = jnp.dtype(stream_dtype).itemsize
    cost = pl.CostEstimate(
        flops=2 * B * K * N,
        transcendentals=0,
        bytes_accessed=(B * K + N * K) * itemsize + NCORES * B * N * 4,
    )

    partials = pl.pallas_call(
        _linear_kernel,
        out_shape=jax.ShapeDtypeStruct((NCORES, B, N), jnp.float32),
        grid_spec=pltpu.PrefetchScalarGridSpec(
            num_scalar_prefetch=0,
            grid=(NCORES, steps),
            in_specs=[
                # x tile: (B, TK), walks K
                pl.BlockSpec((B, TK), lambda c, k: (0, c * steps + k)),
                # weight tile: (N, TK), lane-dense, walks K
                pl.BlockSpec((N, TK), lambda c, k: (0, c * steps + k)),
            ],
            # one partial-sum output block per core; resident across the K axis
            out_specs=pl.BlockSpec((None, B, N), lambda c, k: (c, 0, 0)),
            scratch_shapes=[pltpu.VMEM((B, N), jnp.float32)],
        ),
        compiler_params=pltpu.CompilerParams(
            dimension_semantics=("parallel", "arbitrary"),
        ),
        cost_estimate=cost,
    )(xs, ws)

    # Combine the per-core partial reductions and add the bias (tiny (2,B,N) op).
    return partials.sum(axis=0) + b.astype(jnp.float32)


if __name__ == "__main__":
    key = jax.random.PRNGKey(0)
    kx, kw, kb = jax.random.split(key, 3)

    B = 2
    # Deterministic "parameters" mimicking PyTorch's default uniform init.
    bound = 1.0 / (IN_FEATURES ** 0.5)
    w = jax.random.uniform(
        kw, (OUT_FEATURES, IN_FEATURES), jnp.float32, -bound, bound
    )
    bias = jax.random.uniform(kb, (OUT_FEATURES,), jnp.float32, -bound, bound)
    x = jax.random.normal(kx, (B, IN_FEATURES), jnp.float32)

    y = kiki_forward(x, w, bias)  # streams x/w as bf16, accumulates in f32
    jax.block_until_ready(y)

    # Reference with the same bf16-rounded operands, f32 accumulation.
    xs = x.astype(jnp.bfloat16).astype(jnp.float32)
    ws = w.astype(jnp.bfloat16).astype(jnp.float32)
    y_ref = xs @ ws.T + bias

    assert y.shape == (B, OUT_FEATURES)
    assert y.dtype == jnp.float32
    assert jnp.allclose(y, y_ref, atol=2e-3, rtol=2e-3)

    print("KERNEL_OK")
</pallas_src>

<mosaic_0001>
module attributes {stable_mosaic.version = 11 : i64} {
  func.func @_linear_kernel(%arg0: i32, %arg1: i32, %arg2: memref<2x32768xbf16, #tpu.memory_space<vmem>>, %arg3: memref<10x32768xbf16, #tpu.memory_space<vmem>>, %arg4: memref<1x2x10xf32, #tpu.memory_space<vmem>>, %arg5: memref<2x10xf32, #tpu.memory_space<vmem>>) attributes {dimension_semantics = [#tpu.dimension_semantics<parallel>, #tpu.dimension_semantics<arbitrary>], iteration_bounds = array<i64: 2, 3>, scalar_prefetch = 0 : i64, scratch_operands = 1 : i64, tpu.core_type = #tpu.core_type<tc>, window_params = [{transform_indices = @transform_0, window_bounds = array<i64: 2, 32768>}, {transform_indices = @transform_1, window_bounds = array<i64: 10, 32768>}, {transform_indices = @transform_2, window_bounds = array<i64: 1, 2, 10>}]} {
    %c0_i32 = arith.constant 0 : i32
    %0 = arith.cmpi eq, %arg1, %c0_i32 : i32
    %1 = arith.extui %0 : i1 to i32
    %c0_i32_0 = arith.constant 0 : i32
    %2 = arith.cmpi ne, %1, %c0_i32_0 : i32
    scf.if %2 {
      %cst_9 = arith.constant 0.000000e+00 : f32
      %12 = vector.broadcast %cst_9 : f32 to vector<2x10xf32>
      %c0_10 = arith.constant 0 : index
      %c0_11 = arith.constant 0 : index
      %13 = vector.load %arg5[%c0_10, %c0_11] : memref<2x10xf32, #tpu.memory_space<vmem>>, vector<2x10xf32>
      tpu.vector_store %arg5[%c0_10, %c0_11], %12 {strides = array<i32>} : memref<2x10xf32, #tpu.memory_space<vmem>>, vector<2x10xf32>,
    } else {
    }
    %c0 = arith.constant 0 : index
    %c0_1 = arith.constant 0 : index
    %3 = vector.load %arg5[%c0, %c0_1] : memref<2x10xf32, #tpu.memory_space<vmem>>, vector<2x10xf32>
    %c0_2 = arith.constant 0 : index
    %c0_3 = arith.constant 0 : index
    %4 = vector.load %arg2[%c0_2, %c0_3] : memref<2x32768xbf16, #tpu.memory_space<vmem>>, vector<2x32768xbf16>
    %c0_4 = arith.constant 0 : index
    %c0_5 = arith.constant 0 : index
    %5 = vector.load %arg3[%c0_4, %c0_5] : memref<10x32768xbf16, #tpu.memory_space<vmem>>, vector<10x32768xbf16>
    %cst = arith.constant dense<0.000000e+00> : vector<2x10xf32>
    %6 = tpu.matmul %4, %5, %cst {dimension_numbers = #tpu.dot_dimension_numbers<[1], [1], [0], [0], [0, 0, 1, 0], [], []>} : vector<2x32768xbf16>, vector<10x32768xbf16>, vector<2x10xf32> -> vector<2x10xf32>
    %7 = arith.addf %3, %6 : vector<2x10xf32>
    %c0_6 = arith.constant 0 : index
    %c0_7 = arith.constant 0 : index
    %8 = vector.load %arg5[%c0_6, %c0_7] : memref<2x10xf32, #tpu.memory_space<vmem>>, vector<2x10xf32>
    tpu.vector_store %arg5[%c0_6, %c0_7], %7 {strides = array<i32>} : memref<2x10xf32, #tpu.memory_space<vmem>>, vector<2x10xf32>,
    %c2_i32 = arith.constant 2 : i32
    %9 = arith.cmpi eq, %arg1, %c2_i32 : i32
    %10 = arith.extui %9 : i1 to i32
    %c0_i32_8 = arith.constant 0 : i32
    %11 = arith.cmpi ne, %10, %c0_i32_8 : i32
    scf.if %11 {
      %c0_9 = arith.constant 0 : index
      %c0_10 = arith.constant 0 : index
      %12 = vector.load %arg5[%c0_9, %c0_10] : memref<2x10xf32, #tpu.memory_space<vmem>>, vector<2x10xf32>
      %c0_11 = arith.constant 0 : index
      %c0_12 = arith.constant 0 : index
      %c0_13 = arith.constant 0 : index
      %13 = vector.load %arg4[%c0_11, %c0_12, %c0_13] : memref<1x2x10xf32, #tpu.memory_space<vmem>>, vector<1x2x10xf32>
      %14 = vector.shape_cast %13 : vector<1x2x10xf32> to vector<2x10xf32>
      %15 = vector.shape_cast %12 : vector<2x10xf32> to vector<1x2x10xf32>
      tpu.vector_store %arg4[%c0_11, %c0_12, %c0_13], %15 {strides = array<i32>} : memref<1x2x10xf32, #tpu.memory_space<vmem>>, vector<1x2x10xf32>,
    } else {
    }
    return
  }
  func.func @transform_0(%arg0: i32, %arg1: i32) -> (i32, i32) {
    %c3_i32 = arith.constant 3 : i32
    %0 = arith.muli %arg0, %c3_i32 : i32
    %1 = arith.addi %0, %arg1 : i32
    %c0_i32 = arith.constant 0 : i32
    %c0_i32_0 = arith.constant 0 : i32
    return %c0_i32, %1 : i32, i32
  }
  func.func @transform_1(%arg0: i32, %arg1: i32) -> (i32, i32) {
    %c3_i32 = arith.constant 3 : i32
    %0 = arith.muli %arg0, %c3_i32 : i32
    %1 = arith.addi %0, %arg1 : i32
    %c0_i32 = arith.constant 0 : i32
    %c0_i32_0 = arith.constant 0 : i32
    return %c0_i32, %1 : i32, i32
  }
  func.func @transform_2(%arg0: i32, %arg1: i32) -> (i32, i32, i32) {
    %c0_i32 = arith.constant 0 : i32
    %c0_i32_0 = arith.constant 0 : i32
    %c0_i32_1 = arith.constant 0 : i32
    return %arg0, %c0_i32, %c0_i32_0 : i32, i32, i32
  }
}

</mosaic_0001>

<bundles_post_ra>
// kernel: tpu_custom_call.1
= control target key start
LH: loop header
LB: loop body
LE: loop exit
PB: predicated region body
PF: predicated region fallthrough
CT: control target
= control target key end

     0   :  { %s8219_s0 = inlined_call_operand.hbm [shape: bf16[2,196608], index: 0, kind: input, shape index: {}]   ;;  %s8220_s1 = inlined_call_operand.hbm [shape: bf16[10,196608], index: 1, kind: input, shape index: {}]   ;;  %s8221_s2 = inlined_call_operand.hbm [shape: f32[2,2,10], index: 2, kind: output, shape index: {}]  }
   0x1   :  { %8226 = sst [smem:[#allocation17_spill]] %s8219_s0 }
   0x2   :  { %7 = vsyncpa [#allocation4], 0 }
   0x3   :  { %9 = vsyncpa [#allocation4 + $0x1], 0 }
   0x4   :  { %10 = vsyncpa [#allocation7], 0 }
   0x5   :  { %12 = vsyncpa [#allocation7 + $0x1], 0 }
   0x6   :  { %13 = vsyncpa [#allocation5], 0 }
   0x7   :  { %15 = vsyncpa [#allocation5 + $0x1], 0  ;;  %s7464_s9 = smov 0   ;;  %s7466_s10 = smov 0  }
   0x8   :  { %s7468_s11 = smov 0   ;;  %s7470_s12 = smov 0  }
   0x9   :  { %s7472_s13 = smov 0   ;;  %s7474_s14 = smov 0  }
   0xa   :  { %s7476_s15 = smov 0   ;;  %s7478_s16 = smov 0  }
   0xb   :  { %s7480_s17 = smov 0   ;;  %s7482_s18 = smov 0  }
   0xc   :  { %s7484_s19 = smov 0  }
   0xd LB: > { %8227 = sst [smem:[#allocation12_spill]] %s7435_s17  ;;  %s5846_s20 = sadd.s32 4294967295, %s7443_s19   ;;  %s7443_s19 = sphi %s7484_s19, %s21_s19   ;;  %s7439_s18 = sphi %s7482_s18, %s8242_s18   ;;  %s7435_s17 = sphi %s7480_s17, %s8241_s17   ;;  %s7431_s16 = sphi %s7478_s16, %s8240_s16   ;;  %s7427_s15 = sphi %s7476_s15, %s8239_s15   ;;  %s7423_s14 = sphi %s7474_s14, %s8248_s14   ;;  %s7419_s13 = sphi %s7472_s13, %s8247_s13   ;;  %s7415_s12 = sphi %s7470_s12, %s8246_s12   ;;  %s7411_s11 = sphi %s7468_s11, %s8245_s11   ;;  %s7407_s10 = sphi %s7466_s10, %s8244_s10   ;;  %s7403_s9 = sphi %s7464_s9, %s8243_s9  }
   0xe   : > { %8228 = sst [smem:[#allocation13_spill]] %s7439_s18  ;;  %s5847_s21 = sadd.s32 4294967294, %s7443_s19  }
   0xf   : > { %s30_s22 = sadd.s32 1, %s7435_s17  ;;  %s33_s23 = sadd.s32 1, %s7439_s18 }
  0x10   : > { %p31_p0 = scmp.ge.s32.totalorder %s30_s22, 3  ;;  %s37_s24 = smul.u32 3, %s7439_s18 }
  0x11   : > { %s44_s25 = sadd.s32 1, %s7423_s14  ;;  %p51_p1 = scmp.ne.s32.totalorder %s7423_s14, %s7419_s13 }
  0x12   : > { %s8250_s22 = smov (%p31_p0, %s30_s22), 0  ;;  %s8252_s23 = smov (!%p31_p0, %s33_s23), %s7439_s18 }
  0x13   : > { %8229 = sst [smem:[#allocation14_spill]] %s8250_s22  ;;  %s7529_s26 = sadd.s32 %s7435_s17, %s37_s24 }
  0x14   : > { %p52_p2 = scmp.eq.s32.totalorder %s7443_s19, 0  ;;  %p35_p3 = scmp.ge.s32.totalorder %s8252_s23, 2 }
  0x15   : > { %p57_p4 = scmp.ne.s32.totalorder %s7419_s13, %s7415_s12  ;;  %p58_p6 = scmp.eq.s32.totalorder %s5846_s20, 0 }
  0x16   : > { %p7533_p5 = por %p52_p2, %p51_p1  ;;  %s8254_s23 = smov (%p35_p3, %s8252_s23), 0 }
  0x17   : > { %8231 = sst [smem:[#allocation15_spill]] %s8254_s23  ;;  %p7539_p7 = por %p58_p6, %p57_p4 }
  0x18   : > { %s100_s29 = sadd.s32 1, %s7411_s11  ;;  %s39_s30 = smul.u32 3, %s8254_s23 }
  0x19   : > { %s97_s3 = ssub.s32 %s7439_s18, %s8254_s23  ;;  %p110_p9 = scmp.ne.s32.totalorder %s7411_s11, %s7407_s10 }
  0x1a   : > { %p98_p8 = scmp.eq.s32.totalorder %s97_s3, 0  ;;  %s40_s4 = sadd.s32 %s39_s30, %s8250_s22 }
  0x1b   : > { %p111_p10 = scmp.eq.s32.totalorder %s5846_s20, 5  ;;  %s41_s5 = ssub.s32 %s7529_s26, %s40_s4 }
  0x1c   : > { %p116_p11 = scmp.ne.s32.totalorder %s7407_s10, %s7403_s9  ;;  %p42_p12 = scmp.eq.s32.totalorder %s41_s5, 0 }
  0x1d   : > { %p7553_p13 = por %p111_p10, %p110_p9  ;;  %p117_p0 = scmp.eq.s32.totalorder %s5847_s21, 5 }
  0x1e   : > { %s7558_s7 = scalar_select %p98_p8, %s7411_s11, %s100_s29  }
  0x1f   : > { %s7561_s8 = scalar_select %p42_p12, %s7423_s14, %s44_s25  }
  0x20   : > { %p7163_p1 = scmp.lt.s32.totalorder %s7443_s19, 6  ;;  %s7567_s12 = sand.u32 1, %s7423_s14  }
  0x21   : > { %8234 = sst [smem:[#allocation16_spill]] %s7561_s8  ;;  %p7569_p2 = por %p117_p0, %p116_p11 }
  0x22   : > { %s5850_s24 = sshll.u32 %s7567_s12, 8  ;;  %s5851_s29 = sshll.u32 %s7529_s26, 8 }
  0x23   : > { %s8236_s0 = sld [smem:[#allocation17_spill]]  ;;  %s141_s21 = scalar_lea.vmem [#allocation3], %s5850_s24 }
  0x24   : > { %s151_s5 = sshll.u32 %s141_s21, 4  ;;  %p7580_p3 = pnand %p7163_p1, %p7533_p5  ;;  %s152_s5 = int_to_ptr.vmem [resolvable:$true] %s151_s5 }
  0x25   : > { %s5852_s22 = sshll.u32 %s7567_s12, 11  ;;  %s6889_s18 = sshll.u32 %s7529_s26, 10 }
  0x26   : > { %s138_s17 = scalar_lea.sflag [#allocation4], %s7567_s12  ;;  %s169_s24 = scalar_lea.hbm %s8220_s1, %s6889_s18 }
  0x27   : > { %p5855_p4 = scmp.ge.s32.totalorder %s7443_s19, 1  ;;  %s170_s3 = sshll.u32 %s169_s24, 4  ;;  %s171_s3 = int_to_ptr.hbm [resolvable:$true] %s170_s3 }
  0x28   : > { %p180_p6 = scmp.lt.s32.totalorder %s7443_s19, 7  ;;  %s162_s27 = scalar_lea.vmem [#allocation6], %s5852_s22 }
  0x29   : > { %s147_s25 = scalar_lea.hbm %s8236_s0, %s5851_s29  ;;  %s159_s21 = scalar_lea.sflag [#allocation7], %s7567_s12 }
  0x2a   : > { %s149_s4 = sshll.u32 %s147_s25, 4  ;;  %s172_s25 = sshll.u32 %s162_s27, 4  ;;  %s150_s4 = int_to_ptr.hbm [resolvable:$true] %s149_s4  ;;  %s173_s25 = int_to_ptr.vmem [resolvable:$true] %s172_s25 }
  0x2b   : > { %7155 = dma.hbm_to_vmem [thread:$0]  (!%p7580_p3), %s150_s4, 4096, %s152_s5, %s138_s17  }
  0x2c   : > { %p181_p5 = pnand %p5855_p4, %p180_p6  ;;  %s7445_s0 = smov 98304  }
  0x2d   : > { %s7446_s8 = smov 16384   ;;  %s7447_s26 = smov 1024  }
  0x2e   : > { %7158 = dma.hbm_to_vmem [thread:$0]  (!%p7580_p3), %s171_s3, 32768, %s173_s25, %s159_s21, %s7445_s0, %s7446_s8, %s7447_s26  }
  0x2f   : > { %184 = sbr.rel (%p181_p5) target bundleno = 1249 (0x4e1), region = 28  ;;  %s186_s17 = sand.u32 (!%p181_p5), 1, %s7419_s13  }
  0x30   : > { %s5856_s4 = sshll.u32 (!%p181_p5), %s186_s17, 8  ;;  %s187_s18 = scalar_lea.sflag (!%p181_p5), [#allocation4], %s186_s17 }
  0x31   : > { %s7598_s5 = scalar_lea.vmem (!%p181_p5), [#allocation3], %s5856_s4 }
  0x34   : > { %7390 = dma.done.wait (%p7539_p7), %s187_s18, 4096  }
  0x35   : > { %7392 = vsyncadd (%p7539_p7), %s187_s18, 4294963200  ;;  %s5857_s22 = sshll.u32 %s186_s17, 11  ;;  %s197_s12 = scalar_lea.sflag [#allocation7], %s186_s17 }
  0x36   : > { %s7604_s30 = scalar_lea.vmem [#allocation6], %s5857_s22 }
  0x37   : > { %7394 = dma.done.wait (%p7539_p7), %s197_s12, 32768  }
  0x38   : > { %7396 = vsyncadd (%p7539_p7), %s197_s12, 4294934528  ;;  %s224_s0 = sand.u32 1, %s7407_s10   ;;  %p5859_p8 = scmp.ne.s32.totalorder %s7427_s15, 0 }
  0x39   : > { %s7613_s23 = sshll.u32 %s224_s0, 1 }
  0x3a   : > { %s226_s8 = scalar_lea.vmem [#allocation8], %s7613_s23  ;;  %237 = sbr.rel (%p5859_p8) target bundleno = 65 (0x41), region = 40 }
  0x3f   : > { %vm238_vm0 = vcmask 74752   ;;  %v7448_v0 = vmov 0.0  }
  0x40   : > { %239 = vst.msk [vmem:[#allocation2] sm:$0x3] %vm238_vm0, %v7448_v0 }
  0x41 PF: > { %v5862_v1 = vld [vmem:[%s7604_s30] sm:$0xf]  ;;  %v6890_v3 = vld [vmem:[%s7604_s30 + $0x4] sm:$0xf]  ;;  %v5870_v6 = vld [vmem:[%s7604_s30 + $0x8] sm:$0xf] }
  0x42   : > { %v7018_v2 = vld [vmem:[%s7604_s30 + $0x3fc] sm:$0x10]  ;;  %v5864_v5 = vld [vmem:[%s7604_s30 + $0x400] sm:$0x10]  ;;  %v7019_v7 = vld [vmem:[%s7604_s30 + $0x404] sm:$0x10] }
  0x43   : > { %v5863_v4 = vor.u32 %v7018_v2, %v5862_v1  ;;  %v5867_v8 = vor.u32 %v6890_v3, %v5864_v5  ;;  %v5871_v9 = vor.u32 %v7019_v7, %v5870_v6  ;;  %v6891_v10 = vld [vmem:[%s7604_s30 + $0xc] sm:$0xf]  ;;  %v241_v12 = vld [vmem:[%s7598_s5] sm:$0xff]  ;;  %v5886_v14 = vld [vmem:[%s7604_s30 + $0x18] sm:$0xf]  ;;  %vm5714_vm1 = vcmask 74752  }
  0x44   : > { %v5872_v11 = vld [vmem:[%s7604_s30 + $0x408] sm:$0x10]  ;;  %530 = vst [vmem:[#allocation1] ss:$9 sm:$0xff] %v241_v12  ;;  %v7021_v15 = vld [vmem:[%s7604_s30 + $0x414] sm:$0x10] }
  0x45   : > { %2392 = vmatpush.bf16.xpose.msra.mxu0 %v5863_v4  ;;  %v5875_v13 = vor.u32 %v6891_v10, %v5872_v11  ;;  %2405 = vmatpush.bf16.xpose.msra.mxu1 %v5867_v8  ;;  %v5887_v16 = vor.u32 %v7021_v15, %v5886_v14  ;;  %v6893_v17 = vld [vmem:[%s7604_s30 + $0x1c] sm:$0xf]  ;;  %v5878_v19 = vld [vmem:[%s7604_s30 + $0x10] sm:$0xf]  ;;  %v6892_v22 = vld [vmem:[%s7604_s30 + $0x14] sm:$0xf] }
  0x46   : > { %2418 = vmatpush.bf16.xpose.msra.mxu2 %v5871_v9  ;;  %v5888_v18 = vld [vmem:[%s7604_s30 + $0x418] sm:$0x10]  ;;  %v7020_v21 = vld [vmem:[%s7604_s30 + $0x40c] sm:$0x10]  ;;  %v5880_v23 = vld [vmem:[%s7604_s30 + $0x410] sm:$0x10] }
  0x47   : > { %2431 = vmatpush.bf16.xpose.msra.mxu3 %v5875_v13  ;;  %v5891_v20 = vor.u32 %v6893_v17, %v5888_v18  ;;  %v5879_v24 = vor.u32 %v7020_v21, %v5878_v19  ;;  %v5883_v25 = vor.u32 %v6892_v22, %v5880_v23  ;;  %v5902_v26 = vld [vmem:[%s7604_s30 + $0x28] sm:$0xf]  ;;  %v6895_v28 = vld [vmem:[%s7604_s30 + $0x2c] sm:$0xf]  ;;  %v5894_v30 = vld [vmem:[%s7604_s30 + $0x20] sm:$0xf] }
  0x48   : > { %v7023_v27 = vld [vmem:[%s7604_s30 + $0x424] sm:$0x10]  ;;  %v5904_v29 = vld [vmem:[%s7604_s30 + $0x428] sm:$0x10]  ;;  %v7022_v31 = vld [vmem:[%s7604_s30 + $0x41c] sm:$0x10] }
  0x49   : > { %v6894_v32 = vld [vmem:[%s7604_s30 + $0x24] sm:$0xf]  ;;  %v5903_v34 = vor.u32 %v7023_v27, %v5902_v26  ;;  %v5907_v35 = vor.u32 %v6895_v28, %v5904_v29  ;;  %v242_v36 = vld [vmem:[%s7598_s5 + $0x8] sm:$0xff]  ;;  %v5895_v40 = vor.u32 %v7022_v31, %v5894_v30  ;;  %v5918_v47 = vld [vmem:[%s7604_s30 + $0x38] sm:$0xf]  ;;  %p6884_p7 = scmp.ne.s32.totalorder %s7427_s15, 2 }
  0x4a   : > { %v5896_v33 = vld [vmem:[%s7604_s30 + $0x420] sm:$0x10]  ;;  %v7025_v48 = vld [vmem:[%s7604_s30 + $0x434] sm:$0x10]  ;;  %v6897_v49 = vld [vmem:[%s7604_s30 + $0x3c] sm:$0xf] }
  0x4b   : > { %v531_v37 = vld [vmem:[#allocation1] sm:$0xff]  ;;  %v532_v38 = vld [vmem:[#allocation1 + $0x9] sm:$0xff]  ;;  %v533_v39 = vld [vmem:[#allocation1 + $0x12] sm:$0xff]  ;;  %v5899_v41 = vor.u32 %v6894_v32, %v5896_v33  ;;  %v5919_v55 = vor.u32 %v7025_v48, %v5918_v47 }
  0x4c   : > { %2393 = vmatmul.bf16.vlgmr.msra.gmra.mxu0 %v531_v37  ;;  %2406 = vmatmul.bf16.vlgmr.msra.gmra.mxu1 %v532_v38  ;;  %v534_v42 = vld [vmem:[#allocation1 + $0x1b] sm:$0xff]  ;;  %v535_v43 = vld [vmem:[#allocation1 + $0x24] sm:$0xff]  ;;  %v536_v44 = vld [vmem:[#allocation1 + $0x2d] sm:$0xff] }
  0x4d   : > { %2444 = vmatpush.bf16.xpose.msrb.mxu0 %v5879_v24  ;;  %2457 = vmatpush.bf16.xpose.msrb.mxu1 %v5883_v25  ;;  %v537_v45 = vld [vmem:[#allocation1 + $0x36] sm:$0xff]  ;;  %v538_v46 = vld [vmem:[#allocation1 + $0x3f] sm:$0xff]  ;;  %v5912_v54 = vld [vmem:[%s7604_s30 + $0x430] sm:$0x10] }
  0x4e   : > { %2470 = vmatpush.bf16.xpose.msrb.mxu2 %v5887_v16  ;;  %2432 = vmatmul.bf16.vlgmr.msra.gmra.mxu3 %v534_v42  ;;  %540 = vst [vmem:[#allocation1] ss:$9 sm:$0xff] %v242_v36  ;;  %v5920_v50 = vld [vmem:[%s7604_s30 + $0x438] sm:$0x10]  ;;  %v5910_v51 = vld [vmem:[%s7604_s30 + $0x30] sm:$0xf] }
  0x4f   : > { %2483 = vmatpush.bf16.xpose.msrb.mxu3 %v5891_v20  ;;  %2419 = vmatmul.bf16.vlgmr.msra.gmra.mxu2 %v533_v39  ;;  %v7024_v52 = vld [vmem:[%s7604_s30 + $0x42c] sm:$0x10]  ;;  %v6896_v53 = vld [vmem:[%s7604_s30 + $0x34] sm:$0xf]  ;;  %v5923_v56 = vor.u32 %v6897_v49, %v5920_v50  ;;  %v5934_v4 = vld [vmem:[%s7604_s30 + $0x48] sm:$0xf] }
  0x50   : > { %v5911_v57 = vor.u32 %v7024_v52, %v5910_v51  ;;  %v5915_v58 = vor.u32 %v6896_v53, %v5912_v54  ;;  %v243_v3 = vld [vmem:[%s7598_s5 + $0x10] sm:$0xff]  ;;  %v7027_v5 = vld [vmem:[%s7604_s30 + $0x444] sm:$0x10]  ;;  %v6899_v6 = vld [vmem:[%s7604_s30 + $0x4c] sm:$0xf] }
  0x51   : > { %v5936_v7 = vld [vmem:[%s7604_s30 + $0x448] sm:$0x10]  ;;  %v5926_v8 = vld [vmem:[%s7604_s30 + $0x40] sm:$0xf]  ;;  %v6898_v10 = vld [vmem:[%s7604_s30 + $0x44] sm:$0xf]  ;;  %v5935_v12 = vor.u32 %v7027_v5, %v5934_v4 }
  0x52   : > { %v7026_v9 = vld [vmem:[%s7604_s30 + $0x43c] sm:$0x10]  ;;  %v5928_v11 = vld [vmem:[%s7604_s30 + $0x440] sm:$0x10]  ;;  %v5939_v13 = vor.u32 %v6899_v6, %v5936_v7  ;;  %v5950_v16 = vld [vmem:[%s7604_s30 + $0x58] sm:$0xf] }
  0x53   : > { %v5927_v14 = vor.u32 %v7026_v9, %v5926_v8  ;;  %v5931_v15 = vor.u32 %v6898_v10, %v5928_v11  ;;  %v7029_v17 = vld [vmem:[%s7604_s30 + $0x454] sm:$0x10]  ;;  %v6901_v18 = vld [vmem:[%s7604_s30 + $0x5c] sm:$0xf]  ;;  %v5942_v20 = vld [vmem:[%s7604_s30 + $0x50] sm:$0xf] }
  0x54   : > { %v5952_v19 = vld [vmem:[%s7604_s30 + $0x458] sm:$0x10]  ;;  %v7028_v21 = vld [vmem:[%s7604_s30 + $0x44c] sm:$0x10]  ;;  %v6900_v22 = vld [vmem:[%s7604_s30 + $0x54] sm:$0xf]  ;;  %v5951_v24 = vor.u32 %v7029_v17, %v5950_v16 }
  0x55   : > { %2496 = vmatpush.bf16.xpose.msra.mxu0 %v5895_v40  ;;  %2509 = vmatpush.bf16.xpose.msra.mxu1 %v5899_v41  ;;  %v541_v59 = vld [vmem:[#allocation1] sm:$0xff]  ;;  %v542_v60 = vld [vmem:[#allocation1 + $0x9] sm:$0xff]  ;;  %v543_v61 = vld [vmem:[#allocation1 + $0x12] sm:$0xff]  ;;  %v5955_v25 = vor.u32 %v6901_v18, %v5952_v19  ;;  %v5943_v26 = vor.u32 %v7028_v21, %v5942_v20 }
  0x56   : > { %2522 = vmatpush.bf16.xpose.msra.mxu2 %v5903_v34  ;;  %v544_v62 = vld [vmem:[#allocation1 + $0x1b] sm:$0xff]  ;;  %v545_v63 = vld [vmem:[#allocation1 + $0x24] sm:$0xff]  ;;  %v546_v0 = vld [vmem:[#allocation1 + $0x2d] sm:$0xff] }
  0x57   : > { %2535 = vmatpush.bf16.xpose.msra.mxu3 %v5907_v35  ;;  %v547_v1 = vld [vmem:[#allocation1 + $0x36] sm:$0xff]  ;;  %v548_v2 = vld [vmem:[#allocation1 + $0x3f] sm:$0xff]  ;;  %v5944_v23 = vld [vmem:[%s7604_s30 + $0x450] sm:$0x10] }
  0x58   : > { %550 = vst [vmem:[#allocation1] ss:$9 sm:$0xff] %v243_v3  ;;  %v5947_v27 = vor.u32 %v6900_v22, %v5944_v23  ;;  %v244_v36 = vld [vmem:[%s7598_s5 + $0x18] sm:$0xff]  ;;  %v5966_v37 = vld [vmem:[%s7604_s30 + $0x68] sm:$0xf]  ;;  %v245_v5 = vld [vmem:[%s7598_s5 + $0x20] sm:$0xff] }
  0x59   : > { %v7031_v38 = vld [vmem:[%s7604_s30 + $0x464] sm:$0x10]  ;;  %v6903_v39 = vld [vmem:[%s7604_s30 + $0x6c] sm:$0xf]  ;;  %v5958_v41 = vld [vmem:[%s7604_s30 + $0x60] sm:$0xf] }
  0x5a   : > { %v5968_v40 = vld [vmem:[%s7604_s30 + $0x468] sm:$0x10]  ;;  %v7030_v42 = vld [vmem:[%s7604_s30 + $0x45c] sm:$0x10]  ;;  %v5982_v49 = vld [vmem:[%s7604_s30 + $0x78] sm:$0xf] }
  0x5b   : > { %v5959_v47 = vor.u32 %v7030_v42, %v5958_v41  ;;  %v7033_v50 = vld [vmem:[%s7604_s30 + $0x474] sm:$0x10]  ;;  %v6905_v51 = vld [vmem:[%s7604_s30 + $0x7c] sm:$0xf]  ;;  %v5974_v53 = vld [vmem:[%s7604_s30 + $0x70] sm:$0xf] }
  0x5c   : > { %2445 = vmatmul.bf16.vlgmr.msrb.gmra.mxu0 %v535_v43  ;;  %2458 = vmatmul.bf16.vlgmr.msrb.gmra.mxu1 %v536_v44  ;;  %v6902_v43 = vld [vmem:[%s7604_s30 + $0x64] sm:$0xf]  ;;  %v5984_v52 = vld [vmem:[%s7604_s30 + $0x478] sm:$0x10]  ;;  %v7032_v54 = vld [vmem:[%s7604_s30 + $0x46c] sm:$0x10] }
  0x5d   : > { %2548 = vmatpush.bf16.xpose.msrb.mxu0 %v5911_v57  ;;  %2561 = vmatpush.bf16.xpose.msrb.mxu1 %v5915_v58  ;;  %v5960_v44 = vld [vmem:[%s7604_s30 + $0x460] sm:$0x10]  ;;  %v5983_v57 = vor.u32 %v7033_v50, %v5982_v49  ;;  %v5987_v58 = vor.u32 %v6905_v51, %v5984_v52  ;;  %v5998_v6 = vld [vmem:[%s7604_s30 + $0x88] sm:$0xf]  ;;  %v6907_v8 = vld [vmem:[%s7604_s30 + $0x8c] sm:$0xf] }
  0x5e   : > { %2484 = vmatmul.bf16.vlgmr.msrb.gmra.mxu3 %v538_v46  ;;  %v5971_v46 = vor.u32 %v6903_v39, %v5968_v40  ;;  %v5963_v48 = vor.u32 %v6902_v43, %v5960_v44  ;;  %v7035_v7 = vld [vmem:[%s7604_s30 + $0x484] sm:$0x10]  ;;  %v6000_v9 = vld [vmem:[%s7604_s30 + $0x488] sm:$0x10]  ;;  %v5990_v10 = vld [vmem:[%s7604_s30 + $0x80] sm:$0xf] }
  0x5f   : > { %2471 = vmatmul.bf16.vlgmr.msrb.gmra.mxu2 %v537_v45  ;;  %2587 = vmatpush.bf16.xpose.msrb.mxu3 %v5923_v56  ;;  %v551_v28 = vld [vmem:[#allocation1] sm:$0xff]  ;;  %v552_v29 = vld [vmem:[#allocation1 + $0x9] sm:$0xff]  ;;  %v553_v30 = vld [vmem:[#allocation1 + $0x12] sm:$0xff]  ;;  %v5967_v45 = vor.u32 %v7031_v38, %v5966_v37 }
  0x60   : > { %2574 = vmatpush.bf16.xpose.msrb.mxu2 %v5919_v55  ;;  %v554_v31 = vld [vmem:[#allocation1 + $0x1b] sm:$0xff]  ;;  %v555_v32 = vld [vmem:[#allocation1 + $0x24] sm:$0xff]  ;;  %v556_v33 = vld [vmem:[#allocation1 + $0x2d] sm:$0xff] }
  0x61   : > { %v557_v34 = vld [vmem:[#allocation1 + $0x36] sm:$0xff]  ;;  %v558_v35 = vld [vmem:[#allocation1 + $0x3f] sm:$0xff]  ;;  %v5976_v56 = vld [vmem:[%s7604_s30 + $0x470] sm:$0x10] }
  0x62   : > { %560 = vst [vmem:[#allocation1] ss:$9 sm:$0xff] %v244_v36  ;;  %v6904_v55 = vld [vmem:[%s7604_s30 + $0x74] sm:$0xf]  ;;  %v7034_v11 = vld [vmem:[%s7604_s30 + $0x47c] sm:$0x10] }
  0x63   : > { %v5991_v16 = vor.u32 %v7034_v11, %v5990_v10  ;;  %v6014_v18 = vld [vmem:[%s7604_s30 + $0x98] sm:$0xf]  ;;  %v6909_v20 = vld [vmem:[%s7604_s30 + $0x9c] sm:$0xf]  ;;  %v6006_v22 = vld [vmem:[%s7604_s30 + $0x90] sm:$0xf] }
  0x64   : > { %v7037_v19 = vld [vmem:[%s7604_s30 + $0x494] sm:$0x10]  ;;  %v6016_v21 = vld [vmem:[%s7604_s30 + $0x498] sm:$0x10]  ;;  %v7036_v23 = vld [vmem:[%s7604_s30 + $0x48c] sm:$0x10] }
  0x65   : > { %v246_v38 = vld [vmem:[%s7598_s5 + $0x28] sm:$0xff]  ;;  %v6022_v43 = vld [vmem:[%s7604_s30 + $0xa0] sm:$0xf] }
  0x66   : > { %v6030_v39 = vld [vmem:[%s7604_s30 + $0xa8] sm:$0xf]  ;;  %v6911_v41 = vld [vmem:[%s7604_s30 + $0xac] sm:$0xf]  ;;  %v7038_v44 = vld [vmem:[%s7604_s30 + $0x49c] sm:$0x10] }
  0x67   : > { %v7039_v40 = vld [vmem:[%s7604_s30 + $0x4a4] sm:$0x10]  ;;  %v6032_v42 = vld [vmem:[%s7604_s30 + $0x4a8] sm:$0x10]  ;;  %v6023_v52 = vor.u32 %v7038_v44, %v6022_v43 }
  0x68   : > { %v6031_v50 = vor.u32 %v7039_v40, %v6030_v39  ;;  %v6035_v51 = vor.u32 %v6911_v41, %v6032_v42 }
  0x69   : > { %v567_v3 = vld [vmem:[#allocation1 + $0x36] sm:$0xff]  ;;  %v568_v4 = vld [vmem:[#allocation1 + $0x3f] sm:$0xff] }
  0x6c   : > { %2497 = vmatmul.bf16.vlgmr.msra.gmra.mxu0 %v541_v59  ;;  %2510 = vmatmul.bf16.vlgmr.msra.gmra.mxu1 %v542_v60  ;;  %v5975_v59 = vor.u32 %v7032_v54, %v5974_v53  ;;  %v5979_v60 = vor.u32 %v6904_v55, %v5976_v56 }
  0x6d   : > { %2600 = vmatpush.bf16.xpose.msra.mxu0 %v5927_v14  ;;  %2613 = vmatpush.bf16.xpose.msra.mxu1 %v5931_v15  ;;  %v5999_v14 = vor.u32 %v7035_v7, %v5998_v6  ;;  %v6003_v15 = vor.u32 %v6907_v8, %v6000_v9 }
  0x6e   : > { %2536 = vmatmul.bf16.vlgmr.msra.gmra.mxu3 %v544_v62  ;;  %v562_v62 = vld [vmem:[#allocation1 + $0x9] sm:$0xff] }
  0x6f   : > { %2523 = vmatmul.bf16.vlgmr.msra.gmra.mxu2 %v543_v61  ;;  %2639 = vmatpush.bf16.xpose.msra.mxu3 %v5939_v13  ;;  %v561_v61 = vld [vmem:[#allocation1] sm:$0xff]  ;;  %v5992_v13 = vld [vmem:[%s7604_s30 + $0x480] sm:$0x10] }
  0x70   : > { %2626 = vmatpush.bf16.xpose.msra.mxu2 %v5935_v12  ;;  %v6906_v12 = vld [vmem:[%s7604_s30 + $0x84] sm:$0xf] }
  0x71   : > { %v5995_v17 = vor.u32 %v6906_v12, %v5992_v13 }
  0x7c   : > { %2549 = vmatmul.bf16.vlgmr.msrb.gmra.mxu0 %v545_v63  ;;  %2562 = vmatmul.bf16.vlgmr.msrb.gmra.mxu1 %v546_v0  ;;  %v563_v63 = vld [vmem:[#allocation1 + $0x12] sm:$0xff]  ;;  %v564_v0 = vld [vmem:[#allocation1 + $0x1b] sm:$0xff] }
  0x7d   : > { %2652 = vmatpush.bf16.xpose.msrb.mxu0 %v5943_v26  ;;  %2665 = vmatpush.bf16.xpose.msrb.mxu1 %v5947_v27  ;;  %v6015_v26 = vor.u32 %v7037_v19, %v6014_v18  ;;  %v6019_v27 = vor.u32 %v6909_v20, %v6016_v21 }
  0x7e   : > { %2588 = vmatmul.bf16.vlgmr.msrb.gmra.mxu3 %v548_v2  ;;  %v566_v2 = vld [vmem:[#allocation1 + $0x2d] sm:$0xff] }
  0x7f   : > { %2575 = vmatmul.bf16.vlgmr.msrb.gmra.mxu2 %v547_v1  ;;  %2691 = vmatpush.bf16.xpose.msrb.mxu3 %v5955_v25  ;;  %v565_v1 = vld [vmem:[#allocation1 + $0x24] sm:$0xff]  ;;  %v6008_v25 = vld [vmem:[%s7604_s30 + $0x490] sm:$0x10] }
  0x80   : > { %2678 = vmatpush.bf16.xpose.msrb.mxu2 %v5951_v24  ;;  %570 = vst [vmem:[#allocation1] ss:$9 sm:$0xff] %v245_v5  ;;  %v6908_v24 = vld [vmem:[%s7604_s30 + $0x94] sm:$0xf] }
  0x81   : > { %v6040_v5 = vld [vmem:[%s7604_s30 + $0x4b0] sm:$0x10] }
  0x87   : > { %v577_v36 = vld [vmem:[#allocation1 + $0x36] sm:$0xff]  ;;  %v578_v37 = vld [vmem:[#allocation1 + $0x3f] sm:$0xff] }
  0x8c   : > { %2601 = vmatmul.bf16.vlgmr.msra.gmra.mxu0 %v551_v28  ;;  %2614 = vmatmul.bf16.vlgmr.msra.gmra.mxu1 %v552_v29  ;;  %v6007_v28 = vor.u32 %v7036_v23, %v6006_v22  ;;  %v6011_v29 = vor.u32 %v6908_v24, %v6008_v25 }
  0x8d   : > { %2704 = vmatpush.bf16.xpose.msra.mxu0 %v5959_v47  ;;  %2717 = vmatpush.bf16.xpose.msra.mxu1 %v5963_v48 }
  0x8e   : > { %2640 = vmatmul.bf16.vlgmr.msra.gmra.mxu3 %v554_v31  ;;  %v572_v31 = vld [vmem:[#allocation1 + $0x9] sm:$0xff] }
  0x8f   : > { %2627 = vmatmul.bf16.vlgmr.msra.gmra.mxu2 %v553_v30  ;;  %2743 = vmatpush.bf16.xpose.msra.mxu3 %v5971_v46  ;;  %v571_v30 = vld [vmem:[#allocation1] sm:$0xff]  ;;  %v6024_v46 = vld [vmem:[%s7604_s30 + $0x4a0] sm:$0x10] }
  0x90   : > { %2730 = vmatpush.bf16.xpose.msra.mxu2 %v5967_v45  ;;  %v6910_v45 = vld [vmem:[%s7604_s30 + $0xa4] sm:$0xf] }
  0x91   : > { %v6027_v53 = vor.u32 %v6910_v45, %v6024_v46 }
  0x9c   : > { %2653 = vmatmul.bf16.vlgmr.msrb.gmra.mxu0 %v555_v32  ;;  %2666 = vmatmul.bf16.vlgmr.msrb.gmra.mxu1 %v556_v33  ;;  %v573_v32 = vld [vmem:[#allocation1 + $0x12] sm:$0xff]  ;;  %v574_v33 = vld [vmem:[#allocation1 + $0x1b] sm:$0xff] }
  0x9d   : > { %2756 = vmatpush.bf16.xpose.msrb.mxu0 %v5975_v59  ;;  %2769 = vmatpush.bf16.xpose.msrb.mxu1 %v5979_v60  ;;  %v6046_v60 = vld [vmem:[%s7604_s30 + $0xb8] sm:$0xf] }
  0x9e   : > { %2692 = vmatmul.bf16.vlgmr.msrb.gmra.mxu3 %v558_v35  ;;  %v576_v35 = vld [vmem:[#allocation1 + $0x2d] sm:$0xff] }
  0x9f   : > { %2679 = vmatmul.bf16.vlgmr.msrb.gmra.mxu2 %v557_v34  ;;  %2795 = vmatpush.bf16.xpose.msrb.mxu3 %v5987_v58  ;;  %v575_v34 = vld [vmem:[#allocation1 + $0x24] sm:$0xff] }
  0xa0   : > { %2782 = vmatpush.bf16.xpose.msrb.mxu2 %v5983_v57  ;;  %580 = vst [vmem:[#allocation1] ss:$9 sm:$0xff] %v246_v38  ;;  %v6056_v38 = vld [vmem:[%s7604_s30 + $0x4c0] sm:$0x10] }
  0xa7   : > { %v581_v19 = vld [vmem:[#allocation1] sm:$0xff]  ;;  %v582_v20 = vld [vmem:[#allocation1 + $0x9] sm:$0xff]  ;;  %v583_v21 = vld [vmem:[#allocation1 + $0x12] sm:$0xff] }
  0xa8   : > { %v584_v23 = vld [vmem:[#allocation1 + $0x1b] sm:$0xff]  ;;  %v585_v24 = vld [vmem:[#allocation1 + $0x24] sm:$0xff]  ;;  %v586_v25 = vld [vmem:[#allocation1 + $0x2d] sm:$0xff] }
  0xac   : > { %2705 = vmatmul.bf16.vlgmr.msra.gmra.mxu0 %v561_v61  ;;  %2718 = vmatmul.bf16.vlgmr.msra.gmra.mxu1 %v562_v62  ;;  %v7041_v61 = vld [vmem:[%s7604_s30 + $0x4b4] sm:$0x10]  ;;  %v6913_v62 = vld [vmem:[%s7604_s30 + $0xbc] sm:$0xf] }
  0xad   : > { %2808 = vmatpush.bf16.xpose.msra.mxu0 %v5991_v16  ;;  %2821 = vmatpush.bf16.xpose.msra.mxu1 %v5995_v17  ;;  %v6047_v9 = vor.u32 %v7041_v61, %v6046_v60  ;;  %v7044_v60 = vld [vmem:[%s7604_s30 + $0x4cc] sm:$0x10]  ;;  %v6916_v61 = vld [vmem:[%s7604_s30 + $0xd4] sm:$0xf] }
  0xae   : > { %2744 = vmatmul.bf16.vlgmr.msra.gmra.mxu3 %v564_v0  ;;  %v6038_v0 = vld [vmem:[%s7604_s30 + $0xb0] sm:$0xf] }
  0xaf   : > { %2731 = vmatmul.bf16.vlgmr.msra.gmra.mxu2 %v563_v63  ;;  %2847 = vmatpush.bf16.xpose.msra.mxu3 %v6003_v15  ;;  %v6048_v63 = vld [vmem:[%s7604_s30 + $0x4b8] sm:$0x10] }
  0xb0   : > { %2834 = vmatpush.bf16.xpose.msra.mxu2 %v5999_v14  ;;  %v6051_v10 = vor.u32 %v6913_v62, %v6048_v63  ;;  %v6072_v62 = vld [vmem:[%s7604_s30 + $0x4d0] sm:$0x10] }
  0xbc   : > { %2757 = vmatmul.bf16.vlgmr.msrb.gmra.mxu0 %v565_v1  ;;  %2770 = vmatmul.bf16.vlgmr.msrb.gmra.mxu1 %v566_v2 }
  0xbd   : > { %2860 = vmatpush.bf16.xpose.msrb.mxu0 %v6007_v28  ;;  %2873 = vmatpush.bf16.xpose.msrb.mxu1 %v6011_v29  ;;  %v247_v28 = vld [vmem:[%s7598_s5 + $0x30] sm:$0xff]  ;;  %v6062_v29 = vld [vmem:[%s7604_s30 + $0xc8] sm:$0xf] }
  0xbe   : > { %2796 = vmatmul.bf16.vlgmr.msrb.gmra.mxu3 %v568_v4  ;;  %v6912_v4 = vld [vmem:[%s7604_s30 + $0xb4] sm:$0xf] }
  0xbf   : > { %2783 = vmatmul.bf16.vlgmr.msrb.gmra.mxu2 %v567_v3  ;;  %2899 = vmatpush.bf16.xpose.msrb.mxu3 %v6019_v27  ;;  %v7040_v3 = vld [vmem:[%s7604_s30 + $0x4ac] sm:$0x10]  ;;  %v6043_v12 = vor.u32 %v6912_v4, %v6040_v5  ;;  %v588_v27 = vld [vmem:[#allocation1 + $0x3f] sm:$0xff]  ;;  %v6075_v5 = vor.u32 %v6916_v61, %v6072_v62 }
  0xc0   : > { %2886 = vmatpush.bf16.xpose.msrb.mxu2 %v6015_v26  ;;  %v6039_v11 = vor.u32 %v7040_v3, %v6038_v0  ;;  %v587_v26 = vld [vmem:[#allocation1 + $0x36] sm:$0xff] }
  0xc1   : > { %590 = vst [vmem:[#allocation1] ss:$9 sm:$0xff] %v247_v28 }
  0xc9   : > { %v2394_v47 = vpop.f32.mrf.mxu0  ;;  %v2407_v48 = vpop.f32.mrf.mxu1 }
  0xca   : > { %v2408_v49 = vadd.f32 %v2407_v48, %v2394_v47 }
  0xcc   : > { %2809 = vmatmul.bf16.vlgmr.msra.gmra.mxu0 %v571_v30  ;;  %2822 = vmatmul.bf16.vlgmr.msra.gmra.mxu1 %v572_v31  ;;  %v7043_v30 = vld [vmem:[%s7604_s30 + $0x4c4] sm:$0x10]  ;;  %v6915_v31 = vld [vmem:[%s7604_s30 + $0xcc] sm:$0xf] }
  0xcd   : > { %2912 = vmatpush.bf16.xpose.msra.mxu0 %v6023_v52  ;;  %2925 = vmatpush.bf16.xpose.msra.mxu1 %v6027_v53  ;;  %v6063_v42 = vor.u32 %v7043_v30, %v6062_v29  ;;  %v6078_v53 = vld [vmem:[%s7604_s30 + $0xd8] sm:$0xf]  ;;  %v7046_v29 = vld [vmem:[%s7604_s30 + $0x4dc] sm:$0x10]  ;;  %v6918_v30 = vld [vmem:[%s7604_s30 + $0xe4] sm:$0xf] }
  0xce   : > { %2848 = vmatmul.bf16.vlgmr.msra.gmra.mxu3 %v574_v33  ;;  %v6054_v33 = vld [vmem:[%s7604_s30 + $0xc0] sm:$0xf] }
  0xcf   : > { %2835 = vmatmul.bf16.vlgmr.msra.gmra.mxu2 %v573_v32  ;;  %2951 = vmatpush.bf16.xpose.msra.mxu3 %v6035_v51  ;;  %v6064_v32 = vld [vmem:[%s7604_s30 + $0x4c8] sm:$0x10] }
  0xd0   : > { %2938 = vmatpush.bf16.xpose.msra.mxu2 %v6031_v50  ;;  %v6067_v43 = vor.u32 %v6915_v31, %v6064_v32  ;;  %v6088_v31 = vld [vmem:[%s7604_s30 + $0x4e0] sm:$0x10] }
  0xd1   : > { %v2433_v55 = vpop.f32.mrf.mxu3  ;;  %v2396_v57 = vpop.f32.mrf.mxu0 }
  0xd2   : > { %v2420_v54 = vpop.f32.mrf.mxu2  ;;  %v2409_v58 = vpop.f32.mrf.mxu1  ;;  %v6070_v57 = vld [vmem:[%s7604_s30 + $0xd0] sm:$0xf] }
  0xd3   : > { %v2421_v56 = vadd.f32 %v2420_v54, %v2408_v49  ;;  %v7045_v54 = vld [vmem:[%s7604_s30 + $0x4d4] sm:$0x10]  ;;  %v6071_v4 = vor.u32 %v7044_v60, %v6070_v57 }
  0xd5   : > { %v2434_v59 = vadd.f32 %v2433_v55, %v2421_v56  ;;  %v6917_v55 = vld [vmem:[%s7604_s30 + $0xdc] sm:$0xf] }
  0xd6   : > { %v6080_v56 = vld [vmem:[%s7604_s30 + $0x4d8] sm:$0x10] }
  0xd7   : > { %v6083_v3 = vor.u32 %v6917_v55, %v6080_v56  ;;  %v6104_v55 = vld [vmem:[%s7604_s30 + $0x4f0] sm:$0x10] }
  0xd9   : > { %v2435_v2 = vpop.f32.mrf.mxu3  ;;  %v2446_v6 = vpop.f32.mrf.mxu0 }
  0xda   : > { %v2422_v1 = vpop.f32.mrf.mxu2  ;;  %v2459_v7 = vpop.f32.mrf.mxu1  ;;  %v2447_v8 = vadd.f32 %v2446_v6, %v2434_v59  ;;  %v6079_v2 = vor.u32 %v7045_v54, %v6078_v53  ;;  %v7048_v53 = vld [vmem:[%s7604_s30 + $0x4ec] sm:$0x10]  ;;  %v6920_v54 = vld [vmem:[%s7604_s30 + $0xf4] sm:$0xf] }
  0xdb   : > { %v6107_v62 = vor.u32 %v6920_v54, %v6104_v55 }
  0xdc   : > { %v2460_v13 = vadd.f32 %v2459_v7, %v2447_v8  ;;  %2861 = vmatmul.bf16.vlgmr.msrb.gmra.mxu0 %v575_v34  ;;  %2874 = vmatmul.bf16.vlgmr.msrb.gmra.mxu1 %v576_v35 }
  0xdd   : > { %2964 = vmatpush.bf16.xpose.msrb.mxu0 %v6039_v11  ;;  %2977 = vmatpush.bf16.xpose.msrb.mxu1 %v6043_v12  ;;  %v591_v12 = vld [vmem:[#allocation1] sm:$0xff] }
  0xde   : > { %2900 = vmatmul.bf16.vlgmr.msrb.gmra.mxu3 %v578_v37  ;;  %v6914_v37 = vld [vmem:[%s7604_s30 + $0xc4] sm:$0xf] }
  0xdf   : > { %2887 = vmatmul.bf16.vlgmr.msrb.gmra.mxu2 %v577_v36  ;;  %3003 = vmatpush.bf16.xpose.msrb.mxu3 %v6051_v10  ;;  %v7042_v36 = vld [vmem:[%s7604_s30 + $0x4bc] sm:$0x10]  ;;  %v6059_v45 = vor.u32 %v6914_v37, %v6056_v38  ;;  %v6091_v38 = vor.u32 %v6918_v30, %v6088_v31 }
  0xe0   : > { %2990 = vmatpush.bf16.xpose.msrb.mxu2 %v6047_v9  ;;  %v6055_v44 = vor.u32 %v7042_v36, %v6054_v33 }
  0xe1   : > { %v2485_v15 = vpop.f32.mrf.mxu3  ;;  %v2448_v17 = vpop.f32.mrf.mxu0 }
  0xe2   : > { %v2472_v14 = vpop.f32.mrf.mxu2  ;;  %v2461_v18 = vpop.f32.mrf.mxu1  ;;  %v595_v17 = vld [vmem:[#allocation1 + $0x24] sm:$0xff] }
  0xe3   : > { %v2473_v16 = vadd.f32 %v2472_v14, %v2460_v13  ;;  %v592_v13 = vld [vmem:[#allocation1 + $0x9] sm:$0xff]  ;;  %v593_v14 = vld [vmem:[#allocation1 + $0x12] sm:$0xff] }
  0xe4   : > { %v596_v18 = vld [vmem:[#allocation1 + $0x2d] sm:$0xff] }
  0xe5   : > { %v2486_v22 = vadd.f32 %v2485_v15, %v2473_v16  ;;  %v594_v16 = vld [vmem:[#allocation1 + $0x1b] sm:$0xff] }
  0xe9   : > { %v2487_v35 = vpop.f32.mrf.mxu3  ;;  %v2498_v39 = vpop.f32.mrf.mxu0 }
  0xea   : > { %v2474_v34 = vpop.f32.mrf.mxu2  ;;  %v2511_v40 = vpop.f32.mrf.mxu1  ;;  %v2499_v41 = vadd.f32 %v2498_v39, %v2486_v22  ;;  %v6094_v22 = vld [vmem:[%s7604_s30 + $0xe8] sm:$0xf] }
  0xec   : > { %v2512_v46 = vadd.f32 %v2511_v40, %v2499_v41  ;;  %2913 = vmatmul.bf16.vlgmr.msra.gmra.mxu0 %v581_v19  ;;  %2926 = vmatmul.bf16.vlgmr.msra.gmra.mxu1 %v582_v20  ;;  %v597_v19 = vld [vmem:[#allocation1 + $0x36] sm:$0xff]  ;;  %v598_v20 = vld [vmem:[#allocation1 + $0x3f] sm:$0xff] }
  0xed   : > { %3016 = vmatpush.bf16.xpose.msra.mxu0 %v6055_v44  ;;  %3029 = vmatpush.bf16.xpose.msra.mxu1 %v6059_v45 }
  0xee   : > { %2952 = vmatmul.bf16.vlgmr.msra.gmra.mxu3 %v584_v23  ;;  %v7047_v23 = vld [vmem:[%s7604_s30 + $0x4e4] sm:$0x10] }
  0xef   : > { %2939 = vmatmul.bf16.vlgmr.msra.gmra.mxu2 %v583_v21  ;;  %3055 = vmatpush.bf16.xpose.msra.mxu3 %v6067_v43  ;;  %v248_v21 = vld [vmem:[%s7598_s5 + $0x38] sm:$0xff]  ;;  %v6095_v35 = vor.u32 %v7047_v23, %v6094_v22  ;;  %v7050_v22 = vld [vmem:[%s7604_s30 + $0x4fc] sm:$0x10]  ;;  %v6922_v23 = vld [vmem:[%s7604_s30 + $0x104] sm:$0xf] }
  0xf0   : > { %3042 = vmatpush.bf16.xpose.msra.mxu2 %v6063_v42  ;;  %600 = vst [vmem:[#allocation1] ss:$9 sm:$0xff] %v248_v21 }
  0xf1   : > { %v2537_v48 = vpop.f32.mrf.mxu3  ;;  %v2500_v50 = vpop.f32.mrf.mxu0 }
  0xf2   : > { %v2524_v47 = vpop.f32.mrf.mxu2  ;;  %v2513_v51 = vpop.f32.mrf.mxu1  ;;  %v6102_v50 = vld [vmem:[%s7604_s30 + $0xf0] sm:$0xf] }
  0xf3   : > { %v2525_v49 = vadd.f32 %v2524_v47, %v2512_v46  ;;  %v6110_v46 = vld [vmem:[%s7604_s30 + $0xf8] sm:$0xf]  ;;  %v6103_v61 = vor.u32 %v7048_v53, %v6102_v50 }
  0xf4   : > { %v7049_v47 = vld [vmem:[%s7604_s30 + $0x4f4] sm:$0x10] }
  0xf5   : > { %v2538_v52 = vadd.f32 %v2537_v48, %v2525_v49  ;;  %v6921_v48 = vld [vmem:[%s7604_s30 + $0xfc] sm:$0xf] }
  0xf6   : > { %v6112_v49 = vld [vmem:[%s7604_s30 + $0x4f8] sm:$0x10] }
  0xf7   : > { %v6115_v60 = vor.u32 %v6921_v48, %v6112_v49  ;;  %v6136_v48 = vld [vmem:[%s7604_s30 + $0x510] sm:$0x10] }
  0xf9   : > { %v2539_v59 = vpop.f32.mrf.mxu3  ;;  %v2550_v63 = vpop.f32.mrf.mxu0 }
  0xfa   : > { %v2526_v58 = vpop.f32.mrf.mxu2  ;;  %v2563_v0 = vpop.f32.mrf.mxu1  ;;  %v2551_v1 = vadd.f32 %v2550_v63, %v2538_v52  ;;  %v6111_v59 = vor.u32 %v7049_v47, %v6110_v46  ;;  %v7052_v46 = vld [vmem:[%s7604_s30 + $0x50c] sm:$0x10]  ;;  %v6924_v47 = vld [vmem:[%s7604_s30 + $0x114] sm:$0xf] }
  0xfb   : > { %v6139_v55 = vor.u32 %v6924_v47, %v6136_v48 }
  0xfc   : > { %v2564_v6 = vadd.f32 %v2563_v0, %v2551_v1  ;;  %2965 = vmatmul.bf16.vlgmr.msrb.gmra.mxu0 %v585_v24  ;;  %2978 = vmatmul.bf16.vlgmr.msrb.gmra.mxu1 %v586_v25  ;;  %v6919_v24 = vld [vmem:[%s7604_s30 + $0xec] sm:$0xf] }
  0xfd   : > { %3068 = vmatpush.bf16.xpose.msrb.mxu0 %v6071_v4  ;;  %3081 = vmatpush.bf16.xpose.msrb.mxu1 %v6075_v5  ;;  %v6096_v25 = vld [vmem:[%s7604_s30 + $0x4e8] sm:$0x10]  ;;  %v601_v5 = vld [vmem:[#allocation1] sm:$0xff] }
  0xfe   : > { %3004 = vmatmul.bf16.vlgmr.msrb.gmra.mxu3 %v588_v27  ;;  %v6099_v36 = vor.u32 %v6919_v24, %v6096_v25  ;;  %v6120_v24 = vld [vmem:[%s7604_s30 + $0x500] sm:$0x10] }
  0xff   : > { %2991 = vmatmul.bf16.vlgmr.msrb.gmra.mxu2 %v587_v26  ;;  %3107 = vmatpush.bf16.xpose.msrb.mxu3 %v6083_v3  ;;  %v6086_v26 = vld [vmem:[%s7604_s30 + $0xe0] sm:$0xf]  ;;  %v6123_v31 = vor.u32 %v6922_v23, %v6120_v24 }
 0x100   : > { %3094 = vmatpush.bf16.xpose.msrb.mxu2 %v6079_v2  ;;  %v6087_v37 = vor.u32 %v7046_v29, %v6086_v26 }
 0x101   : > { %v2589_v8 = vpop.f32.mrf.mxu3  ;;  %v2552_v10 = vpop.f32.mrf.mxu0 }
 0x102   : > { %v2576_v7 = vpop.f32.mrf.mxu2  ;;  %v2565_v11 = vpop.f32.mrf.mxu1  ;;  %v605_v10 = vld [vmem:[#allocation1 + $0x24] sm:$0xff] }
 0x103   : > { %v2577_v9 = vadd.f32 %v2576_v7, %v2564_v6  ;;  %v602_v6 = vld [vmem:[#allocation1 + $0x9] sm:$0xff]  ;;  %v603_v7 = vld [vmem:[#allocation1 + $0x12] sm:$0xff] }
 0x104   : > { %v606_v11 = vld [vmem:[#allocation1 + $0x2d] sm:$0xff] }
 0x105   : > { %v2590_v15 = vadd.f32 %v2589_v8, %v2577_v9  ;;  %v604_v9 = vld [vmem:[#allocation1 + $0x1b] sm:$0xff] }
 0x109   : > { %v2591_v28 = vpop.f32.mrf.mxu3  ;;  %v2602_v32 = vpop.f32.mrf.mxu0 }
 0x10a   : > { %v2578_v27 = vpop.f32.mrf.mxu2  ;;  %v2615_v33 = vpop.f32.mrf.mxu1  ;;  %v2603_v34 = vadd.f32 %v2602_v32, %v2590_v15  ;;  %v6126_v15 = vld [vmem:[%s7604_s30 + $0x108] sm:$0xf] }
 0x10c   : > { %v2616_v39 = vadd.f32 %v2615_v33, %v2603_v34  ;;  %3017 = vmatmul.bf16.vlgmr.msra.gmra.mxu0 %v591_v12  ;;  %3030 = vmatmul.bf16.vlgmr.msra.gmra.mxu1 %v592_v13  ;;  %v607_v12 = vld [vmem:[#allocation1 + $0x36] sm:$0xff]  ;;  %v608_v13 = vld [vmem:[#allocation1 + $0x3f] sm:$0xff] }
 0x10d   : > { %3120 = vmatpush.bf16.xpose.msra.mxu0 %v6087_v37  ;;  %3133 = vmatpush.bf16.xpose.msra.mxu1 %v6091_v38 }
 0x10e   : > { %3056 = vmatmul.bf16.vlgmr.msra.gmra.mxu3 %v594_v16  ;;  %v7051_v16 = vld [vmem:[%s7604_s30 + $0x504] sm:$0x10] }
 0x10f   : > { %3043 = vmatmul.bf16.vlgmr.msra.gmra.mxu2 %v593_v14  ;;  %3159 = vmatpush.bf16.xpose.msra.mxu3 %v6099_v36  ;;  %v249_v14 = vld [vmem:[%s7598_s5 + $0x40] sm:$0xff]  ;;  %v6127_v28 = vor.u32 %v7051_v16, %v6126_v15 }
 0x110   : > { %3146 = vmatpush.bf16.xpose.msra.mxu2 %v6095_v35  ;;  %610 = vst [vmem:[#allocation1] ss:$9 sm:$0xff] %v249_v14  ;;  %v7054_v15 = vld [vmem:[%s7604_s30 + $0x51c] sm:$0x10]  ;;  %v6926_v16 = vld [vmem:[%s7604_s30 + $0x124] sm:$0xf] }
 0x111   : > { %v2641_v41 = vpop.f32.mrf.mxu3  ;;  %v2604_v43 = vpop.f32.mrf.mxu0 }
 0x112   : > { %v2628_v40 = vpop.f32.mrf.mxu2  ;;  %v2617_v44 = vpop.f32.mrf.mxu1  ;;  %v6134_v43 = vld [vmem:[%s7604_s30 + $0x110] sm:$0xf] }
 0x113   : > { %v2629_v42 = vadd.f32 %v2628_v40, %v2616_v39  ;;  %v6142_v39 = vld [vmem:[%s7604_s30 + $0x118] sm:$0xf]  ;;  %v6135_v54 = vor.u32 %v7052_v46, %v6134_v43 }
 0x114   : > { %v7053_v40 = vld [vmem:[%s7604_s30 + $0x514] sm:$0x10] }
 0x115   : > { %v2642_v45 = vadd.f32 %v2641_v41, %v2629_v42  ;;  %v6925_v41 = vld [vmem:[%s7604_s30 + $0x11c] sm:$0xf] }
 0x116   : > { %v6144_v42 = vld [vmem:[%s7604_s30 + $0x518] sm:$0x10] }
 0x117   : > { %v6147_v53 = vor.u32 %v6925_v41, %v6144_v42  ;;  %v6168_v41 = vld [vmem:[%s7604_s30 + $0x530] sm:$0x10] }
 0x119   : > { %v2643_v52 = vpop.f32.mrf.mxu3  ;;  %v2654_v56 = vpop.f32.mrf.mxu0 }
 0x11a   : > { %v2630_v51 = vpop.f32.mrf.mxu2  ;;  %v2667_v57 = vpop.f32.mrf.mxu1  ;;  %v2655_v58 = vadd.f32 %v2654_v56, %v2642_v45  ;;  %v6143_v52 = vor.u32 %v7053_v40, %v6142_v39  ;;  %v7056_v39 = vld [vmem:[%s7604_s30 + $0x52c] sm:$0x10]  ;;  %v6928_v40 = vld [vmem:[%s7604_s30 + $0x134] sm:$0xf] }
 0x11b   : > { %v6171_v48 = vor.u32 %v6928_v40, %v6168_v41 }
 0x11c   : > { %v2668_v63 = vadd.f32 %v2667_v57, %v2655_v58  ;;  %3069 = vmatmul.bf16.vlgmr.msrb.gmra.mxu0 %v595_v17  ;;  %3082 = vmatmul.bf16.vlgmr.msrb.gmra.mxu1 %v596_v18  ;;  %v6923_v17 = vld [vmem:[%s7604_s30 + $0x10c] sm:$0xf] }
 0x11d   : > { %3172 = vmatpush.bf16.xpose.msrb.mxu0 %v6103_v61  ;;  %3185 = vmatpush.bf16.xpose.msrb.mxu1 %v6107_v62  ;;  %v6128_v18 = vld [vmem:[%s7604_s30 + $0x508] sm:$0x10]  ;;  %v611_v62 = vld [vmem:[#allocation1] sm:$0xff] }
 0x11e   : > { %3108 = vmatmul.bf16.vlgmr.msrb.gmra.mxu3 %v598_v20  ;;  %v6131_v29 = vor.u32 %v6923_v17, %v6128_v18  ;;  %v6152_v17 = vld [vmem:[%s7604_s30 + $0x520] sm:$0x10] }
 0x11f   : > { %3095 = vmatmul.bf16.vlgmr.msrb.gmra.mxu2 %v597_v19  ;;  %3211 = vmatpush.bf16.xpose.msrb.mxu3 %v6115_v60  ;;  %v6118_v19 = vld [vmem:[%s7604_s30 + $0x100] sm:$0xf]  ;;  %v6155_v24 = vor.u32 %v6926_v16, %v6152_v17 }
 0x120   : > { %3198 = vmatpush.bf16.xpose.msrb.mxu2 %v6111_v59  ;;  %v6119_v30 = vor.u32 %v7050_v22, %v6118_v19 }
 0x121   : > { %v2693_v1 = vpop.f32.mrf.mxu3  ;;  %v2656_v3 = vpop.f32.mrf.mxu0 }
 0x122   : > { %v2680_v0 = vpop.f32.mrf.mxu2  ;;  %v2669_v4 = vpop.f32.mrf.mxu1  ;;  %v615_v3 = vld [vmem:[#allocation1 + $0x24] sm:$0xff] }
 0x123   : > { %v2681_v2 = vadd.f32 %v2680_v0, %v2668_v63  ;;  %v612_v63 = vld [vmem:[#allocation1 + $0x9] sm:$0xff]  ;;  %v613_v0 = vld [vmem:[#allocation1 + $0x12] sm:$0xff] }
 0x124   : > { %v616_v4 = vld [vmem:[#allocation1 + $0x2d] sm:$0xff] }
 0x125   : > { %v2694_v8 = vadd.f32 %v2693_v1, %v2681_v2  ;;  %v614_v2 = vld [vmem:[#allocation1 + $0x1b] sm:$0xff] }
 0x129   : > { %v2695_v21 = vpop.f32.mrf.mxu3  ;;  %v2706_v25 = vpop.f32.mrf.mxu0 }
 0x12a   : > { %v2682_v20 = vpop.f32.mrf.mxu2  ;;  %v2719_v26 = vpop.f32.mrf.mxu1  ;;  %v2707_v27 = vadd.f32 %v2706_v25, %v2694_v8  ;;  %v6158_v8 = vld [vmem:[%s7604_s30 + $0x128] sm:$0xf] }
 0x12c   : > { %v2720_v32 = vadd.f32 %v2719_v26, %v2707_v27  ;;  %3121 = vmatmul.bf16.vlgmr.msra.gmra.mxu0 %v601_v5  ;;  %3134 = vmatmul.bf16.vlgmr.msra.gmra.mxu1 %v602_v6  ;;  %v617_v5 = vld [vmem:[#allocation1 + $0x36] sm:$0xff]  ;;  %v618_v6 = vld [vmem:[#allocation1 + $0x3f] sm:$0xff] }
 0x12d   : > { %3224 = vmatpush.bf16.xpose.msra.mxu0 %v6119_v30  ;;  %3237 = vmatpush.bf16.xpose.msra.mxu1 %v6123_v31 }
 0x12e   : > { %3160 = vmatmul.bf16.vlgmr.msra.gmra.mxu3 %v604_v9  ;;  %v7055_v9 = vld [vmem:[%s7604_s30 + $0x524] sm:$0x10] }
 0x12f   : > { %3147 = vmatmul.bf16.vlgmr.msra.gmra.mxu2 %v603_v7  ;;  %3263 = vmatpush.bf16.xpose.msra.mxu3 %v6131_v29  ;;  %v250_v7 = vld [vmem:[%s7598_s5 + $0x48] sm:$0xff]  ;;  %v6159_v21 = vor.u32 %v7055_v9, %v6158_v8  ;;  %v7058_v8 = vld [vmem:[%s7604_s30 + $0x53c] sm:$0x10]  ;;  %v6930_v9 = vld [vmem:[%s7604_s30 + $0x144] sm:$0xf] }
 0x130   : > { %3250 = vmatpush.bf16.xpose.msra.mxu2 %v6127_v28  ;;  %620 = vst [vmem:[#allocation1] ss:$9 sm:$0xff] %v250_v7 }
 0x131   : > { %v2745_v34 = vpop.f32.mrf.mxu3  ;;  %v2708_v36 = vpop.f32.mrf.mxu0 }
 0x132   : > { %v2732_v33 = vpop.f32.mrf.mxu2  ;;  %v2721_v37 = vpop.f32.mrf.mxu1  ;;  %v6166_v36 = vld [vmem:[%s7604_s30 + $0x130] sm:$0xf] }
 0x133   : > { %v2733_v35 = vadd.f32 %v2732_v33, %v2720_v32  ;;  %v6174_v32 = vld [vmem:[%s7604_s30 + $0x138] sm:$0xf]  ;;  %v6167_v47 = vor.u32 %v7056_v39, %v6166_v36 }
 0x134   : > { %v7057_v33 = vld [vmem:[%s7604_s30 + $0x534] sm:$0x10] }
 0x135   : > { %v2746_v38 = vadd.f32 %v2745_v34, %v2733_v35  ;;  %v6929_v34 = vld [vmem:[%s7604_s30 + $0x13c] sm:$0xf] }
 0x136   : > { %v6176_v35 = vld [vmem:[%s7604_s30 + $0x538] sm:$0x10] }
 0x137   : > { %v6179_v46 = vor.u32 %v6929_v34, %v6176_v35  ;;  %v6200_v34 = vld [vmem:[%s7604_s30 + $0x550] sm:$0x10] }
 0x139   : > { %v2747_v45 = vpop.f32.mrf.mxu3  ;;  %v2758_v49 = vpop.f32.mrf.mxu0 }
 0x13a   : > { %v2734_v44 = vpop.f32.mrf.mxu2  ;;  %v2771_v50 = vpop.f32.mrf.mxu1  ;;  %v2759_v51 = vadd.f32 %v2758_v49, %v2746_v38  ;;  %v6175_v45 = vor.u32 %v7057_v33, %v6174_v32  ;;  %v7060_v32 = vld [vmem:[%s7604_s30 + $0x54c] sm:$0x10]  ;;  %v6932_v33 = vld [vmem:[%s7604_s30 + $0x154] sm:$0xf] }
 0x13b   : > { %v6203_v41 = vor.u32 %v6932_v33, %v6200_v34 }
 0x13c   : > { %v2772_v56 = vadd.f32 %v2771_v50, %v2759_v51  ;;  %3173 = vmatmul.bf16.vlgmr.msrb.gmra.mxu0 %v605_v10  ;;  %3186 = vmatmul.bf16.vlgmr.msrb.gmra.mxu1 %v606_v11  ;;  %v6927_v10 = vld [vmem:[%s7604_s30 + $0x12c] sm:$0xf] }
 0x13d   : > { %3276 = vmatpush.bf16.xpose.msrb.mxu0 %v6135_v54  ;;  %3289 = vmatpush.bf16.xpose.msrb.mxu1 %v6139_v55  ;;  %v6160_v11 = vld [vmem:[%s7604_s30 + $0x528] sm:$0x10]  ;;  %v621_v55 = vld [vmem:[#allocation1] sm:$0xff] }
 0x13e   : > { %3212 = vmatmul.bf16.vlgmr.msrb.gmra.mxu3 %v608_v13  ;;  %v6163_v22 = vor.u32 %v6927_v10, %v6160_v11  ;;  %v6184_v10 = vld [vmem:[%s7604_s30 + $0x540] sm:$0x10] }
 0x13f   : > { %3199 = vmatmul.bf16.vlgmr.msrb.gmra.mxu2 %v607_v12  ;;  %3315 = vmatpush.bf16.xpose.msrb.mxu3 %v6147_v53  ;;  %v6150_v12 = vld [vmem:[%s7604_s30 + $0x120] sm:$0xf]  ;;  %v6187_v17 = vor.u32 %v6930_v9, %v6184_v10 }
 0x140   : > { %3302 = vmatpush.bf16.xpose.msrb.mxu2 %v6143_v52  ;;  %v6151_v23 = vor.u32 %v7054_v15, %v6150_v12 }
 0x141   : > { %v2797_v58 = vpop.f32.mrf.mxu3  ;;  %v2760_v60 = vpop.f32.mrf.mxu0 }
 0x142   : > { %v2784_v57 = vpop.f32.mrf.mxu2  ;;  %v2773_v61 = vpop.f32.mrf.mxu1  ;;  %v625_v60 = vld [vmem:[#allocation1 + $0x24] sm:$0xff] }
 0x143   : > { %v2785_v59 = vadd.f32 %v2784_v57, %v2772_v56  ;;  %v622_v56 = vld [vmem:[#allocation1 + $0x9] sm:$0xff]  ;;  %v623_v57 = vld [vmem:[#allocation1 + $0x12] sm:$0xff] }
 0x144   : > { %v626_v61 = vld [vmem:[#allocation1 + $0x2d] sm:$0xff] }
 0x145   : > { %v2798_v1 = vadd.f32 %v2797_v58, %v2785_v59  ;;  %v624_v59 = vld [vmem:[#allocation1 + $0x1b] sm:$0xff] }
 0x149   : > { %v2799_v14 = vpop.f32.mrf.mxu3  ;;  %v2810_v18 = vpop.f32.mrf.mxu0 }
 0x14a   : > { %v2786_v13 = vpop.f32.mrf.mxu2  ;;  %v2823_v19 = vpop.f32.mrf.mxu1  ;;  %v2811_v20 = vadd.f32 %v2810_v18, %v2798_v1  ;;  %v6190_v1 = vld [vmem:[%s7604_s30 + $0x148] sm:$0xf] }
 0x14c   : > { %v2824_v25 = vadd.f32 %v2823_v19, %v2811_v20  ;;  %3225 = vmatmul.bf16.vlgmr.msra.gmra.mxu0 %v611_v62  ;;  %3238 = vmatmul.bf16.vlgmr.msra.gmra.mxu1 %v612_v63  ;;  %v627_v62 = vld [vmem:[#allocation1 + $0x36] sm:$0xff]  ;;  %v628_v63 = vld [vmem:[#allocation1 + $0x3f] sm:$0xff] }
 0x14d   : > { %3328 = vmatpush.bf16.xpose.msra.mxu0 %v6151_v23  ;;  %3341 = vmatpush.bf16.xpose.msra.mxu1 %v6155_v24 }
 0x14e   : > { %3264 = vmatmul.bf16.vlgmr.msra.gmra.mxu3 %v614_v2  ;;  %v7059_v2 = vld [vmem:[%s7604_s30 + $0x544] sm:$0x10] }
 0x14f   : > { %3251 = vmatmul.bf16.vlgmr.msra.gmra.mxu2 %v613_v0  ;;  %3367 = vmatpush.bf16.xpose.msra.mxu3 %v6163_v22  ;;  %v251_v0 = vld [vmem:[%s7598_s5 + $0x50] sm:$0xff]  ;;  %v6191_v14 = vor.u32 %v7059_v2, %v6190_v1  ;;  %v7062_v1 = vld [vmem:[%s7604_s30 + $0x55c] sm:$0x10]  ;;  %v6934_v2 = vld [vmem:[%s7604_s30 + $0x164] sm:$0xf] }
 0x150   : > { %3354 = vmatpush.bf16.xpose.msra.mxu2 %v6159_v21  ;;  %630 = vst [vmem:[#allocation1] ss:$9 sm:$0xff] %v251_v0 }
 0x151   : > { %v2849_v27 = vpop.f32.mrf.mxu3  ;;  %v2812_v29 = vpop.f32.mrf.mxu0 }
 0x152   : > { %v2836_v26 = vpop.f32.mrf.mxu2  ;;  %v2825_v30 = vpop.f32.mrf.mxu1  ;;  %v6198_v29 = vld [vmem:[%s7604_s30 + $0x150] sm:$0xf] }
 0x153   : > { %v2837_v28 = vadd.f32 %v2836_v26, %v2824_v25  ;;  %v6206_v25 = vld [vmem:[%s7604_s30 + $0x158] sm:$0xf]  ;;  %v6199_v40 = vor.u32 %v7060_v32, %v6198_v29 }
 0x154   : > { %v7061_v26 = vld [vmem:[%s7604_s30 + $0x554] sm:$0x10] }
 0x155   : > { %v2850_v31 = vadd.f32 %v2849_v27, %v2837_v28  ;;  %v6933_v27 = vld [vmem:[%s7604_s30 + $0x15c] sm:$0xf] }
 0x156   : > { %v6208_v28 = vld [vmem:[%s7604_s30 + $0x558] sm:$0x10] }
 0x157   : > { %v6211_v39 = vor.u32 %v6933_v27, %v6208_v28  ;;  %v6232_v27 = vld [vmem:[%s7604_s30 + $0x570] sm:$0x10] }
 0x159   : > { %v2851_v38 = vpop.f32.mrf.mxu3  ;;  %v2862_v42 = vpop.f32.mrf.mxu0 }
 0x15a   : > { %v2838_v37 = vpop.f32.mrf.mxu2  ;;  %v2875_v43 = vpop.f32.mrf.mxu1  ;;  %v2863_v44 = vadd.f32 %v2862_v42, %v2850_v31  ;;  %v6207_v38 = vor.u32 %v7061_v26, %v6206_v25  ;;  %v7064_v25 = vld [vmem:[%s7604_s30 + $0x56c] sm:$0x10]  ;;  %v6936_v26 = vld [vmem:[%s7604_s30 + $0x174] sm:$0xf] }
 0x15b   : > { %v6235_v34 = vor.u32 %v6936_v26, %v6232_v27 }
 0x15c   : > { %v2876_v49 = vadd.f32 %v2875_v43, %v2863_v44  ;;  %3277 = vmatmul.bf16.vlgmr.msrb.gmra.mxu0 %v615_v3  ;;  %3290 = vmatmul.bf16.vlgmr.msrb.gmra.mxu1 %v616_v4  ;;  %v6931_v3 = vld [vmem:[%s7604_s30 + $0x14c] sm:$0xf] }
 0x15d   : > { %3380 = vmatpush.bf16.xpose.msrb.mxu0 %v6167_v47  ;;  %3393 = vmatpush.bf16.xpose.msrb.mxu1 %v6171_v48  ;;  %v6192_v4 = vld [vmem:[%s7604_s30 + $0x548] sm:$0x10]  ;;  %v631_v48 = vld [vmem:[#allocation1] sm:$0xff] }
 0x15e   : > { %3316 = vmatmul.bf16.vlgmr.msrb.gmra.mxu3 %v618_v6  ;;  %v6195_v15 = vor.u32 %v6931_v3, %v6192_v4  ;;  %v6216_v3 = vld [vmem:[%s7604_s30 + $0x560] sm:$0x10] }
 0x15f   : > { %3303 = vmatmul.bf16.vlgmr.msrb.gmra.mxu2 %v617_v5  ;;  %3419 = vmatpush.bf16.xpose.msrb.mxu3 %v6179_v46  ;;  %v6182_v5 = vld [vmem:[%s7604_s30 + $0x140] sm:$0xf]  ;;  %v6219_v10 = vor.u32 %v6934_v2, %v6216_v3 }
 0x160   : > { %3406 = vmatpush.bf16.xpose.msrb.mxu2 %v6175_v45  ;;  %v6183_v16 = vor.u32 %v7058_v8, %v6182_v5 }
 0x161   : > { %v2901_v51 = vpop.f32.mrf.mxu3  ;;  %v2864_v53 = vpop.f32.mrf.mxu0 }
 0x162   : > { %v2888_v50 = vpop.f32.mrf.mxu2  ;;  %v2877_v54 = vpop.f32.mrf.mxu1  ;;  %v635_v53 = vld [vmem:[#allocation1 + $0x24] sm:$0xff] }
 0x163   : > { %v2889_v52 = vadd.f32 %v2888_v50, %v2876_v49  ;;  %v632_v49 = vld [vmem:[#allocation1 + $0x9] sm:$0xff]  ;;  %v633_v50 = vld [vmem:[#allocation1 + $0x12] sm:$0xff] }
 0x164   : > { %v636_v54 = vld [vmem:[#allocation1 + $0x2d] sm:$0xff] }
 0x165   : > { %v2902_v58 = vadd.f32 %v2901_v51, %v2889_v52  ;;  %v634_v52 = vld [vmem:[#allocation1 + $0x1b] sm:$0xff] }
 0x169   : > { %v2903_v7 = vpop.f32.mrf.mxu3  ;;  %v2914_v11 = vpop.f32.mrf.mxu0 }
 0x16a   : > { %v2890_v6 = vpop.f32.mrf.mxu2  ;;  %v2927_v12 = vpop.f32.mrf.mxu1  ;;  %v2915_v13 = vadd.f32 %v2914_v11, %v2902_v58  ;;  %v6222_v58 = vld [vmem:[%s7604_s30 + $0x168] sm:$0xf] }
 0x16c   : > { %v2928_v18 = vadd.f32 %v2927_v12, %v2915_v13  ;;  %3329 = vmatmul.bf16.vlgmr.msra.gmra.mxu0 %v621_v55  ;;  %3342 = vmatmul.bf16.vlgmr.msra.gmra.mxu1 %v622_v56  ;;  %v637_v55 = vld [vmem:[#allocation1 + $0x36] sm:$0xff]  ;;  %v638_v56 = vld [vmem:[#allocation1 + $0x3f] sm:$0xff] }
 0x16d   : > { %3432 = vmatpush.bf16.xpose.msra.mxu0 %v6183_v16  ;;  %3445 = vmatpush.bf16.xpose.msra.mxu1 %v6187_v17 }
 0x16e   : > { %3368 = vmatmul.bf16.vlgmr.msra.gmra.mxu3 %v624_v59  ;;  %v7063_v59 = vld [vmem:[%s7604_s30 + $0x564] sm:$0x10] }
 0x16f   : > { %3355 = vmatmul.bf16.vlgmr.msra.gmra.mxu2 %v623_v57  ;;  %3471 = vmatpush.bf16.xpose.msra.mxu3 %v6195_v15  ;;  %v252_v57 = vld [vmem:[%s7598_s5 + $0x58] sm:$0xff]  ;;  %v6223_v7 = vor.u32 %v7063_v59, %v6222_v58  ;;  %v7066_v58 = vld [vmem:[%s7604_s30 + $0x57c] sm:$0x10]  ;;  %v6938_v59 = vld [vmem:[%s7604_s30 + $0x184] sm:$0xf] }
 0x170   : > { %3458 = vmatpush.bf16.xpose.msra.mxu2 %v6191_v14  ;;  %640 = vst [vmem:[#allocation1] ss:$9 sm:$0xff] %v252_v57 }
 0x171   : > { %v2953_v20 = vpop.f32.mrf.mxu3  ;;  %v2916_v22 = vpop.f32.mrf.mxu0 }
 0x172   : > { %v2940_v19 = vpop.f32.mrf.mxu2  ;;  %v2929_v23 = vpop.f32.mrf.mxu1  ;;  %v6230_v22 = vld [vmem:[%s7604_s30 + $0x170] sm:$0xf] }
 0x173   : > { %v2941_v21 = vadd.f32 %v2940_v19, %v2928_v18  ;;  %v6238_v18 = vld [vmem:[%s7604_s30 + $0x178] sm:$0xf]  ;;  %v6231_v33 = vor.u32 %v7064_v25, %v6230_v22 }
 0x174   : > { %v7065_v19 = vld [vmem:[%s7604_s30 + $0x574] sm:$0x10] }
 0x175   : > { %v2954_v24 = vadd.f32 %v2953_v20, %v2941_v21  ;;  %v6937_v20 = vld [vmem:[%s7604_s30 + $0x17c] sm:$0xf] }
 0x176   : > { %v6240_v21 = vld [vmem:[%s7604_s30 + $0x578] sm:$0x10] }
 0x177   : > { %v6243_v32 = vor.u32 %v6937_v20, %v6240_v21  ;;  %v6264_v20 = vld [vmem:[%s7604_s30 + $0x590] sm:$0x10] }
 0x179   : > { %v2955_v31 = vpop.f32.mrf.mxu3  ;;  %v2966_v35 = vpop.f32.mrf.mxu0 }
 0x17a   : > { %v2942_v30 = vpop.f32.mrf.mxu2  ;;  %v2979_v36 = vpop.f32.mrf.mxu1  ;;  %v2967_v37 = vadd.f32 %v2966_v35, %v2954_v24  ;;  %v6239_v31 = vor.u32 %v7065_v19, %v6238_v18  ;;  %v7068_v18 = vld [vmem:[%s7604_s30 + $0x58c] sm:$0x10]  ;;  %v6940_v19 = vld [vmem:[%s7604_s30 + $0x194] sm:$0xf] }
 0x17b   : > { %v6267_v27 = vor.u32 %v6940_v19, %v6264_v20 }
 0x17c   : > { %v2980_v42 = vadd.f32 %v2979_v36, %v2967_v37  ;;  %3381 = vmatmul.bf16.vlgmr.msrb.gmra.mxu0 %v625_v60  ;;  %3394 = vmatmul.bf16.vlgmr.msrb.gmra.mxu1 %v626_v61  ;;  %v6935_v60 = vld [vmem:[%s7604_s30 + $0x16c] sm:$0xf] }
 0x17d   : > { %3484 = vmatpush.bf16.xpose.msrb.mxu0 %v6199_v40  ;;  %3497 = vmatpush.bf16.xpose.msrb.mxu1 %v6203_v41  ;;  %v6224_v61 = vld [vmem:[%s7604_s30 + $0x568] sm:$0x10]  ;;  %v641_v41 = vld [vmem:[#allocation1] sm:$0xff] }
 0x17e   : > { %3420 = vmatmul.bf16.vlgmr.msrb.gmra.mxu3 %v628_v63  ;;  %v6227_v8 = vor.u32 %v6935_v60, %v6224_v61  ;;  %v6248_v60 = vld [vmem:[%s7604_s30 + $0x580] sm:$0x10] }
 0x17f   : > { %3407 = vmatmul.bf16.vlgmr.msrb.gmra.mxu2 %v627_v62  ;;  %3523 = vmatpush.bf16.xpose.msrb.mxu3 %v6211_v39  ;;  %v6214_v62 = vld [vmem:[%s7604_s30 + $0x160] sm:$0xf]  ;;  %v6251_v3 = vor.u32 %v6938_v59, %v6248_v60 }
 0x180   : > { %3510 = vmatpush.bf16.xpose.msrb.mxu2 %v6207_v38  ;;  %v6215_v9 = vor.u32 %v7062_v1, %v6214_v62 }
 0x181   : > { %v3005_v44 = vpop.f32.mrf.mxu3  ;;  %v2968_v46 = vpop.f32.mrf.mxu0 }
 0x182   : > { %v2992_v43 = vpop.f32.mrf.mxu2  ;;  %v2981_v47 = vpop.f32.mrf.mxu1  ;;  %v645_v46 = vld [vmem:[#allocation1 + $0x24] sm:$0xff] }
 0x183   : > { %v2993_v45 = vadd.f32 %v2992_v43, %v2980_v42  ;;  %v642_v42 = vld [vmem:[#allocation1 + $0x9] sm:$0xff]  ;;  %v643_v43 = vld [vmem:[#allocation1 + $0x12] sm:$0xff] }
 0x184   : > { %v646_v47 = vld [vmem:[#allocation1 + $0x2d] sm:$0xff] }
 0x185   : > { %v3006_v51 = vadd.f32 %v3005_v44, %v2993_v45  ;;  %v644_v45 = vld [vmem:[#allocation1 + $0x1b] sm:$0xff] }
 0x189   : > { %v3007_v0 = vpop.f32.mrf.mxu3  ;;  %v3018_v4 = vpop.f32.mrf.mxu0 }
 0x18a   : > { %v2994_v63 = vpop.f32.mrf.mxu2  ;;  %v3031_v5 = vpop.f32.mrf.mxu1  ;;  %v3019_v6 = vadd.f32 %v3018_v4, %v3006_v51  ;;  %v6254_v51 = vld [vmem:[%s7604_s30 + $0x188] sm:$0xf] }
 0x18c   : > { %v3032_v11 = vadd.f32 %v3031_v5, %v3019_v6  ;;  %3433 = vmatmul.bf16.vlgmr.msra.gmra.mxu0 %v631_v48  ;;  %3446 = vmatmul.bf16.vlgmr.msra.gmra.mxu1 %v632_v49  ;;  %v647_v48 = vld [vmem:[#allocation1 + $0x36] sm:$0xff]  ;;  %v648_v49 = vld [vmem:[#allocation1 + $0x3f] sm:$0xff] }
 0x18d   : > { %3536 = vmatpush.bf16.xpose.msra.mxu0 %v6215_v9  ;;  %3549 = vmatpush.bf16.xpose.msra.mxu1 %v6219_v10 }
 0x18e   : > { %3472 = vmatmul.bf16.vlgmr.msra.gmra.mxu3 %v634_v52  ;;  %v7067_v52 = vld [vmem:[%s7604_s30 + $0x584] sm:$0x10] }
 0x18f   : > { %3459 = vmatmul.bf16.vlgmr.msra.gmra.mxu2 %v633_v50  ;;  %3575 = vmatpush.bf16.xpose.msra.mxu3 %v6227_v8  ;;  %v253_v50 = vld [vmem:[%s7598_s5 + $0x60] sm:$0xff]  ;;  %v6255_v0 = vor.u32 %v7067_v52, %v6254_v51 }
 0x190   : > { %3562 = vmatpush.bf16.xpose.msra.mxu2 %v6223_v7  ;;  %650 = vst [vmem:[#allocation1] ss:$9 sm:$0xff] %v253_v50  ;;  %v7070_v51 = vld [vmem:[%s7604_s30 + $0x59c] sm:$0x10]  ;;  %v6942_v52 = vld [vmem:[%s7604_s30 + $0x1a4] sm:$0xf] }
 0x191   : > { %v3057_v13 = vpop.f32.mrf.mxu3  ;;  %v3020_v15 = vpop.f32.mrf.mxu0 }
 0x192   : > { %v3044_v12 = vpop.f32.mrf.mxu2  ;;  %v3033_v16 = vpop.f32.mrf.mxu1  ;;  %v6262_v15 = vld [vmem:[%s7604_s30 + $0x190] sm:$0xf] }
 0x193   : > { %v3045_v14 = vadd.f32 %v3044_v12, %v3032_v11  ;;  %v6270_v11 = vld [vmem:[%s7604_s30 + $0x198] sm:$0xf]  ;;  %v6263_v26 = vor.u32 %v7068_v18, %v6262_v15 }
 0x194   : > { %v7069_v12 = vld [vmem:[%s7604_s30 + $0x594] sm:$0x10] }
 0x195   : > { %v3058_v17 = vadd.f32 %v3057_v13, %v3045_v14  ;;  %v6941_v13 = vld [vmem:[%s7604_s30 + $0x19c] sm:$0xf] }
 0x196   : > { %v6272_v14 = vld [vmem:[%s7604_s30 + $0x598] sm:$0x10] }
 0x197   : > { %v6275_v25 = vor.u32 %v6941_v13, %v6272_v14  ;;  %v6296_v13 = vld [vmem:[%s7604_s30 + $0x5b0] sm:$0x10] }
 0x199   : > { %v3059_v24 = vpop.f32.mrf.mxu3  ;;  %v3070_v28 = vpop.f32.mrf.mxu0 }
 0x19a   : > { %v3046_v23 = vpop.f32.mrf.mxu2  ;;  %v3083_v29 = vpop.f32.mrf.mxu1  ;;  %v3071_v30 = vadd.f32 %v3070_v28, %v3058_v17  ;;  %v6271_v24 = vor.u32 %v7069_v12, %v6270_v11  ;;  %v7072_v11 = vld [vmem:[%s7604_s30 + $0x5ac] sm:$0x10]  ;;  %v6944_v12 = vld [vmem:[%s7604_s30 + $0x1b4] sm:$0xf] }
 0x19b   : > { %v6299_v20 = vor.u32 %v6944_v12, %v6296_v13 }
 0x19c   : > { %v3084_v35 = vadd.f32 %v3083_v29, %v3071_v30  ;;  %3485 = vmatmul.bf16.vlgmr.msrb.gmra.mxu0 %v635_v53  ;;  %3498 = vmatmul.bf16.vlgmr.msrb.gmra.mxu1 %v636_v54  ;;  %v6939_v53 = vld [vmem:[%s7604_s30 + $0x18c] sm:$0xf] }
 0x19d   : > { %3588 = vmatpush.bf16.xpose.msrb.mxu0 %v6231_v33  ;;  %3601 = vmatpush.bf16.xpose.msrb.mxu1 %v6235_v34  ;;  %v6256_v54 = vld [vmem:[%s7604_s30 + $0x588] sm:$0x10]  ;;  %v651_v34 = vld [vmem:[#allocation1] sm:$0xff] }
 0x19e   : > { %3524 = vmatmul.bf16.vlgmr.msrb.gmra.mxu3 %v638_v56  ;;  %v6259_v1 = vor.u32 %v6939_v53, %v6256_v54  ;;  %v6280_v53 = vld [vmem:[%s7604_s30 + $0x5a0] sm:$0x10] }
 0x19f   : > { %3511 = vmatmul.bf16.vlgmr.msrb.gmra.mxu2 %v637_v55  ;;  %3627 = vmatpush.bf16.xpose.msrb.mxu3 %v6243_v32  ;;  %v6246_v55 = vld [vmem:[%s7604_s30 + $0x180] sm:$0xf]  ;;  %v6283_v60 = vor.u32 %v6942_v52, %v6280_v53 }
 0x1a0   : > { %3614 = vmatpush.bf16.xpose.msrb.mxu2 %v6239_v31  ;;  %v6247_v2 = vor.u32 %v7066_v58, %v6246_v55 }
 0x1a1   : > { %v3109_v37 = vpop.f32.mrf.mxu3  ;;  %v3072_v39 = vpop.f32.mrf.mxu0 }
 0x1a2   : > { %v3096_v36 = vpop.f32.mrf.mxu2  ;;  %v3085_v40 = vpop.f32.mrf.mxu1  ;;  %v655_v39 = vld [vmem:[#allocation1 + $0x24] sm:$0xff] }
 0x1a3   : > { %v3097_v38 = vadd.f32 %v3096_v36, %v3084_v35  ;;  %v652_v35 = vld [vmem:[#allocation1 + $0x9] sm:$0xff]  ;;  %v653_v36 = vld [vmem:[#allocation1 + $0x12] sm:$0xff] }
 0x1a4   : > { %v656_v40 = vld [vmem:[#allocation1 + $0x2d] sm:$0xff] }
 0x1a5   : > { %v3110_v44 = vadd.f32 %v3109_v37, %v3097_v38  ;;  %v654_v38 = vld [vmem:[#allocation1 + $0x1b] sm:$0xff] }
 0x1a9   : > { %v3111_v57 = vpop.f32.mrf.mxu3  ;;  %v3122_v61 = vpop.f32.mrf.mxu0 }
 0x1aa   : > { %v3098_v56 = vpop.f32.mrf.mxu2  ;;  %v3135_v62 = vpop.f32.mrf.mxu1  ;;  %v3123_v63 = vadd.f32 %v3122_v61, %v3110_v44  ;;  %v6286_v44 = vld [vmem:[%s7604_s30 + $0x1a8] sm:$0xf] }
 0x1ac   : > { %v3136_v4 = vadd.f32 %v3135_v62, %v3123_v63  ;;  %3537 = vmatmul.bf16.vlgmr.msra.gmra.mxu0 %v641_v41  ;;  %3550 = vmatmul.bf16.vlgmr.msra.gmra.mxu1 %v642_v42  ;;  %v657_v41 = vld [vmem:[#allocation1 + $0x36] sm:$0xff]  ;;  %v658_v42 = vld [vmem:[#allocation1 + $0x3f] sm:$0xff] }
 0x1ad   : > { %3640 = vmatpush.bf16.xpose.msra.mxu0 %v6247_v2  ;;  %3653 = vmatpush.bf16.xpose.msra.mxu1 %v6251_v3 }
 0x1ae   : > { %3576 = vmatmul.bf16.vlgmr.msra.gmra.mxu3 %v644_v45  ;;  %v7071_v45 = vld [vmem:[%s7604_s30 + $0x5a4] sm:$0x10] }
 0x1af   : > { %3563 = vmatmul.bf16.vlgmr.msra.gmra.mxu2 %v643_v43  ;;  %3679 = vmatpush.bf16.xpose.msra.mxu3 %v6259_v1  ;;  %v254_v43 = vld [vmem:[%s7598_s5 + $0x68] sm:$0xff]  ;;  %v6287_v57 = vor.u32 %v7071_v45, %v6286_v44  ;;  %v7074_v44 = vld [vmem:[%s7604_s30 + $0x5bc] sm:$0x10]  ;;  %v6946_v45 = vld [vmem:[%s7604_s30 + $0x1c4] sm:$0xf] }
 0x1b0   : > { %3666 = vmatpush.bf16.xpose.msra.mxu2 %v6255_v0  ;;  %660 = vst [vmem:[#allocation1] ss:$9 sm:$0xff] %v254_v43 }
 0x1b1   : > { %v3161_v6 = vpop.f32.mrf.mxu3  ;;  %v3124_v8 = vpop.f32.mrf.mxu0 }
 0x1b2   : > { %v3148_v5 = vpop.f32.mrf.mxu2  ;;  %v3137_v9 = vpop.f32.mrf.mxu1  ;;  %v6294_v8 = vld [vmem:[%s7604_s30 + $0x1b0] sm:$0xf] }
 0x1b3   : > { %v3149_v7 = vadd.f32 %v3148_v5, %v3136_v4  ;;  %v6302_v4 = vld [vmem:[%s7604_s30 + $0x1b8] sm:$0xf]  ;;  %v6295_v19 = vor.u32 %v7072_v11, %v6294_v8 }
 0x1b4   : > { %v7073_v5 = vld [vmem:[%s7604_s30 + $0x5b4] sm:$0x10] }
 0x1b5   : > { %v3162_v10 = vadd.f32 %v3161_v6, %v3149_v7  ;;  %v6945_v6 = vld [vmem:[%s7604_s30 + $0x1bc] sm:$0xf] }
 0x1b6   : > { %v6304_v7 = vld [vmem:[%s7604_s30 + $0x5b8] sm:$0x10] }
 0x1b7   : > { %v6307_v18 = vor.u32 %v6945_v6, %v6304_v7  ;;  %v6328_v6 = vld [vmem:[%s7604_s30 + $0x5d0] sm:$0x10] }
 0x1b9   : > { %v3163_v17 = vpop.f32.mrf.mxu3  ;;  %v3174_v21 = vpop.f32.mrf.mxu0 }
 0x1ba   : > { %v3150_v16 = vpop.f32.mrf.mxu2  ;;  %v3187_v22 = vpop.f32.mrf.mxu1  ;;  %v3175_v23 = vadd.f32 %v3174_v21, %v3162_v10  ;;  %v6303_v17 = vor.u32 %v7073_v5, %v6302_v4  ;;  %v7076_v4 = vld [vmem:[%s7604_s30 + $0x5cc] sm:$0x10]  ;;  %v6948_v5 = vld [vmem:[%s7604_s30 + $0x1d4] sm:$0xf] }
 0x1bb   : > { %v6331_v13 = vor.u32 %v6948_v5, %v6328_v6 }
 0x1bc   : > { %v3188_v28 = vadd.f32 %v3187_v22, %v3175_v23  ;;  %3589 = vmatmul.bf16.vlgmr.msrb.gmra.mxu0 %v645_v46  ;;  %3602 = vmatmul.bf16.vlgmr.msrb.gmra.mxu1 %v646_v47  ;;  %v6943_v46 = vld [vmem:[%s7604_s30 + $0x1ac] sm:$0xf] }
 0x1bd   : > { %3692 = vmatpush.bf16.xpose.msrb.mxu0 %v6263_v26  ;;  %3705 = vmatpush.bf16.xpose.msrb.mxu1 %v6267_v27  ;;  %v6288_v47 = vld [vmem:[%s7604_s30 + $0x5a8] sm:$0x10]  ;;  %v661_v27 = vld [vmem:[#allocation1] sm:$0xff] }
 0x1be   : > { %3628 = vmatmul.bf16.vlgmr.msrb.gmra.mxu3 %v648_v49  ;;  %v6291_v58 = vor.u32 %v6943_v46, %v6288_v47  ;;  %v6312_v46 = vld [vmem:[%s7604_s30 + $0x5c0] sm:$0x10] }
 0x1bf   : > { %3615 = vmatmul.bf16.vlgmr.msrb.gmra.mxu2 %v647_v48  ;;  %3731 = vmatpush.bf16.xpose.msrb.mxu3 %v6275_v25  ;;  %v6278_v48 = vld [vmem:[%s7604_s30 + $0x1a0] sm:$0xf]  ;;  %v6315_v53 = vor.u32 %v6946_v45, %v6312_v46 }
 0x1c0   : > { %3718 = vmatpush.bf16.xpose.msrb.mxu2 %v6271_v24  ;;  %v6279_v59 = vor.u32 %v7070_v51, %v6278_v48 }
 0x1c1   : > { %v3213_v30 = vpop.f32.mrf.mxu3  ;;  %v3176_v32 = vpop.f32.mrf.mxu0 }
 0x1c2   : > { %v3200_v29 = vpop.f32.mrf.mxu2  ;;  %v3189_v33 = vpop.f32.mrf.mxu1  ;;  %v665_v32 = vld [vmem:[#allocation1 + $0x24] sm:$0xff] }
 0x1c3   : > { %v3201_v31 = vadd.f32 %v3200_v29, %v3188_v28  ;;  %v662_v28 = vld [vmem:[#allocation1 + $0x9] sm:$0xff]  ;;  %v663_v29 = vld [vmem:[#allocation1 + $0x12] sm:$0xff] }
 0x1c4   : > { %v666_v33 = vld [vmem:[#allocation1 + $0x2d] sm:$0xff] }
 0x1c5   : > { %v3214_v37 = vadd.f32 %v3213_v30, %v3201_v31  ;;  %v664_v31 = vld [vmem:[#allocation1 + $0x1b] sm:$0xff] }
 0x1c9   : > { %v3215_v50 = vpop.f32.mrf.mxu3  ;;  %v3226_v54 = vpop.f32.mrf.mxu0 }
 0x1ca   : > { %v3202_v49 = vpop.f32.mrf.mxu2  ;;  %v3239_v55 = vpop.f32.mrf.mxu1  ;;  %v3227_v56 = vadd.f32 %v3226_v54, %v3214_v37  ;;  %v6318_v37 = vld [vmem:[%s7604_s30 + $0x1c8] sm:$0xf] }
 0x1cc   : > { %v3240_v61 = vadd.f32 %v3239_v55, %v3227_v56  ;;  %3641 = vmatmul.bf16.vlgmr.msra.gmra.mxu0 %v651_v34  ;;  %3654 = vmatmul.bf16.vlgmr.msra.gmra.mxu1 %v652_v35  ;;  %v667_v34 = vld [vmem:[#allocation1 + $0x36] sm:$0xff]  ;;  %v668_v35 = vld [vmem:[#allocation1 + $0x3f] sm:$0xff] }
 0x1cd   : > { %3744 = vmatpush.bf16.xpose.msra.mxu0 %v6279_v59  ;;  %3757 = vmatpush.bf16.xpose.msra.mxu1 %v6283_v60 }
 0x1ce   : > { %3680 = vmatmul.bf16.vlgmr.msra.gmra.mxu3 %v654_v38  ;;  %v7075_v38 = vld [vmem:[%s7604_s30 + $0x5c4] sm:$0x10] }
 0x1cf   : > { %3667 = vmatmul.bf16.vlgmr.msra.gmra.mxu2 %v653_v36  ;;  %3783 = vmatpush.bf16.xpose.msra.mxu3 %v6291_v58  ;;  %v255_v36 = vld [vmem:[%s7598_s5 + $0x70] sm:$0xff]  ;;  %v6319_v50 = vor.u32 %v7075_v38, %v6318_v37  ;;  %v7078_v37 = vld [vmem:[%s7604_s30 + $0x5dc] sm:$0x10]  ;;  %v6950_v38 = vld [vmem:[%s7604_s30 + $0x1e4] sm:$0xf] }
 0x1d0   : > { %3770 = vmatpush.bf16.xpose.msra.mxu2 %v6287_v57  ;;  %670 = vst [vmem:[#allocation1] ss:$9 sm:$0xff] %v255_v36 }
 0x1d1   : > { %v3265_v63 = vpop.f32.mrf.mxu3  ;;  %v3228_v1 = vpop.f32.mrf.mxu0 }
 0x1d2   : > { %v3252_v62 = vpop.f32.mrf.mxu2  ;;  %v3241_v2 = vpop.f32.mrf.mxu1  ;;  %v6326_v1 = vld [vmem:[%s7604_s30 + $0x1d0] sm:$0xf] }
 0x1d3   : > { %v3253_v0 = vadd.f32 %v3252_v62, %v3240_v61  ;;  %v6334_v61 = vld [vmem:[%s7604_s30 + $0x1d8] sm:$0xf]  ;;  %v6327_v12 = vor.u32 %v7076_v4, %v6326_v1 }
 0x1d4   : > { %v7077_v62 = vld [vmem:[%s7604_s30 + $0x5d4] sm:$0x10] }
 0x1d5   : > { %v3266_v3 = vadd.f32 %v3265_v63, %v3253_v0  ;;  %v6949_v63 = vld [vmem:[%s7604_s30 + $0x1dc] sm:$0xf] }
 0x1d6   : > { %v6336_v0 = vld [vmem:[%s7604_s30 + $0x5d8] sm:$0x10] }
 0x1d7   : > { %v6339_v11 = vor.u32 %v6949_v63, %v6336_v0  ;;  %v6360_v63 = vld [vmem:[%s7604_s30 + $0x5f0] sm:$0x10] }
 0x1d9   : > { %v3267_v10 = vpop.f32.mrf.mxu3  ;;  %v3278_v14 = vpop.f32.mrf.mxu0 }
 0x1da   : > { %v3254_v9 = vpop.f32.mrf.mxu2  ;;  %v3291_v15 = vpop.f32.mrf.mxu1  ;;  %v3279_v16 = vadd.f32 %v3278_v14, %v3266_v3  ;;  %v6335_v10 = vor.u32 %v7077_v62, %v6334_v61  ;;  %v7080_v61 = vld [vmem:[%s7604_s30 + $0x5ec] sm:$0x10]  ;;  %v6952_v62 = vld [vmem:[%s7604_s30 + $0x1f4] sm:$0xf] }
 0x1db   : > { %v6363_v6 = vor.u32 %v6952_v62, %v6360_v63 }
 0x1dc   : > { %v3292_v21 = vadd.f32 %v3291_v15, %v3279_v16  ;;  %3693 = vmatmul.bf16.vlgmr.msrb.gmra.mxu0 %v655_v39  ;;  %3706 = vmatmul.bf16.vlgmr.msrb.gmra.mxu1 %v656_v40  ;;  %v6947_v39 = vld [vmem:[%s7604_s30 + $0x1cc] sm:$0xf] }
 0x1dd   : > { %3796 = vmatpush.bf16.xpose.msrb.mxu0 %v6295_v19  ;;  %3809 = vmatpush.bf16.xpose.msrb.mxu1 %v6299_v20  ;;  %v6320_v40 = vld [vmem:[%s7604_s30 + $0x5c8] sm:$0x10]  ;;  %v671_v20 = vld [vmem:[#allocation1] sm:$0xff] }
 0x1de   : > { %3732 = vmatmul.bf16.vlgmr.msrb.gmra.mxu3 %v658_v42  ;;  %v6323_v51 = vor.u32 %v6947_v39, %v6320_v40  ;;  %v6344_v39 = vld [vmem:[%s7604_s30 + $0x5e0] sm:$0x10] }
 0x1df   : > { %3719 = vmatmul.bf16.vlgmr.msrb.gmra.mxu2 %v657_v41  ;;  %3835 = vmatpush.bf16.xpose.msrb.mxu3 %v6307_v18  ;;  %v6310_v41 = vld [vmem:[%s7604_s30 + $0x1c0] sm:$0xf]  ;;  %v6347_v46 = vor.u32 %v6950_v38, %v6344_v39 }
 0x1e0   : > { %3822 = vmatpush.bf16.xpose.msrb.mxu2 %v6303_v17  ;;  %v6311_v52 = vor.u32 %v7074_v44, %v6310_v41 }
 0x1e1   : > { %v3317_v23 = vpop.f32.mrf.mxu3  ;;  %v3280_v25 = vpop.f32.mrf.mxu0 }
 0x1e2   : > { %v3304_v22 = vpop.f32.mrf.mxu2  ;;  %v3293_v26 = vpop.f32.mrf.mxu1  ;;  %v675_v25 = vld [vmem:[#allocation1 + $0x24] sm:$0xff] }
 0x1e3   : > { %v3305_v24 = vadd.f32 %v3304_v22, %v3292_v21  ;;  %v672_v21 = vld [vmem:[#allocation1 + $0x9] sm:$0xff]  ;;  %v673_v22 = vld [vmem:[#allocation1 + $0x12] sm:$0xff] }
 0x1e4   : > { %v676_v26 = vld [vmem:[#allocation1 + $0x2d] sm:$0xff] }
 0x1e5   : > { %v3318_v30 = vadd.f32 %v3317_v23, %v3305_v24  ;;  %v674_v24 = vld [vmem:[#allocation1 + $0x1b] sm:$0xff] }
 0x1e9   : > { %v3319_v43 = vpop.f32.mrf.mxu3  ;;  %v3330_v47 = vpop.f32.mrf.mxu0 }
 0x1ea   : > { %v3306_v42 = vpop.f32.mrf.mxu2  ;;  %v3343_v48 = vpop.f32.mrf.mxu1  ;;  %v3331_v49 = vadd.f32 %v3330_v47, %v3318_v30  ;;  %v6350_v30 = vld [vmem:[%s7604_s30 + $0x1e8] sm:$0xf] }
 0x1ec   : > { %v3344_v54 = vadd.f32 %v3343_v48, %v3331_v49  ;;  %3745 = vmatmul.bf16.vlgmr.msra.gmra.mxu0 %v661_v27  ;;  %3758 = vmatmul.bf16.vlgmr.msra.gmra.mxu1 %v662_v28  ;;  %v677_v27 = vld [vmem:[#allocation1 + $0x36] sm:$0xff]  ;;  %v678_v28 = vld [vmem:[#allocation1 + $0x3f] sm:$0xff] }
 0x1ed   : > { %3848 = vmatpush.bf16.xpose.msra.mxu0 %v6311_v52  ;;  %3861 = vmatpush.bf16.xpose.msra.mxu1 %v6315_v53 }
 0x1ee   : > { %3784 = vmatmul.bf16.vlgmr.msra.gmra.mxu3 %v664_v31  ;;  %v7079_v31 = vld [vmem:[%s7604_s30 + $0x5e4] sm:$0x10] }
 0x1ef   : > { %3771 = vmatmul.bf16.vlgmr.msra.gmra.mxu2 %v663_v29  ;;  %3887 = vmatpush.bf16.xpose.msra.mxu3 %v6323_v51  ;;  %v256_v29 = vld [vmem:[%s7598_s5 + $0x78] sm:$0xff]  ;;  %v6351_v43 = vor.u32 %v7079_v31, %v6350_v30  ;;  %v7082_v30 = vld [vmem:[%s7604_s30 + $0x5fc] sm:$0x10]  ;;  %v6954_v31 = vld [vmem:[%s7604_s30 + $0x204] sm:$0xf] }
 0x1f0   : > { %3874 = vmatpush.bf16.xpose.msra.mxu2 %v6319_v50  ;;  %680 = vst [vmem:[#allocation1] ss:$9 sm:$0xff] %v256_v29 }
 0x1f1   : > { %v3369_v56 = vpop.f32.mrf.mxu3  ;;  %v3332_v58 = vpop.f32.mrf.mxu0 }
 0x1f2   : > { %v3356_v55 = vpop.f32.mrf.mxu2  ;;  %v3345_v59 = vpop.f32.mrf.mxu1  ;;  %v6358_v58 = vld [vmem:[%s7604_s30 + $0x1f0] sm:$0xf] }
 0x1f3   : > { %v3357_v57 = vadd.f32 %v3356_v55, %v3344_v54  ;;  %v6366_v54 = vld [vmem:[%s7604_s30 + $0x1f8] sm:$0xf]  ;;  %v6359_v5 = vor.u32 %v7080_v61, %v6358_v58 }
 0x1f4   : > { %v7081_v55 = vld [vmem:[%s7604_s30 + $0x5f4] sm:$0x10] }
 0x1f5   : > { %v3370_v60 = vadd.f32 %v3369_v56, %v3357_v57  ;;  %v6953_v56 = vld [vmem:[%s7604_s30 + $0x1fc] sm:$0xf] }
 0x1f6   : > { %v6368_v57 = vld [vmem:[%s7604_s30 + $0x5f8] sm:$0x10] }
 0x1f7   : > { %v6371_v4 = vor.u32 %v6953_v56, %v6368_v57  ;;  %v6392_v56 = vld [vmem:[%s7604_s30 + $0x610] sm:$0x10] }
 0x1f9   : > { %v3371_v3 = vpop.f32.mrf.mxu3  ;;  %v3382_v7 = vpop.f32.mrf.mxu0 }
 0x1fa   : > { %v3358_v2 = vpop.f32.mrf.mxu2  ;;  %v3395_v8 = vpop.f32.mrf.mxu1  ;;  %v3383_v9 = vadd.f32 %v3382_v7, %v3370_v60  ;;  %v6367_v3 = vor.u32 %v7081_v55, %v6366_v54  ;;  %v7084_v54 = vld [vmem:[%s7604_s30 + $0x60c] sm:$0x10]  ;;  %v6956_v55 = vld [vmem:[%s7604_s30 + $0x214] sm:$0xf] }
 0x1fb   : > { %v6395_v63 = vor.u32 %v6956_v55, %v6392_v56 }
 0x1fc   : > { %v3396_v14 = vadd.f32 %v3395_v8, %v3383_v9  ;;  %3797 = vmatmul.bf16.vlgmr.msrb.gmra.mxu0 %v665_v32  ;;  %3810 = vmatmul.bf16.vlgmr.msrb.gmra.mxu1 %v666_v33  ;;  %v6951_v32 = vld [vmem:[%s7604_s30 + $0x1ec] sm:$0xf] }
 0x1fd   : > { %3900 = vmatpush.bf16.xpose.msrb.mxu0 %v6327_v12  ;;  %3913 = vmatpush.bf16.xpose.msrb.mxu1 %v6331_v13  ;;  %v6352_v33 = vld [vmem:[%s7604_s30 + $0x5e8] sm:$0x10]  ;;  %v681_v13 = vld [vmem:[#allocation1] sm:$0xff] }
 0x1fe   : > { %3836 = vmatmul.bf16.vlgmr.msrb.gmra.mxu3 %v668_v35  ;;  %v6355_v44 = vor.u32 %v6951_v32, %v6352_v33  ;;  %v6376_v32 = vld [vmem:[%s7604_s30 + $0x600] sm:$0x10] }
 0x1ff   : > { %3823 = vmatmul.bf16.vlgmr.msrb.gmra.mxu2 %v667_v34  ;;  %3939 = vmatpush.bf16.xpose.msrb.mxu3 %v6339_v11  ;;  %v6342_v34 = vld [vmem:[%s7604_s30 + $0x1e0] sm:$0xf]  ;;  %v6379_v39 = vor.u32 %v6954_v31, %v6376_v32 }
 0x200   : > { %3926 = vmatpush.bf16.xpose.msrb.mxu2 %v6335_v10  ;;  %v6343_v45 = vor.u32 %v7078_v37, %v6342_v34 }
 0x201   : > { %v3421_v16 = vpop.f32.mrf.mxu3  ;;  %v3384_v18 = vpop.f32.mrf.mxu0 }
 0x202   : > { %v3408_v15 = vpop.f32.mrf.mxu2  ;;  %v3397_v19 = vpop.f32.mrf.mxu1  ;;  %v685_v18 = vld [vmem:[#allocation1 + $0x24] sm:$0xff] }
 0x203   : > { %v3409_v17 = vadd.f32 %v3408_v15, %v3396_v14  ;;  %v682_v14 = vld [vmem:[#allocation1 + $0x9] sm:$0xff]  ;;  %v683_v15 = vld [vmem:[#allocation1 + $0x12] sm:$0xff] }
 0x204   : > { %v686_v19 = vld [vmem:[#allocation1 + $0x2d] sm:$0xff] }
 0x205   : > { %v3422_v23 = vadd.f32 %v3421_v16, %v3409_v17  ;;  %v684_v17 = vld [vmem:[#allocation1 + $0x1b] sm:$0xff] }
 0x209   : > { %v3423_v36 = vpop.f32.mrf.mxu3  ;;  %v3434_v40 = vpop.f32.mrf.mxu0 }
 0x20a   : > { %v3410_v35 = vpop.f32.mrf.mxu2  ;;  %v3447_v41 = vpop.f32.mrf.mxu1  ;;  %v3435_v42 = vadd.f32 %v3434_v40, %v3422_v23  ;;  %v6382_v23 = vld [vmem:[%s7604_s30 + $0x208] sm:$0xf] }
 0x20c   : > { %v3448_v47 = vadd.f32 %v3447_v41, %v3435_v42  ;;  %3849 = vmatmul.bf16.vlgmr.msra.gmra.mxu0 %v671_v20  ;;  %3862 = vmatmul.bf16.vlgmr.msra.gmra.mxu1 %v672_v21  ;;  %v687_v20 = vld [vmem:[#allocation1 + $0x36] sm:$0xff]  ;;  %v688_v21 = vld [vmem:[#allocation1 + $0x3f] sm:$0xff] }
 0x20d   : > { %3952 = vmatpush.bf16.xpose.msra.mxu0 %v6343_v45  ;;  %3965 = vmatpush.bf16.xpose.msra.mxu1 %v6347_v46 }
 0x20e   : > { %3888 = vmatmul.bf16.vlgmr.msra.gmra.mxu3 %v674_v24  ;;  %v7083_v24 = vld [vmem:[%s7604_s30 + $0x604] sm:$0x10] }
 0x20f   : > { %3875 = vmatmul.bf16.vlgmr.msra.gmra.mxu2 %v673_v22  ;;  %3991 = vmatpush.bf16.xpose.msra.mxu3 %v6355_v44  ;;  %v257_v22 = vld [vmem:[%s7598_s5 + $0x80] sm:$0xff]  ;;  %v6383_v36 = vor.u32 %v7083_v24, %v6382_v23 }
 0x210   : > { %3978 = vmatpush.bf16.xpose.msra.mxu2 %v6351_v43  ;;  %690 = vst [vmem:[#allocation1] ss:$9 sm:$0xff] %v257_v22  ;;  %v7086_v23 = vld [vmem:[%s7604_s30 + $0x61c] sm:$0x10]  ;;  %v6958_v24 = vld [vmem:[%s7604_s30 + $0x224] sm:$0xf] }
 0x211   : > { %v3473_v49 = vpop.f32.mrf.mxu3  ;;  %v3436_v51 = vpop.f32.mrf.mxu0 }
 0x212   : > { %v3460_v48 = vpop.f32.mrf.mxu2  ;;  %v3449_v52 = vpop.f32.mrf.mxu1  ;;  %v6390_v51 = vld [vmem:[%s7604_s30 + $0x210] sm:$0xf] }
 0x213   : > { %v3461_v50 = vadd.f32 %v3460_v48, %v3448_v47  ;;  %v6398_v47 = vld [vmem:[%s7604_s30 + $0x218] sm:$0xf]  ;;  %v6391_v62 = vor.u32 %v7084_v54, %v6390_v51 }
 0x214   : > { %v7085_v48 = vld [vmem:[%s7604_s30 + $0x614] sm:$0x10] }
 0x215   : > { %v3474_v53 = vadd.f32 %v3473_v49, %v3461_v50  ;;  %v6957_v49 = vld [vmem:[%s7604_s30 + $0x21c] sm:$0xf] }
 0x216   : > { %v6400_v50 = vld [vmem:[%s7604_s30 + $0x618] sm:$0x10] }
 0x217   : > { %v6403_v61 = vor.u32 %v6957_v49, %v6400_v50  ;;  %v6424_v49 = vld [vmem:[%s7604_s30 + $0x630] sm:$0x10] }
 0x219   : > { %v3475_v60 = vpop.f32.mrf.mxu3  ;;  %v3486_v0 = vpop.f32.mrf.mxu0 }
 0x21a   : > { %v3462_v59 = vpop.f32.mrf.mxu2  ;;  %v3499_v1 = vpop.f32.mrf.mxu1  ;;  %v3487_v2 = vadd.f32 %v3486_v0, %v3474_v53  ;;  %v6399_v60 = vor.u32 %v7085_v48, %v6398_v47  ;;  %v7088_v47 = vld [vmem:[%s7604_s30 + $0x62c] sm:$0x10]  ;;  %v6960_v48 = vld [vmem:[%s7604_s30 + $0x234] sm:$0xf] }
 0x21b   : > { %v6427_v56 = vor.u32 %v6960_v48, %v6424_v49 }
 0x21c   : > { %v3500_v7 = vadd.f32 %v3499_v1, %v3487_v2  ;;  %3901 = vmatmul.bf16.vlgmr.msrb.gmra.mxu0 %v675_v25  ;;  %3914 = vmatmul.bf16.vlgmr.msrb.gmra.mxu1 %v676_v26  ;;  %v6955_v25 = vld [vmem:[%s7604_s30 + $0x20c] sm:$0xf] }
 0x21d   : > { %4004 = vmatpush.bf16.xpose.msrb.mxu0 %v6359_v5  ;;  %4017 = vmatpush.bf16.xpose.msrb.mxu1 %v6363_v6  ;;  %v6384_v26 = vld [vmem:[%s7604_s30 + $0x608] sm:$0x10]  ;;  %v691_v6 = vld [vmem:[#allocation1] sm:$0xff] }
 0x21e   : > { %3940 = vmatmul.bf16.vlgmr.msrb.gmra.mxu3 %v678_v28  ;;  %v6387_v37 = vor.u32 %v6955_v25, %v6384_v26  ;;  %v6408_v25 = vld [vmem:[%s7604_s30 + $0x620] sm:$0x10] }
 0x21f   : > { %3927 = vmatmul.bf16.vlgmr.msrb.gmra.mxu2 %v677_v27  ;;  %4043 = vmatpush.bf16.xpose.msrb.mxu3 %v6371_v4  ;;  %v6374_v27 = vld [vmem:[%s7604_s30 + $0x200] sm:$0xf]  ;;  %v6411_v32 = vor.u32 %v6958_v24, %v6408_v25 }
 0x220   : > { %4030 = vmatpush.bf16.xpose.msrb.mxu2 %v6367_v3  ;;  %v6375_v38 = vor.u32 %v7082_v30, %v6374_v27 }
 0x221   : > { %v3525_v9 = vpop.f32.mrf.mxu3  ;;  %v3488_v11 = vpop.f32.mrf.mxu0 }
 0x222   : > { %v3512_v8 = vpop.f32.mrf.mxu2  ;;  %v3501_v12 = vpop.f32.mrf.mxu1  ;;  %v695_v11 = vld [vmem:[#allocation1 + $0x24] sm:$0xff] }
 0x223   : > { %v3513_v10 = vadd.f32 %v3512_v8, %v3500_v7  ;;  %v692_v7 = vld [vmem:[#allocation1 + $0x9] sm:$0xff]  ;;  %v693_v8 = vld [vmem:[#allocation1 + $0x12] sm:$0xff] }
 0x224   : > { %v696_v12 = vld [vmem:[#allocation1 + $0x2d] sm:$0xff] }
 0x225   : > { %v3526_v16 = vadd.f32 %v3525_v9, %v3513_v10  ;;  %v694_v10 = vld [vmem:[#allocation1 + $0x1b] sm:$0xff] }
 0x229   : > { %v3527_v29 = vpop.f32.mrf.mxu3  ;;  %v3538_v33 = vpop.f32.mrf.mxu0 }
 0x22a   : > { %v3514_v28 = vpop.f32.mrf.mxu2  ;;  %v3551_v34 = vpop.f32.mrf.mxu1  ;;  %v3539_v35 = vadd.f32 %v3538_v33, %v3526_v16  ;;  %v6414_v16 = vld [vmem:[%s7604_s30 + $0x228] sm:$0xf] }
 0x22c   : > { %v3552_v40 = vadd.f32 %v3551_v34, %v3539_v35  ;;  %3953 = vmatmul.bf16.vlgmr.msra.gmra.mxu0 %v681_v13  ;;  %3966 = vmatmul.bf16.vlgmr.msra.gmra.mxu1 %v682_v14  ;;  %v697_v13 = vld [vmem:[#allocation1 + $0x36] sm:$0xff]  ;;  %v698_v14 = vld [vmem:[#allocation1 + $0x3f] sm:$0xff] }
 0x22d   : > { %4056 = vmatpush.bf16.xpose.msra.mxu0 %v6375_v38  ;;  %4069 = vmatpush.bf16.xpose.msra.mxu1 %v6379_v39 }
 0x22e   : > { %3992 = vmatmul.bf16.vlgmr.msra.gmra.mxu3 %v684_v17  ;;  %v7087_v17 = vld [vmem:[%s7604_s30 + $0x624] sm:$0x10] }
 0x22f   : > { %3979 = vmatmul.bf16.vlgmr.msra.gmra.mxu2 %v683_v15  ;;  %4095 = vmatpush.bf16.xpose.msra.mxu3 %v6387_v37  ;;  %v258_v15 = vld [vmem:[%s7598_s5 + $0x88] sm:$0xff]  ;;  %v6415_v29 = vor.u32 %v7087_v17, %v6414_v16  ;;  %v7090_v16 = vld [vmem:[%s7604_s30 + $0x63c] sm:$0x10]  ;;  %v6962_v17 = vld [vmem:[%s7604_s30 + $0x244] sm:$0xf] }
 0x230   : > { %4082 = vmatpush.bf16.xpose.msra.mxu2 %v6383_v36  ;;  %700 = vst [vmem:[#allocation1] ss:$9 sm:$0xff] %v258_v15 }
 0x231   : > { %v3577_v42 = vpop.f32.mrf.mxu3  ;;  %v3540_v44 = vpop.f32.mrf.mxu0 }
 0x232   : > { %v3564_v41 = vpop.f32.mrf.mxu2  ;;  %v3553_v45 = vpop.f32.mrf.mxu1  ;;  %v6422_v44 = vld [vmem:[%s7604_s30 + $0x230] sm:$0xf] }
 0x233   : > { %v3565_v43 = vadd.f32 %v3564_v41, %v3552_v40  ;;  %v6430_v40 = vld [vmem:[%s7604_s30 + $0x238] sm:$0xf]  ;;  %v6423_v55 = vor.u32 %v7088_v47, %v6422_v44 }
 0x234   : > { %v7089_v41 = vld [vmem:[%s7604_s30 + $0x634] sm:$0x10] }
 0x235   : > { %v3578_v46 = vadd.f32 %v3577_v42, %v3565_v43  ;;  %v6961_v42 = vld [vmem:[%s7604_s30 + $0x23c] sm:$0xf] }
 0x236   : > { %v6432_v43 = vld [vmem:[%s7604_s30 + $0x638] sm:$0x10] }
 0x237   : > { %v6435_v54 = vor.u32 %v6961_v42, %v6432_v43  ;;  %v6456_v42 = vld [vmem:[%s7604_s30 + $0x650] sm:$0x10] }
 0x239   : > { %v3579_v53 = vpop.f32.mrf.mxu3  ;;  %v3590_v57 = vpop.f32.mrf.mxu0 }
 0x23a   : > { %v3566_v52 = vpop.f32.mrf.mxu2  ;;  %v3603_v58 = vpop.f32.mrf.mxu1  ;;  %v3591_v59 = vadd.f32 %v3590_v57, %v3578_v46  ;;  %v6431_v53 = vor.u32 %v7089_v41, %v6430_v40  ;;  %v7092_v40 = vld [vmem:[%s7604_s30 + $0x64c] sm:$0x10]  ;;  %v6964_v41 = vld [vmem:[%s7604_s30 + $0x254] sm:$0xf] }
 0x23b   : > { %v6459_v49 = vor.u32 %v6964_v41, %v6456_v42 }
 0x23c   : > { %v3604_v0 = vadd.f32 %v3603_v58, %v3591_v59  ;;  %4005 = vmatmul.bf16.vlgmr.msrb.gmra.mxu0 %v685_v18  ;;  %4018 = vmatmul.bf16.vlgmr.msrb.gmra.mxu1 %v686_v19  ;;  %v6959_v18 = vld [vmem:[%s7604_s30 + $0x22c] sm:$0xf] }
 0x23d   : > { %4108 = vmatpush.bf16.xpose.msrb.mxu0 %v6391_v62  ;;  %4121 = vmatpush.bf16.xpose.msrb.mxu1 %v6395_v63  ;;  %v6416_v19 = vld [vmem:[%s7604_s30 + $0x628] sm:$0x10]  ;;  %v701_v63 = vld [vmem:[#allocation1] sm:$0xff] }
 0x23e   : > { %4044 = vmatmul.bf16.vlgmr.msrb.gmra.mxu3 %v688_v21  ;;  %v6419_v30 = vor.u32 %v6959_v18, %v6416_v19  ;;  %v6440_v18 = vld [vmem:[%s7604_s30 + $0x640] sm:$0x10] }
 0x23f   : > { %4031 = vmatmul.bf16.vlgmr.msrb.gmra.mxu2 %v687_v20  ;;  %4147 = vmatpush.bf16.xpose.msrb.mxu3 %v6403_v61  ;;  %v6406_v20 = vld [vmem:[%s7604_s30 + $0x220] sm:$0xf]  ;;  %v6443_v25 = vor.u32 %v6962_v17, %v6440_v18 }
 0x240   : > { %4134 = vmatpush.bf16.xpose.msrb.mxu2 %v6399_v60  ;;  %v6407_v31 = vor.u32 %v7086_v23, %v6406_v20 }
 0x241   : > { %v3629_v2 = vpop.f32.mrf.mxu3  ;;  %v3592_v4 = vpop.f32.mrf.mxu0 }
 0x242   : > { %v3616_v1 = vpop.f32.mrf.mxu2  ;;  %v3605_v5 = vpop.f32.mrf.mxu1  ;;  %v705_v4 = vld [vmem:[#allocation1 + $0x24] sm:$0xff] }
 0x243   : > { %v3617_v3 = vadd.f32 %v3616_v1, %v3604_v0  ;;  %v702_v0 = vld [vmem:[#allocation1 + $0x9] sm:$0xff]  ;;  %v703_v1 = vld [vmem:[#allocation1 + $0x12] sm:$0xff] }
 0x244   : > { %v706_v5 = vld [vmem:[#allocation1 + $0x2d] sm:$0xff] }
 0x245   : > { %v3630_v9 = vadd.f32 %v3629_v2, %v3617_v3  ;;  %v704_v3 = vld [vmem:[#allocation1 + $0x1b] sm:$0xff] }
 0x249   : > { %v3631_v22 = vpop.f32.mrf.mxu3  ;;  %v3642_v26 = vpop.f32.mrf.mxu0 }
 0x24a   : > { %v3618_v21 = vpop.f32.mrf.mxu2  ;;  %v3655_v27 = vpop.f32.mrf.mxu1  ;;  %v3643_v28 = vadd.f32 %v3642_v26, %v3630_v9  ;;  %v6446_v9 = vld [vmem:[%s7604_s30 + $0x248] sm:$0xf] }
 0x24c   : > { %v3656_v33 = vadd.f32 %v3655_v27, %v3643_v28  ;;  %4057 = vmatmul.bf16.vlgmr.msra.gmra.mxu0 %v691_v6  ;;  %4070 = vmatmul.bf16.vlgmr.msra.gmra.mxu1 %v692_v7  ;;  %v707_v6 = vld [vmem:[#allocation1 + $0x36] sm:$0xff]  ;;  %v708_v7 = vld [vmem:[#allocation1 + $0x3f] sm:$0xff] }
 0x24d   : > { %4160 = vmatpush.bf16.xpose.msra.mxu0 %v6407_v31  ;;  %4173 = vmatpush.bf16.xpose.msra.mxu1 %v6411_v32 }
 0x24e   : > { %4096 = vmatmul.bf16.vlgmr.msra.gmra.mxu3 %v694_v10  ;;  %v7091_v10 = vld [vmem:[%s7604_s30 + $0x644] sm:$0x10] }
 0x24f   : > { %4083 = vmatmul.bf16.vlgmr.msra.gmra.mxu2 %v693_v8  ;;  %4199 = vmatpush.bf16.xpose.msra.mxu3 %v6419_v30  ;;  %v259_v8 = vld [vmem:[%s7598_s5 + $0x90] sm:$0xff]  ;;  %v6447_v22 = vor.u32 %v7091_v10, %v6446_v9  ;;  %v7094_v9 = vld [vmem:[%s7604_s30 + $0x65c] sm:$0x10]  ;;  %v6966_v10 = vld [vmem:[%s7604_s30 + $0x264] sm:$0xf] }
 0x250   : > { %4186 = vmatpush.bf16.xpose.msra.mxu2 %v6415_v29  ;;  %710 = vst [vmem:[#allocation1] ss:$9 sm:$0xff] %v259_v8 }
 0x251   : > { %v3681_v35 = vpop.f32.mrf.mxu3  ;;  %v3644_v37 = vpop.f32.mrf.mxu0 }
 0x252   : > { %v3668_v34 = vpop.f32.mrf.mxu2  ;;  %v3657_v38 = vpop.f32.mrf.mxu1  ;;  %v6454_v37 = vld [vmem:[%s7604_s30 + $0x250] sm:$0xf] }
 0x253   : > { %v3669_v36 = vadd.f32 %v3668_v34, %v3656_v33  ;;  %v6462_v33 = vld [vmem:[%s7604_s30 + $0x258] sm:$0xf]  ;;  %v6455_v48 = vor.u32 %v7092_v40, %v6454_v37 }
 0x254   : > { %v7093_v34 = vld [vmem:[%s7604_s30 + $0x654] sm:$0x10] }
 0x255   : > { %v3682_v39 = vadd.f32 %v3681_v35, %v3669_v36  ;;  %v6965_v35 = vld [vmem:[%s7604_s30 + $0x25c] sm:$0xf] }
 0x256   : > { %v6464_v36 = vld [vmem:[%s7604_s30 + $0x658] sm:$0x10] }
 0x257   : > { %v6467_v47 = vor.u32 %v6965_v35, %v6464_v36  ;;  %v6488_v35 = vld [vmem:[%s7604_s30 + $0x670] sm:$0x10] }
 0x259   : > { %v3683_v46 = vpop.f32.mrf.mxu3  ;;  %v3694_v50 = vpop.f32.mrf.mxu0 }
 0x25a   : > { %v3670_v45 = vpop.f32.mrf.mxu2  ;;  %v3707_v51 = vpop.f32.mrf.mxu1  ;;  %v3695_v52 = vadd.f32 %v3694_v50, %v3682_v39  ;;  %v6463_v46 = vor.u32 %v7093_v34, %v6462_v33  ;;  %v7096_v33 = vld [vmem:[%s7604_s30 + $0x66c] sm:$0x10]  ;;  %v6968_v34 = vld [vmem:[%s7604_s30 + $0x274] sm:$0xf] }
 0x25b   : > { %v6491_v42 = vor.u32 %v6968_v34, %v6488_v35 }
 0x25c   : > { %v3708_v57 = vadd.f32 %v3707_v51, %v3695_v52  ;;  %4109 = vmatmul.bf16.vlgmr.msrb.gmra.mxu0 %v695_v11  ;;  %4122 = vmatmul.bf16.vlgmr.msrb.gmra.mxu1 %v696_v12  ;;  %v6963_v11 = vld [vmem:[%s7604_s30 + $0x24c] sm:$0xf] }
 0x25d   : > { %4212 = vmatpush.bf16.xpose.msrb.mxu0 %v6423_v55  ;;  %4225 = vmatpush.bf16.xpose.msrb.mxu1 %v6427_v56  ;;  %v6448_v12 = vld [vmem:[%s7604_s30 + $0x648] sm:$0x10]  ;;  %v711_v56 = vld [vmem:[#allocation1] sm:$0xff] }
 0x25e   : > { %4148 = vmatmul.bf16.vlgmr.msrb.gmra.mxu3 %v698_v14  ;;  %v6451_v23 = vor.u32 %v6963_v11, %v6448_v12  ;;  %v6472_v11 = vld [vmem:[%s7604_s30 + $0x660] sm:$0x10] }
 0x25f   : > { %4135 = vmatmul.bf16.vlgmr.msrb.gmra.mxu2 %v697_v13  ;;  %4251 = vmatpush.bf16.xpose.msrb.mxu3 %v6435_v54  ;;  %v6438_v13 = vld [vmem:[%s7604_s30 + $0x240] sm:$0xf]  ;;  %v6475_v18 = vor.u32 %v6966_v10, %v6472_v11 }
 0x260   : > { %4238 = vmatpush.bf16.xpose.msrb.mxu2 %v6431_v53  ;;  %v6439_v24 = vor.u32 %v7090_v16, %v6438_v13 }
 0x261   : > { %v3733_v59 = vpop.f32.mrf.mxu3  ;;  %v3696_v61 = vpop.f32.mrf.mxu0 }
 0x262   : > { %v3720_v58 = vpop.f32.mrf.mxu2  ;;  %v3709_v62 = vpop.f32.mrf.mxu1  ;;  %v715_v61 = vld [vmem:[#allocation1 + $0x24] sm:$0xff] }
 0x263   : > { %v3721_v60 = vadd.f32 %v3720_v58, %v3708_v57  ;;  %v712_v57 = vld [vmem:[#allocation1 + $0x9] sm:$0xff]  ;;  %v713_v58 = vld [vmem:[#allocation1 + $0x12] sm:$0xff] }
 0x264   : > { %v716_v62 = vld [vmem:[#allocation1 + $0x2d] sm:$0xff] }
 0x265   : > { %v3734_v2 = vadd.f32 %v3733_v59, %v3721_v60  ;;  %v714_v60 = vld [vmem:[#allocation1 + $0x1b] sm:$0xff] }
 0x269   : > { %v3735_v15 = vpop.f32.mrf.mxu3  ;;  %v3746_v19 = vpop.f32.mrf.mxu0 }
 0x26a   : > { %v3722_v14 = vpop.f32.mrf.mxu2  ;;  %v3759_v20 = vpop.f32.mrf.mxu1  ;;  %v3747_v21 = vadd.f32 %v3746_v19, %v3734_v2  ;;  %v6478_v2 = vld [vmem:[%s7604_s30 + $0x268] sm:$0xf] }
 0x26c   : > { %v3760_v26 = vadd.f32 %v3759_v20, %v3747_v21  ;;  %4161 = vmatmul.bf16.vlgmr.msra.gmra.mxu0 %v701_v63  ;;  %4174 = vmatmul.bf16.vlgmr.msra.gmra.mxu1 %v702_v0  ;;  %v717_v63 = vld [vmem:[#allocation1 + $0x36] sm:$0xff]  ;;  %v718_v0 = vld [vmem:[#allocation1 + $0x3f] sm:$0xff] }
 0x26d   : > { %4264 = vmatpush.bf16.xpose.msra.mxu0 %v6439_v24  ;;  %4277 = vmatpush.bf16.xpose.msra.mxu1 %v6443_v25 }
 0x26e   : > { %4200 = vmatmul.bf16.vlgmr.msra.gmra.mxu3 %v704_v3  ;;  %v7095_v3 = vld [vmem:[%s7604_s30 + $0x664] sm:$0x10] }
 0x26f   : > { %4187 = vmatmul.bf16.vlgmr.msra.gmra.mxu2 %v703_v1  ;;  %4303 = vmatpush.bf16.xpose.msra.mxu3 %v6451_v23  ;;  %v260_v1 = vld [vmem:[%s7598_s5 + $0x98] sm:$0xff]  ;;  %v6479_v15 = vor.u32 %v7095_v3, %v6478_v2  ;;  %v7098_v2 = vld [vmem:[%s7604_s30 + $0x67c] sm:$0x10]  ;;  %v6970_v3 = vld [vmem:[%s7604_s30 + $0x284] sm:$0xf] }
 0x270   : > { %4290 = vmatpush.bf16.xpose.msra.mxu2 %v6447_v22  ;;  %720 = vst [vmem:[#allocation1] ss:$9 sm:$0xff] %v260_v1 }
 0x271   : > { %v3785_v28 = vpop.f32.mrf.mxu3  ;;  %v3748_v30 = vpop.f32.mrf.mxu0 }
 0x272   : > { %v3772_v27 = vpop.f32.mrf.mxu2  ;;  %v3761_v31 = vpop.f32.mrf.mxu1  ;;  %v6486_v30 = vld [vmem:[%s7604_s30 + $0x270] sm:$0xf] }
 0x273   : > { %v3773_v29 = vadd.f32 %v3772_v27, %v3760_v26  ;;  %v6494_v26 = vld [vmem:[%s7604_s30 + $0x278] sm:$0xf]  ;;  %v6487_v41 = vor.u32 %v7096_v33, %v6486_v30 }
 0x274   : > { %v7097_v27 = vld [vmem:[%s7604_s30 + $0x674] sm:$0x10] }
 0x275   : > { %v3786_v32 = vadd.f32 %v3785_v28, %v3773_v29  ;;  %v6969_v28 = vld [vmem:[%s7604_s30 + $0x27c] sm:$0xf] }
 0x276   : > { %v6496_v29 = vld [vmem:[%s7604_s30 + $0x678] sm:$0x10] }
 0x277   : > { %v6499_v40 = vor.u32 %v6969_v28, %v6496_v29  ;;  %v6520_v28 = vld [vmem:[%s7604_s30 + $0x690] sm:$0x10] }
 0x279   : > { %v3787_v39 = vpop.f32.mrf.mxu3  ;;  %v3798_v43 = vpop.f32.mrf.mxu0 }
 0x27a   : > { %v3774_v38 = vpop.f32.mrf.mxu2  ;;  %v3811_v44 = vpop.f32.mrf.mxu1  ;;  %v3799_v45 = vadd.f32 %v3798_v43, %v3786_v32  ;;  %v6495_v39 = vor.u32 %v7097_v27, %v6494_v26  ;;  %v7100_v26 = vld [vmem:[%s7604_s30 + $0x68c] sm:$0x10]  ;;  %v6972_v27 = vld [vmem:[%s7604_s30 + $0x294] sm:$0xf] }
 0x27b   : > { %v6523_v35 = vor.u32 %v6972_v27, %v6520_v28 }
 0x27c   : > { %v3812_v50 = vadd.f32 %v3811_v44, %v3799_v45  ;;  %4213 = vmatmul.bf16.vlgmr.msrb.gmra.mxu0 %v705_v4  ;;  %4226 = vmatmul.bf16.vlgmr.msrb.gmra.mxu1 %v706_v5  ;;  %v6967_v4 = vld [vmem:[%s7604_s30 + $0x26c] sm:$0xf] }
 0x27d   : > { %4316 = vmatpush.bf16.xpose.msrb.mxu0 %v6455_v48  ;;  %4329 = vmatpush.bf16.xpose.msrb.mxu1 %v6459_v49  ;;  %v6480_v5 = vld [vmem:[%s7604_s30 + $0x668] sm:$0x10]  ;;  %v721_v49 = vld [vmem:[#allocation1] sm:$0xff] }
 0x27e   : > { %4252 = vmatmul.bf16.vlgmr.msrb.gmra.mxu3 %v708_v7  ;;  %v6483_v16 = vor.u32 %v6967_v4, %v6480_v5  ;;  %v6504_v4 = vld [vmem:[%s7604_s30 + $0x680] sm:$0x10] }
 0x27f   : > { %4239 = vmatmul.bf16.vlgmr.msrb.gmra.mxu2 %v707_v6  ;;  %4355 = vmatpush.bf16.xpose.msrb.mxu3 %v6467_v47  ;;  %v6470_v6 = vld [vmem:[%s7604_s30 + $0x260] sm:$0xf]  ;;  %v6507_v11 = vor.u32 %v6970_v3, %v6504_v4 }
 0x280   : > { %4342 = vmatpush.bf16.xpose.msrb.mxu2 %v6463_v46  ;;  %v6471_v17 = vor.u32 %v7094_v9, %v6470_v6 }
 0x281   : > { %v3837_v52 = vpop.f32.mrf.mxu3  ;;  %v3800_v54 = vpop.f32.mrf.mxu0 }
 0x282   : > { %v3824_v51 = vpop.f32.mrf.mxu2  ;;  %v3813_v55 = vpop.f32.mrf.mxu1  ;;  %v725_v54 = vld [vmem:[#allocation1 + $0x24] sm:$0xff] }
 0x283   : > { %v3825_v53 = vadd.f32 %v3824_v51, %v3812_v50  ;;  %v722_v50 = vld [vmem:[#allocation1 + $0x9] sm:$0xff]  ;;  %v723_v51 = vld [vmem:[#allocation1 + $0x12] sm:$0xff] }
 0x284   : > { %v726_v55 = vld [vmem:[#allocation1 + $0x2d] sm:$0xff] }
 0x285   : > { %v3838_v59 = vadd.f32 %v3837_v52, %v3825_v53  ;;  %v724_v53 = vld [vmem:[#allocation1 + $0x1b] sm:$0xff] }
 0x289   : > { %v3839_v8 = vpop.f32.mrf.mxu3  ;;  %v3850_v12 = vpop.f32.mrf.mxu0 }
 0x28a   : > { %v3826_v7 = vpop.f32.mrf.mxu2  ;;  %v3863_v13 = vpop.f32.mrf.mxu1  ;;  %v3851_v14 = vadd.f32 %v3850_v12, %v3838_v59  ;;  %v6510_v59 = vld [vmem:[%s7604_s30 + $0x288] sm:$0xf] }
 0x28c   : > { %v3864_v19 = vadd.f32 %v3863_v13, %v3851_v14  ;;  %4265 = vmatmul.bf16.vlgmr.msra.gmra.mxu0 %v711_v56  ;;  %4278 = vmatmul.bf16.vlgmr.msra.gmra.mxu1 %v712_v57  ;;  %v727_v56 = vld [vmem:[#allocation1 + $0x36] sm:$0xff]  ;;  %v728_v57 = vld [vmem:[#allocation1 + $0x3f] sm:$0xff] }
 0x28d   : > { %4368 = vmatpush.bf16.xpose.msra.mxu0 %v6471_v17  ;;  %4381 = vmatpush.bf16.xpose.msra.mxu1 %v6475_v18 }
 0x28e   : > { %4304 = vmatmul.bf16.vlgmr.msra.gmra.mxu3 %v714_v60  ;;  %v7099_v60 = vld [vmem:[%s7604_s30 + $0x684] sm:$0x10] }
 0x28f   : > { %4291 = vmatmul.bf16.vlgmr.msra.gmra.mxu2 %v713_v58  ;;  %4407 = vmatpush.bf16.xpose.msra.mxu3 %v6483_v16  ;;  %v261_v58 = vld [vmem:[%s7598_s5 + $0xa0] sm:$0xff]  ;;  %v6511_v8 = vor.u32 %v7099_v60, %v6510_v59 }
 0x290   : > { %4394 = vmatpush.bf16.xpose.msra.mxu2 %v6479_v15  ;;  %730 = vst [vmem:[#allocation1] ss:$9 sm:$0xff] %v261_v58  ;;  %v7102_v59 = vld [vmem:[%s7604_s30 + $0x69c] sm:$0x10]  ;;  %v6974_v60 = vld [vmem:[%s7604_s30 + $0x2a4] sm:$0xf] }
 0x291   : > { %v3889_v21 = vpop.f32.mrf.mxu3  ;;  %v3852_v23 = vpop.f32.mrf.mxu0 }
 0x292   : > { %v3876_v20 = vpop.f32.mrf.mxu2  ;;  %v3865_v24 = vpop.f32.mrf.mxu1  ;;  %v6518_v23 = vld [vmem:[%s7604_s30 + $0x290] sm:$0xf] }
 0x293   : > { %v3877_v22 = vadd.f32 %v3876_v20, %v3864_v19  ;;  %v6526_v19 = vld [vmem:[%s7604_s30 + $0x298] sm:$0xf]  ;;  %v6519_v34 = vor.u32 %v7100_v26, %v6518_v23 }
 0x294   : > { %v7101_v20 = vld [vmem:[%s7604_s30 + $0x694] sm:$0x10] }
 0x295   : > { %v3890_v25 = vadd.f32 %v3889_v21, %v3877_v22  ;;  %v6973_v21 = vld [vmem:[%s7604_s30 + $0x29c] sm:$0xf] }
 0x296   : > { %v6528_v22 = vld [vmem:[%s7604_s30 + $0x698] sm:$0x10] }
 0x297   : > { %v6531_v33 = vor.u32 %v6973_v21, %v6528_v22  ;;  %v6552_v21 = vld [vmem:[%s7604_s30 + $0x6b0] sm:$0x10] }
 0x299   : > { %v3891_v32 = vpop.f32.mrf.mxu3  ;;  %v3902_v36 = vpop.f32.mrf.mxu0 }
 0x29a   : > { %v3878_v31 = vpop.f32.mrf.mxu2  ;;  %v3915_v37 = vpop.f32.mrf.mxu1  ;;  %v3903_v38 = vadd.f32 %v3902_v36, %v3890_v25  ;;  %v6527_v32 = vor.u32 %v7101_v20, %v6526_v19  ;;  %v7104_v19 = vld [vmem:[%s7604_s30 + $0x6ac] sm:$0x10]  ;;  %v6976_v20 = vld [vmem:[%s7604_s30 + $0x2b4] sm:$0xf] }
 0x29b   : > { %v6555_v28 = vor.u32 %v6976_v20, %v6552_v21 }
 0x29c   : > { %v3916_v43 = vadd.f32 %v3915_v37, %v3903_v38  ;;  %4317 = vmatmul.bf16.vlgmr.msrb.gmra.mxu0 %v715_v61  ;;  %4330 = vmatmul.bf16.vlgmr.msrb.gmra.mxu1 %v716_v62  ;;  %v6971_v61 = vld [vmem:[%s7604_s30 + $0x28c] sm:$0xf] }
 0x29d   : > { %4420 = vmatpush.bf16.xpose.msrb.mxu0 %v6487_v41  ;;  %4433 = vmatpush.bf16.xpose.msrb.mxu1 %v6491_v42  ;;  %v6512_v62 = vld [vmem:[%s7604_s30 + $0x688] sm:$0x10]  ;;  %v731_v42 = vld [vmem:[#allocation1] sm:$0xff] }
 0x29e   : > { %4356 = vmatmul.bf16.vlgmr.msrb.gmra.mxu3 %v718_v0  ;;  %v6515_v9 = vor.u32 %v6971_v61, %v6512_v62  ;;  %v6536_v61 = vld [vmem:[%s7604_s30 + $0x6a0] sm:$0x10] }
 0x29f   : > { %4343 = vmatmul.bf16.vlgmr.msrb.gmra.mxu2 %v717_v63  ;;  %4459 = vmatpush.bf16.xpose.msrb.mxu3 %v6499_v40  ;;  %v6502_v63 = vld [vmem:[%s7604_s30 + $0x280] sm:$0xf]  ;;  %v6539_v4 = vor.u32 %v6974_v60, %v6536_v61 }
 0x2a0   : > { %4446 = vmatpush.bf16.xpose.msrb.mxu2 %v6495_v39  ;;  %v6503_v10 = vor.u32 %v7098_v2, %v6502_v63 }
 0x2a1   : > { %v3941_v45 = vpop.f32.mrf.mxu3  ;;  %v3904_v47 = vpop.f32.mrf.mxu0 }
 0x2a2   : > { %v3928_v44 = vpop.f32.mrf.mxu2  ;;  %v3917_v48 = vpop.f32.mrf.mxu1  ;;  %v735_v47 = vld [vmem:[#allocation1 + $0x24] sm:$0xff] }
 0x2a3   : > { %v3929_v46 = vadd.f32 %v3928_v44, %v3916_v43  ;;  %v732_v43 = vld [vmem:[#allocation1 + $0x9] sm:$0xff]  ;;  %v733_v44 = vld [vmem:[#allocation1 + $0x12] sm:$0xff] }
 0x2a4   : > { %v736_v48 = vld [vmem:[#allocation1 + $0x2d] sm:$0xff] }
 0x2a5   : > { %v3942_v52 = vadd.f32 %v3941_v45, %v3929_v46  ;;  %v734_v46 = vld [vmem:[#allocation1 + $0x1b] sm:$0xff] }
 0x2a9   : > { %v3943_v1 = vpop.f32.mrf.mxu3  ;;  %v3954_v5 = vpop.f32.mrf.mxu0 }
 0x2aa   : > { %v3930_v0 = vpop.f32.mrf.mxu2  ;;  %v3967_v6 = vpop.f32.mrf.mxu1  ;;  %v3955_v7 = vadd.f32 %v3954_v5, %v3942_v52  ;;  %v6542_v52 = vld [vmem:[%s7604_s30 + $0x2a8] sm:$0xf] }
 0x2ac   : > { %v3968_v12 = vadd.f32 %v3967_v6, %v3955_v7  ;;  %4369 = vmatmul.bf16.vlgmr.msra.gmra.mxu0 %v721_v49  ;;  %4382 = vmatmul.bf16.vlgmr.msra.gmra.mxu1 %v722_v50  ;;  %v737_v49 = vld [vmem:[#allocation1 + $0x36] sm:$0xff]  ;;  %v738_v50 = vld [vmem:[#allocation1 + $0x3f] sm:$0xff] }
 0x2ad   : > { %4472 = vmatpush.bf16.xpose.msra.mxu0 %v6503_v10  ;;  %4485 = vmatpush.bf16.xpose.msra.mxu1 %v6507_v11 }
 0x2ae   : > { %4408 = vmatmul.bf16.vlgmr.msra.gmra.mxu3 %v724_v53  ;;  %v7103_v53 = vld [vmem:[%s7604_s30 + $0x6a4] sm:$0x10] }
 0x2af   : > { %4395 = vmatmul.bf16.vlgmr.msra.gmra.mxu2 %v723_v51  ;;  %4511 = vmatpush.bf16.xpose.msra.mxu3 %v6515_v9  ;;  %v262_v51 = vld [vmem:[%s7598_s5 + $0xa8] sm:$0xff]  ;;  %v6543_v1 = vor.u32 %v7103_v53, %v6542_v52  ;;  %v7106_v52 = vld [vmem:[%s7604_s30 + $0x6bc] sm:$0x10]  ;;  %v6978_v53 = vld [vmem:[%s7604_s30 + $0x2c4] sm:$0xf] }
 0x2b0   : > { %4498 = vmatpush.bf16.xpose.msra.mxu2 %v6511_v8  ;;  %740 = vst [vmem:[#allocation1] ss:$9 sm:$0xff] %v262_v51 }
 0x2b1   : > { %v3993_v14 = vpop.f32.mrf.mxu3  ;;  %v3956_v16 = vpop.f32.mrf.mxu0 }
 0x2b2   : > { %v3980_v13 = vpop.f32.mrf.mxu2  ;;  %v3969_v17 = vpop.f32.mrf.mxu1  ;;  %v6550_v16 = vld [vmem:[%s7604_s30 + $0x2b0] sm:$0xf] }
 0x2b3   : > { %v3981_v15 = vadd.f32 %v3980_v13, %v3968_v12  ;;  %v6558_v12 = vld [vmem:[%s7604_s30 + $0x2b8] sm:$0xf]  ;;  %v6551_v27 = vor.u32 %v7104_v19, %v6550_v16 }
 0x2b4   : > { %v7105_v13 = vld [vmem:[%s7604_s30 + $0x6b4] sm:$0x10] }
 0x2b5   : > { %v3994_v18 = vadd.f32 %v3993_v14, %v3981_v15  ;;  %v6977_v14 = vld [vmem:[%s7604_s30 + $0x2bc] sm:$0xf] }
 0x2b6   : > { %v6560_v15 = vld [vmem:[%s7604_s30 + $0x6b8] sm:$0x10] }
 0x2b7   : > { %v6563_v26 = vor.u32 %v6977_v14, %v6560_v15  ;;  %v6584_v14 = vld [vmem:[%s7604_s30 + $0x6d0] sm:$0x10] }
 0x2b9   : > { %v3995_v25 = vpop.f32.mrf.mxu3  ;;  %v4006_v29 = vpop.f32.mrf.mxu0 }
 0x2ba   : > { %v3982_v24 = vpop.f32.mrf.mxu2  ;;  %v4019_v30 = vpop.f32.mrf.mxu1  ;;  %v4007_v31 = vadd.f32 %v4006_v29, %v3994_v18  ;;  %v6559_v25 = vor.u32 %v7105_v13, %v6558_v12  ;;  %v7108_v12 = vld [vmem:[%s7604_s30 + $0x6cc] sm:$0x10]  ;;  %v6980_v13 = vld [vmem:[%s7604_s30 + $0x2d4] sm:$0xf] }
 0x2bb   : > { %v6587_v21 = vor.u32 %v6980_v13, %v6584_v14 }
 0x2bc   : > { %v4020_v36 = vadd.f32 %v4019_v30, %v4007_v31  ;;  %4421 = vmatmul.bf16.vlgmr.msrb.gmra.mxu0 %v725_v54  ;;  %4434 = vmatmul.bf16.vlgmr.msrb.gmra.mxu1 %v726_v55  ;;  %v6975_v54 = vld [vmem:[%s7604_s30 + $0x2ac] sm:$0xf] }
 0x2bd   : > { %4524 = vmatpush.bf16.xpose.msrb.mxu0 %v6519_v34  ;;  %4537 = vmatpush.bf16.xpose.msrb.mxu1 %v6523_v35  ;;  %v6544_v55 = vld [vmem:[%s7604_s30 + $0x6a8] sm:$0x10]  ;;  %v741_v35 = vld [vmem:[#allocation1] sm:$0xff] }
 0x2be   : > { %4460 = vmatmul.bf16.vlgmr.msrb.gmra.mxu3 %v728_v57  ;;  %v6547_v2 = vor.u32 %v6975_v54, %v6544_v55  ;;  %v6568_v54 = vld [vmem:[%s7604_s30 + $0x6c0] sm:$0x10] }
 0x2bf   : > { %4447 = vmatmul.bf16.vlgmr.msrb.gmra.mxu2 %v727_v56  ;;  %4563 = vmatpush.bf16.xpose.msrb.mxu3 %v6531_v33  ;;  %v6534_v56 = vld [vmem:[%s7604_s30 + $0x2a0] sm:$0xf]  ;;  %v6571_v61 = vor.u32 %v6978_v53, %v6568_v54 }
 0x2c0   : > { %4550 = vmatpush.bf16.xpose.msrb.mxu2 %v6527_v32  ;;  %v6535_v3 = vor.u32 %v7102_v59, %v6534_v56 }
 0x2c1   : > { %v4045_v38 = vpop.f32.mrf.mxu3  ;;  %v4008_v40 = vpop.f32.mrf.mxu0 }
 0x2c2   : > { %v4032_v37 = vpop.f32.mrf.mxu2  ;;  %v4021_v41 = vpop.f32.mrf.mxu1  ;;  %v745_v40 = vld [vmem:[#allocation1 + $0x24] sm:$0xff] }
 0x2c3   : > { %v4033_v39 = vadd.f32 %v4032_v37, %v4020_v36  ;;  %v742_v36 = vld [vmem:[#allocation1 + $0x9] sm:$0xff]  ;;  %v743_v37 = vld [vmem:[#allocation1 + $0x12] sm:$0xff] }
 0x2c4   : > { %v746_v41 = vld [vmem:[#allocation1 + $0x2d] sm:$0xff] }
 0x2c5   : > { %v4046_v45 = vadd.f32 %v4045_v38, %v4033_v39  ;;  %v744_v39 = vld [vmem:[#allocation1 + $0x1b] sm:$0xff] }
 0x2c9   : > { %v4047_v58 = vpop.f32.mrf.mxu3  ;;  %v4058_v62 = vpop.f32.mrf.mxu0 }
 0x2ca   : > { %v4034_v57 = vpop.f32.mrf.mxu2  ;;  %v4071_v63 = vpop.f32.mrf.mxu1  ;;  %v4059_v0 = vadd.f32 %v4058_v62, %v4046_v45  ;;  %v6574_v45 = vld [vmem:[%s7604_s30 + $0x2c8] sm:$0xf] }
 0x2cc   : > { %v4072_v5 = vadd.f32 %v4071_v63, %v4059_v0  ;;  %4473 = vmatmul.bf16.vlgmr.msra.gmra.mxu0 %v731_v42  ;;  %4486 = vmatmul.bf16.vlgmr.msra.gmra.mxu1 %v732_v43  ;;  %v747_v42 = vld [vmem:[#allocation1 + $0x36] sm:$0xff]  ;;  %v748_v43 = vld [vmem:[#allocation1 + $0x3f] sm:$0xff] }
 0x2cd   : > { %4576 = vmatpush.bf16.xpose.msra.mxu0 %v6535_v3  ;;  %4589 = vmatpush.bf16.xpose.msra.mxu1 %v6539_v4 }
 0x2ce   : > { %4512 = vmatmul.bf16.vlgmr.msra.gmra.mxu3 %v734_v46  ;;  %v7107_v46 = vld [vmem:[%s7604_s30 + $0x6c4] sm:$0x10] }
 0x2cf   : > { %4499 = vmatmul.bf16.vlgmr.msra.gmra.mxu2 %v733_v44  ;;  %4615 = vmatpush.bf16.xpose.msra.mxu3 %v6547_v2  ;;  %v263_v44 = vld [vmem:[%s7598_s5 + $0xb0] sm:$0xff]  ;;  %v6575_v58 = vor.u32 %v7107_v46, %v6574_v45  ;;  %v7110_v45 = vld [vmem:[%s7604_s30 + $0x6dc] sm:$0x10]  ;;  %v6982_v46 = vld [vmem:[%s7604_s30 + $0x2e4] sm:$0xf] }
 0x2d0   : > { %4602 = vmatpush.bf16.xpose.msra.mxu2 %v6543_v1  ;;  %750 = vst [vmem:[#allocation1] ss:$9 sm:$0xff] %v263_v44 }
 0x2d1   : > { %v4097_v7 = vpop.f32.mrf.mxu3  ;;  %v4060_v9 = vpop.f32.mrf.mxu0 }
 0x2d2   : > { %v4084_v6 = vpop.f32.mrf.mxu2  ;;  %v4073_v10 = vpop.f32.mrf.mxu1  ;;  %v6582_v9 = vld [vmem:[%s7604_s30 + $0x2d0] sm:$0xf] }
 0x2d3   : > { %v4085_v8 = vadd.f32 %v4084_v6, %v4072_v5  ;;  %v6590_v5 = vld [vmem:[%s7604_s30 + $0x2d8] sm:$0xf]  ;;  %v6583_v20 = vor.u32 %v7108_v12, %v6582_v9 }
 0x2d4   : > { %v7109_v6 = vld [vmem:[%s7604_s30 + $0x6d4] sm:$0x10] }
 0x2d5   : > { %v4098_v11 = vadd.f32 %v4097_v7, %v4085_v8  ;;  %v6981_v7 = vld [vmem:[%s7604_s30 + $0x2dc] sm:$0xf] }
 0x2d6   : > { %v6592_v8 = vld [vmem:[%s7604_s30 + $0x6d8] sm:$0x10] }
 0x2d7   : > { %v6595_v19 = vor.u32 %v6981_v7, %v6592_v8  ;;  %v6616_v7 = vld [vmem:[%s7604_s30 + $0x6f0] sm:$0x10] }
 0x2d9   : > { %v4099_v18 = vpop.f32.mrf.mxu3  ;;  %v4110_v22 = vpop.f32.mrf.mxu0 }
 0x2da   : > { %v4086_v17 = vpop.f32.mrf.mxu2  ;;  %v4123_v23 = vpop.f32.mrf.mxu1  ;;  %v4111_v24 = vadd.f32 %v4110_v22, %v4098_v11  ;;  %v6591_v18 = vor.u32 %v7109_v6, %v6590_v5  ;;  %v7112_v5 = vld [vmem:[%s7604_s30 + $0x6ec] sm:$0x10]  ;;  %v6984_v6 = vld [vmem:[%s7604_s30 + $0x2f4] sm:$0xf] }
 0x2db   : > { %v6619_v14 = vor.u32 %v6984_v6, %v6616_v7 }
 0x2dc   : > { %v4124_v29 = vadd.f32 %v4123_v23, %v4111_v24  ;;  %4525 = vmatmul.bf16.vlgmr.msrb.gmra.mxu0 %v735_v47  ;;  %4538 = vmatmul.bf16.vlgmr.msrb.gmra.mxu1 %v736_v48  ;;  %v6979_v47 = vld [vmem:[%s7604_s30 + $0x2cc] sm:$0xf] }
 0x2dd   : > { %4628 = vmatpush.bf16.xpose.msrb.mxu0 %v6551_v27  ;;  %4641 = vmatpush.bf16.xpose.msrb.mxu1 %v6555_v28  ;;  %v6576_v48 = vld [vmem:[%s7604_s30 + $0x6c8] sm:$0x10]  ;;  %v751_v28 = vld [vmem:[#allocation1] sm:$0xff] }
 0x2de   : > { %4564 = vmatmul.bf16.vlgmr.msrb.gmra.mxu3 %v738_v50  ;;  %v6579_v59 = vor.u32 %v6979_v47, %v6576_v48  ;;  %v6600_v47 = vld [vmem:[%s7604_s30 + $0x6e0] sm:$0x10] }
 0x2df   : > { %4551 = vmatmul.bf16.vlgmr.msrb.gmra.mxu2 %v737_v49  ;;  %4667 = vmatpush.bf16.xpose.msrb.mxu3 %v6563_v26  ;;  %v6566_v49 = vld [vmem:[%s7604_s30 + $0x2c0] sm:$0xf]  ;;  %v6603_v54 = vor.u32 %v6982_v46, %v6600_v47 }
 0x2e0   : > { %4654 = vmatpush.bf16.xpose.msrb.mxu2 %v6559_v25  ;;  %v6567_v60 = vor.u32 %v7106_v52, %v6566_v49 }
 0x2e1   : > { %v4149_v31 = vpop.f32.mrf.mxu3  ;;  %v4112_v33 = vpop.f32.mrf.mxu0 }
 0x2e2   : > { %v4136_v30 = vpop.f32.mrf.mxu2  ;;  %v4125_v34 = vpop.f32.mrf.mxu1  ;;  %v755_v33 = vld [vmem:[#allocation1 + $0x24] sm:$0xff] }
 0x2e3   : > { %v4137_v32 = vadd.f32 %v4136_v30, %v4124_v29  ;;  %v752_v29 = vld [vmem:[#allocation1 + $0x9] sm:$0xff]  ;;  %v753_v30 = vld [vmem:[#allocation1 + $0x12] sm:$0xff] }
 0x2e4   : > { %v756_v34 = vld [vmem:[#allocation1 + $0x2d] sm:$0xff] }
 0x2e5   : > { %v4150_v38 = vadd.f32 %v4149_v31, %v4137_v32  ;;  %v754_v32 = vld [vmem:[#allocation1 + $0x1b] sm:$0xff] }
 0x2e9   : > { %v4151_v51 = vpop.f32.mrf.mxu3  ;;  %v4162_v55 = vpop.f32.mrf.mxu0 }
 0x2ea   : > { %v4138_v50 = vpop.f32.mrf.mxu2  ;;  %v4175_v56 = vpop.f32.mrf.mxu1  ;;  %v4163_v57 = vadd.f32 %v4162_v55, %v4150_v38  ;;  %v6606_v38 = vld [vmem:[%s7604_s30 + $0x2e8] sm:$0xf] }
 0x2ec   : > { %v4176_v62 = vadd.f32 %v4175_v56, %v4163_v57  ;;  %4577 = vmatmul.bf16.vlgmr.msra.gmra.mxu0 %v741_v35  ;;  %4590 = vmatmul.bf16.vlgmr.msra.gmra.mxu1 %v742_v36  ;;  %v757_v35 = vld [vmem:[#allocation1 + $0x36] sm:$0xff]  ;;  %v758_v36 = vld [vmem:[#allocation1 + $0x3f] sm:$0xff] }
 0x2ed   : > { %4680 = vmatpush.bf16.xpose.msra.mxu0 %v6567_v60  ;;  %4693 = vmatpush.bf16.xpose.msra.mxu1 %v6571_v61 }
 0x2ee   : > { %4616 = vmatmul.bf16.vlgmr.msra.gmra.mxu3 %v744_v39  ;;  %v7111_v39 = vld [vmem:[%s7604_s30 + $0x6e4] sm:$0x10] }
 0x2ef   : > { %4603 = vmatmul.bf16.vlgmr.msra.gmra.mxu2 %v743_v37  ;;  %4719 = vmatpush.bf16.xpose.msra.mxu3 %v6579_v59  ;;  %v264_v37 = vld [vmem:[%s7598_s5 + $0xb8] sm:$0xff]  ;;  %v6607_v51 = vor.u32 %v7111_v39, %v6606_v38  ;;  %v7114_v38 = vld [vmem:[%s7604_s30 + $0x6fc] sm:$0x10]  ;;  %v6986_v39 = vld [vmem:[%s7604_s30 + $0x304] sm:$0xf] }
 0x2f0   : > { %4706 = vmatpush.bf16.xpose.msra.mxu2 %v6575_v58  ;;  %760 = vst [vmem:[#allocation1] ss:$9 sm:$0xff] %v264_v37 }
 0x2f1   : > { %v4201_v0 = vpop.f32.mrf.mxu3  ;;  %v4164_v2 = vpop.f32.mrf.mxu0 }
 0x2f2   : > { %v4188_v63 = vpop.f32.mrf.mxu2  ;;  %v4177_v3 = vpop.f32.mrf.mxu1  ;;  %v6614_v2 = vld [vmem:[%s7604_s30 + $0x2f0] sm:$0xf] }
 0x2f3   : > { %v4189_v1 = vadd.f32 %v4188_v63, %v4176_v62  ;;  %v6622_v62 = vld [vmem:[%s7604_s30 + $0x2f8] sm:$0xf]  ;;  %v6615_v13 = vor.u32 %v7112_v5, %v6614_v2 }
 0x2f4   : > { %v7113_v63 = vld [vmem:[%s7604_s30 + $0x6f4] sm:$0x10] }
 0x2f5   : > { %v4202_v4 = vadd.f32 %v4201_v0, %v4189_v1  ;;  %v6985_v0 = vld [vmem:[%s7604_s30 + $0x2fc] sm:$0xf] }
 0x2f6   : > { %v6624_v1 = vld [vmem:[%s7604_s30 + $0x6f8] sm:$0x10] }
 0x2f7   : > { %v6627_v12 = vor.u32 %v6985_v0, %v6624_v1  ;;  %v6648_v0 = vld [vmem:[%s7604_s30 + $0x710] sm:$0x10] }
 0x2f9   : > { %v4203_v11 = vpop.f32.mrf.mxu3  ;;  %v4214_v15 = vpop.f32.mrf.mxu0 }
 0x2fa   : > { %v4190_v10 = vpop.f32.mrf.mxu2  ;;  %v4227_v16 = vpop.f32.mrf.mxu1  ;;  %v4215_v17 = vadd.f32 %v4214_v15, %v4202_v4  ;;  %v6623_v11 = vor.u32 %v7113_v63, %v6622_v62  ;;  %v7116_v62 = vld [vmem:[%s7604_s30 + $0x70c] sm:$0x10]  ;;  %v6988_v63 = vld [vmem:[%s7604_s30 + $0x314] sm:$0xf] }
 0x2fb   : > { %v6651_v7 = vor.u32 %v6988_v63, %v6648_v0 }
 0x2fc   : > { %v4228_v22 = vadd.f32 %v4227_v16, %v4215_v17  ;;  %4629 = vmatmul.bf16.vlgmr.msrb.gmra.mxu0 %v745_v40  ;;  %4642 = vmatmul.bf16.vlgmr.msrb.gmra.mxu1 %v746_v41  ;;  %v6983_v40 = vld [vmem:[%s7604_s30 + $0x2ec] sm:$0xf] }
 0x2fd   : > { %4732 = vmatpush.bf16.xpose.msrb.mxu0 %v6583_v20  ;;  %4745 = vmatpush.bf16.xpose.msrb.mxu1 %v6587_v21  ;;  %v6608_v41 = vld [vmem:[%s7604_s30 + $0x6e8] sm:$0x10]  ;;  %v761_v21 = vld [vmem:[#allocation1] sm:$0xff] }
 0x2fe   : > { %4668 = vmatmul.bf16.vlgmr.msrb.gmra.mxu3 %v748_v43  ;;  %v6611_v52 = vor.u32 %v6983_v40, %v6608_v41  ;;  %v6632_v40 = vld [vmem:[%s7604_s30 + $0x700] sm:$0x10] }
 0x2ff   : > { %4655 = vmatmul.bf16.vlgmr.msrb.gmra.mxu2 %v747_v42  ;;  %4771 = vmatpush.bf16.xpose.msrb.mxu3 %v6595_v19  ;;  %v6598_v42 = vld [vmem:[%s7604_s30 + $0x2e0] sm:$0xf]  ;;  %v6635_v47 = vor.u32 %v6986_v39, %v6632_v40 }
 0x300   : > { %4758 = vmatpush.bf16.xpose.msrb.mxu2 %v6591_v18  ;;  %v6599_v53 = vor.u32 %v7110_v45, %v6598_v42 }
 0x301   : > { %v4253_v24 = vpop.f32.mrf.mxu3  ;;  %v4216_v26 = vpop.f32.mrf.mxu0 }
 0x302   : > { %v4240_v23 = vpop.f32.mrf.mxu2  ;;  %v4229_v27 = vpop.f32.mrf.mxu1  ;;  %v765_v26 = vld [vmem:[#allocation1 + $0x24] sm:$0xff] }
 0x303   : > { %v4241_v25 = vadd.f32 %v4240_v23, %v4228_v22  ;;  %v762_v22 = vld [vmem:[#allocation1 + $0x9] sm:$0xff]  ;;  %v763_v23 = vld [vmem:[#allocation1 + $0x12] sm:$0xff] }
 0x304   : > { %v766_v27 = vld [vmem:[#allocation1 + $0x2d] sm:$0xff] }
 0x305   : > { %v4254_v31 = vadd.f32 %v4253_v24, %v4241_v25  ;;  %v764_v25 = vld [vmem:[#allocation1 + $0x1b] sm:$0xff] }
 0x309   : > { %v4255_v44 = vpop.f32.mrf.mxu3  ;;  %v4266_v48 = vpop.f32.mrf.mxu0 }
 0x30a   : > { %v4242_v43 = vpop.f32.mrf.mxu2  ;;  %v4279_v49 = vpop.f32.mrf.mxu1  ;;  %v4267_v50 = vadd.f32 %v4266_v48, %v4254_v31  ;;  %v6638_v31 = vld [vmem:[%s7604_s30 + $0x308] sm:$0xf] }
 0x30c   : > { %v4280_v55 = vadd.f32 %v4279_v49, %v4267_v50  ;;  %4681 = vmatmul.bf16.vlgmr.msra.gmra.mxu0 %v751_v28  ;;  %4694 = vmatmul.bf16.vlgmr.msra.gmra.mxu1 %v752_v29  ;;  %v767_v28 = vld [vmem:[#allocation1 + $0x36] sm:$0xff]  ;;  %v768_v29 = vld [vmem:[#allocation1 + $0x3f] sm:$0xff] }
 0x30d   : > { %4784 = vmatpush.bf16.xpose.msra.mxu0 %v6599_v53  ;;  %4797 = vmatpush.bf16.xpose.msra.mxu1 %v6603_v54 }
 0x30e   : > { %4720 = vmatmul.bf16.vlgmr.msra.gmra.mxu3 %v754_v32  ;;  %v7115_v32 = vld [vmem:[%s7604_s30 + $0x704] sm:$0x10] }
 0x30f   : > { %4707 = vmatmul.bf16.vlgmr.msra.gmra.mxu2 %v753_v30  ;;  %4823 = vmatpush.bf16.xpose.msra.mxu3 %v6611_v52  ;;  %v265_v30 = vld [vmem:[%s7598_s5 + $0xc0] sm:$0xff]  ;;  %v6639_v44 = vor.u32 %v7115_v32, %v6638_v31 }
 0x310   : > { %4810 = vmatpush.bf16.xpose.msra.mxu2 %v6607_v51  ;;  %770 = vst [vmem:[#allocation1] ss:$9 sm:$0xff] %v265_v30  ;;  %v7118_v31 = vld [vmem:[%s7604_s30 + $0x71c] sm:$0x10]  ;;  %v6990_v32 = vld [vmem:[%s7604_s30 + $0x324] sm:$0xf] }
 0x311   : > { %v4305_v57 = vpop.f32.mrf.mxu3  ;;  %v4268_v59 = vpop.f32.mrf.mxu0 }
 0x312   : > { %v4292_v56 = vpop.f32.mrf.mxu2  ;;  %v4281_v60 = vpop.f32.mrf.mxu1  ;;  %v6646_v59 = vld [vmem:[%s7604_s30 + $0x310] sm:$0xf] }
 0x313   : > { %v4293_v58 = vadd.f32 %v4292_v56, %v4280_v55  ;;  %v6654_v55 = vld [vmem:[%s7604_s30 + $0x318] sm:$0xf]  ;;  %v6647_v6 = vor.u32 %v7116_v62, %v6646_v59 }
 0x314   : > { %v7117_v56 = vld [vmem:[%s7604_s30 + $0x714] sm:$0x10] }
 0x315   : > { %v4306_v61 = vadd.f32 %v4305_v57, %v4293_v58  ;;  %v6989_v57 = vld [vmem:[%s7604_s30 + $0x31c] sm:$0xf] }
 0x316   : > { %v6656_v58 = vld [vmem:[%s7604_s30 + $0x718] sm:$0x10] }
 0x317   : > { %v6659_v5 = vor.u32 %v6989_v57, %v6656_v58  ;;  %v6680_v57 = vld [vmem:[%s7604_s30 + $0x730] sm:$0x10] }
 0x319   : > { %v4307_v4 = vpop.f32.mrf.mxu3  ;;  %v4318_v8 = vpop.f32.mrf.mxu0 }
 0x31a   : > { %v4294_v3 = vpop.f32.mrf.mxu2  ;;  %v4331_v9 = vpop.f32.mrf.mxu1  ;;  %v4319_v10 = vadd.f32 %v4318_v8, %v4306_v61  ;;  %v6655_v4 = vor.u32 %v7117_v56, %v6654_v55  ;;  %v7120_v55 = vld [vmem:[%s7604_s30 + $0x72c] sm:$0x10]  ;;  %v6992_v56 = vld [vmem:[%s7604_s30 + $0x334] sm:$0xf] }
 0x31b   : > { %v6683_v0 = vor.u32 %v6992_v56, %v6680_v57 }
 0x31c   : > { %v4332_v15 = vadd.f32 %v4331_v9, %v4319_v10  ;;  %4733 = vmatmul.bf16.vlgmr.msrb.gmra.mxu0 %v755_v33  ;;  %4746 = vmatmul.bf16.vlgmr.msrb.gmra.mxu1 %v756_v34  ;;  %v6987_v33 = vld [vmem:[%s7604_s30 + $0x30c] sm:$0xf] }
 0x31d   : > { %4836 = vmatpush.bf16.xpose.msrb.mxu0 %v6615_v13  ;;  %4849 = vmatpush.bf16.xpose.msrb.mxu1 %v6619_v14  ;;  %v6640_v34 = vld [vmem:[%s7604_s30 + $0x708] sm:$0x10]  ;;  %v771_v14 = vld [vmem:[#allocation1] sm:$0xff] }
 0x31e   : > { %4772 = vmatmul.bf16.vlgmr.msrb.gmra.mxu3 %v758_v36  ;;  %v6643_v45 = vor.u32 %v6987_v33, %v6640_v34  ;;  %v6664_v33 = vld [vmem:[%s7604_s30 + $0x720] sm:$0x10] }
 0x31f   : > { %4759 = vmatmul.bf16.vlgmr.msrb.gmra.mxu2 %v757_v35  ;;  %4875 = vmatpush.bf16.xpose.msrb.mxu3 %v6627_v12  ;;  %v6630_v35 = vld [vmem:[%s7604_s30 + $0x300] sm:$0xf]  ;;  %v6667_v40 = vor.u32 %v6990_v32, %v6664_v33 }
 0x320   : > { %4862 = vmatpush.bf16.xpose.msrb.mxu2 %v6623_v11  ;;  %v6631_v46 = vor.u32 %v7114_v38, %v6630_v35 }
 0x321   : > { %v4357_v17 = vpop.f32.mrf.mxu3  ;;  %v4320_v19 = vpop.f32.mrf.mxu0 }
 0x322   : > { %v4344_v16 = vpop.f32.mrf.mxu2  ;;  %v4333_v20 = vpop.f32.mrf.mxu1  ;;  %v775_v19 = vld [vmem:[#allocation1 + $0x24] sm:$0xff] }
 0x323   : > { %v4345_v18 = vadd.f32 %v4344_v16, %v4332_v15  ;;  %v772_v15 = vld [vmem:[#allocation1 + $0x9] sm:$0xff]  ;;  %v773_v16 = vld [vmem:[#allocation1 + $0x12] sm:$0xff] }
 0x324   : > { %v776_v20 = vld [vmem:[#allocation1 + $0x2d] sm:$0xff] }
 0x325   : > { %v4358_v24 = vadd.f32 %v4357_v17, %v4345_v18  ;;  %v774_v18 = vld [vmem:[#allocation1 + $0x1b] sm:$0xff] }
 0x329   : > { %v4359_v37 = vpop.f32.mrf.mxu3  ;;  %v4370_v41 = vpop.f32.mrf.mxu0 }
 0x32a   : > { %v4346_v36 = vpop.f32.mrf.mxu2  ;;  %v4383_v42 = vpop.f32.mrf.mxu1  ;;  %v4371_v43 = vadd.f32 %v4370_v41, %v4358_v24  ;;  %v6670_v24 = vld [vmem:[%s7604_s30 + $0x328] sm:$0xf] }
 0x32c   : > { %v4384_v48 = vadd.f32 %v4383_v42, %v4371_v43  ;;  %4785 = vmatmul.bf16.vlgmr.msra.gmra.mxu0 %v761_v21  ;;  %4798 = vmatmul.bf16.vlgmr.msra.gmra.mxu1 %v762_v22  ;;  %v777_v21 = vld [vmem:[#allocation1 + $0x36] sm:$0xff]  ;;  %v778_v22 = vld [vmem:[#allocation1 + $0x3f] sm:$0xff] }
 0x32d   : > { %4888 = vmatpush.bf16.xpose.msra.mxu0 %v6631_v46  ;;  %4901 = vmatpush.bf16.xpose.msra.mxu1 %v6635_v47 }
 0x32e   : > { %4824 = vmatmul.bf16.vlgmr.msra.gmra.mxu3 %v764_v25  ;;  %v7119_v25 = vld [vmem:[%s7604_s30 + $0x724] sm:$0x10] }
 0x32f   : > { %4811 = vmatmul.bf16.vlgmr.msra.gmra.mxu2 %v763_v23  ;;  %4927 = vmatpush.bf16.xpose.msra.mxu3 %v6643_v45  ;;  %v266_v23 = vld [vmem:[%s7598_s5 + $0xc8] sm:$0xff]  ;;  %v6671_v37 = vor.u32 %v7119_v25, %v6670_v24  ;;  %v7122_v24 = vld [vmem:[%s7604_s30 + $0x73c] sm:$0x10]  ;;  %v6994_v25 = vld [vmem:[%s7604_s30 + $0x344] sm:$0xf] }
 0x330   : > { %4914 = vmatpush.bf16.xpose.msra.mxu2 %v6639_v44  ;;  %780 = vst [vmem:[#allocation1] ss:$9 sm:$0xff] %v266_v23 }
 0x331   : > { %v4409_v50 = vpop.f32.mrf.mxu3  ;;  %v4372_v52 = vpop.f32.mrf.mxu0 }
 0x332   : > { %v4396_v49 = vpop.f32.mrf.mxu2  ;;  %v4385_v53 = vpop.f32.mrf.mxu1  ;;  %v6678_v52 = vld [vmem:[%s7604_s30 + $0x330] sm:$0xf] }
 0x333   : > { %v4397_v51 = vadd.f32 %v4396_v49, %v4384_v48  ;;  %v6686_v48 = vld [vmem:[%s7604_s30 + $0x338] sm:$0xf]  ;;  %v6679_v63 = vor.u32 %v7120_v55, %v6678_v52 }
 0x334   : > { %v7121_v49 = vld [vmem:[%s7604_s30 + $0x734] sm:$0x10] }
 0x335   : > { %v4410_v54 = vadd.f32 %v4409_v50, %v4397_v51  ;;  %v6993_v50 = vld [vmem:[%s7604_s30 + $0x33c] sm:$0xf] }
 0x336   : > { %v6688_v51 = vld [vmem:[%s7604_s30 + $0x738] sm:$0x10] }
 0x337   : > { %v6691_v62 = vor.u32 %v6993_v50, %v6688_v51  ;;  %v6712_v50 = vld [vmem:[%s7604_s30 + $0x750] sm:$0x10] }
 0x339   : > { %v4411_v61 = vpop.f32.mrf.mxu3  ;;  %v4422_v1 = vpop.f32.mrf.mxu0 }
 0x33a   : > { %v4398_v60 = vpop.f32.mrf.mxu2  ;;  %v4435_v2 = vpop.f32.mrf.mxu1  ;;  %v4423_v3 = vadd.f32 %v4422_v1, %v4410_v54  ;;  %v6687_v61 = vor.u32 %v7121_v49, %v6686_v48  ;;  %v7124_v48 = vld [vmem:[%s7604_s30 + $0x74c] sm:$0x10]  ;;  %v6996_v49 = vld [vmem:[%s7604_s30 + $0x354] sm:$0xf] }
 0x33b   : > { %v6715_v57 = vor.u32 %v6996_v49, %v6712_v50 }
 0x33c   : > { %v4436_v8 = vadd.f32 %v4435_v2, %v4423_v3  ;;  %4837 = vmatmul.bf16.vlgmr.msrb.gmra.mxu0 %v765_v26  ;;  %4850 = vmatmul.bf16.vlgmr.msrb.gmra.mxu1 %v766_v27  ;;  %v6991_v26 = vld [vmem:[%s7604_s30 + $0x32c] sm:$0xf] }
 0x33d   : > { %4940 = vmatpush.bf16.xpose.msrb.mxu0 %v6647_v6  ;;  %4953 = vmatpush.bf16.xpose.msrb.mxu1 %v6651_v7  ;;  %v6672_v27 = vld [vmem:[%s7604_s30 + $0x728] sm:$0x10]  ;;  %v781_v7 = vld [vmem:[#allocation1] sm:$0xff] }
 0x33e   : > { %4876 = vmatmul.bf16.vlgmr.msrb.gmra.mxu3 %v768_v29  ;;  %v6675_v38 = vor.u32 %v6991_v26, %v6672_v27  ;;  %v6696_v26 = vld [vmem:[%s7604_s30 + $0x740] sm:$0x10] }
 0x33f   : > { %4863 = vmatmul.bf16.vlgmr.msrb.gmra.mxu2 %v767_v28  ;;  %4979 = vmatpush.bf16.xpose.msrb.mxu3 %v6659_v5  ;;  %v6662_v28 = vld [vmem:[%s7604_s30 + $0x320] sm:$0xf]  ;;  %v6699_v33 = vor.u32 %v6994_v25, %v6696_v26 }
 0x340   : > { %4966 = vmatpush.bf16.xpose.msrb.mxu2 %v6655_v4  ;;  %v6663_v39 = vor.u32 %v7118_v31, %v6662_v28 }
 0x341   : > { %v4461_v10 = vpop.f32.mrf.mxu3  ;;  %v4424_v12 = vpop.f32.mrf.mxu0 }
 0x342   : > { %v4448_v9 = vpop.f32.mrf.mxu2  ;;  %v4437_v13 = vpop.f32.mrf.mxu1  ;;  %v785_v12 = vld [vmem:[#allocation1 + $0x24] sm:$0xff] }
 0x343   : > { %v4449_v11 = vadd.f32 %v4448_v9, %v4436_v8  ;;  %v782_v8 = vld [vmem:[#allocation1 + $0x9] sm:$0xff]  ;;  %v783_v9 = vld [vmem:[#allocation1 + $0x12] sm:$0xff] }
 0x344   : > { %v786_v13 = vld [vmem:[#allocation1 + $0x2d] sm:$0xff] }
 0x345   : > { %v4462_v17 = vadd.f32 %v4461_v10, %v4449_v11  ;;  %v784_v11 = vld [vmem:[#allocation1 + $0x1b] sm:$0xff] }
 0x349   : > { %v4463_v30 = vpop.f32.mrf.mxu3  ;;  %v4474_v34 = vpop.f32.mrf.mxu0 }
 0x34a   : > { %v4450_v29 = vpop.f32.mrf.mxu2  ;;  %v4487_v35 = vpop.f32.mrf.mxu1  ;;  %v4475_v36 = vadd.f32 %v4474_v34, %v4462_v17  ;;  %v6702_v17 = vld [vmem:[%s7604_s30 + $0x348] sm:$0xf] }
 0x34c   : > { %v4488_v41 = vadd.f32 %v4487_v35, %v4475_v36  ;;  %4889 = vmatmul.bf16.vlgmr.msra.gmra.mxu0 %v771_v14  ;;  %4902 = vmatmul.bf16.vlgmr.msra.gmra.mxu1 %v772_v15  ;;  %v787_v14 = vld [vmem:[#allocation1 + $0x36] sm:$0xff]  ;;  %v788_v15 = vld [vmem:[#allocation1 + $0x3f] sm:$0xff] }
 0x34d   : > { %4992 = vmatpush.bf16.xpose.msra.mxu0 %v6663_v39  ;;  %5005 = vmatpush.bf16.xpose.msra.mxu1 %v6667_v40 }
 0x34e   : > { %4928 = vmatmul.bf16.vlgmr.msra.gmra.mxu3 %v774_v18  ;;  %v7123_v18 = vld [vmem:[%s7604_s30 + $0x744] sm:$0x10] }
 0x34f   : > { %4915 = vmatmul.bf16.vlgmr.msra.gmra.mxu2 %v773_v16  ;;  %5031 = vmatpush.bf16.xpose.msra.mxu3 %v6675_v38  ;;  %v267_v16 = vld [vmem:[%s7598_s5 + $0xd0] sm:$0xff]  ;;  %v6703_v30 = vor.u32 %v7123_v18, %v6702_v17  ;;  %v7126_v17 = vld [vmem:[%s7604_s30 + $0x75c] sm:$0x10]  ;;  %v6998_v18 = vld [vmem:[%s7604_s30 + $0x364] sm:$0xf] }
 0x350   : > { %5018 = vmatpush.bf16.xpose.msra.mxu2 %v6671_v37  ;;  %790 = vst [vmem:[#allocation1] ss:$9 sm:$0xff] %v267_v16 }
 0x351   : > { %v4513_v43 = vpop.f32.mrf.mxu3  ;;  %v4476_v45 = vpop.f32.mrf.mxu0 }
 0x352   : > { %v4500_v42 = vpop.f32.mrf.mxu2  ;;  %v4489_v46 = vpop.f32.mrf.mxu1  ;;  %v6710_v45 = vld [vmem:[%s7604_s30 + $0x350] sm:$0xf] }
 0x353   : > { %v4501_v44 = vadd.f32 %v4500_v42, %v4488_v41  ;;  %v6718_v41 = vld [vmem:[%s7604_s30 + $0x358] sm:$0xf]  ;;  %v6711_v56 = vor.u32 %v7124_v48, %v6710_v45 }
 0x354   : > { %v7125_v42 = vld [vmem:[%s7604_s30 + $0x754] sm:$0x10] }
 0x355   : > { %v4514_v47 = vadd.f32 %v4513_v43, %v4501_v44  ;;  %v6997_v43 = vld [vmem:[%s7604_s30 + $0x35c] sm:$0xf] }
 0x356   : > { %v6720_v44 = vld [vmem:[%s7604_s30 + $0x758] sm:$0x10] }
 0x357   : > { %v6723_v55 = vor.u32 %v6997_v43, %v6720_v44  ;;  %v6744_v43 = vld [vmem:[%s7604_s30 + $0x770] sm:$0x10] }
 0x359   : > { %v4515_v54 = vpop.f32.mrf.mxu3  ;;  %v4526_v58 = vpop.f32.mrf.mxu0 }
 0x35a   : > { %v4502_v53 = vpop.f32.mrf.mxu2  ;;  %v4539_v59 = vpop.f32.mrf.mxu1  ;;  %v4527_v60 = vadd.f32 %v4526_v58, %v4514_v47  ;;  %v6719_v54 = vor.u32 %v7125_v42, %v6718_v41  ;;  %v7128_v41 = vld [vmem:[%s7604_s30 + $0x76c] sm:$0x10]  ;;  %v7000_v42 = vld [vmem:[%s7604_s30 + $0x374] sm:$0xf] }
 0x35b   : > { %v6747_v50 = vor.u32 %v7000_v42, %v6744_v43 }
 0x35c   : > { %v4540_v1 = vadd.f32 %v4539_v59, %v4527_v60  ;;  %4941 = vmatmul.bf16.vlgmr.msrb.gmra.mxu0 %v775_v19  ;;  %4954 = vmatmul.bf16.vlgmr.msrb.gmra.mxu1 %v776_v20  ;;  %v6995_v19 = vld [vmem:[%s7604_s30 + $0x34c] sm:$0xf] }
 0x35d   : > { %5044 = vmatpush.bf16.xpose.msrb.mxu0 %v6679_v63  ;;  %5057 = vmatpush.bf16.xpose.msrb.mxu1 %v6683_v0  ;;  %v6704_v20 = vld [vmem:[%s7604_s30 + $0x748] sm:$0x10]  ;;  %v791_v0 = vld [vmem:[#allocation1] sm:$0xff] }
 0x35e   : > { %4980 = vmatmul.bf16.vlgmr.msrb.gmra.mxu3 %v778_v22  ;;  %v6707_v31 = vor.u32 %v6995_v19, %v6704_v20  ;;  %v6728_v19 = vld [vmem:[%s7604_s30 + $0x760] sm:$0x10] }
 0x35f   : > { %4967 = vmatmul.bf16.vlgmr.msrb.gmra.mxu2 %v777_v21  ;;  %5083 = vmatpush.bf16.xpose.msrb.mxu3 %v6691_v62  ;;  %v6694_v21 = vld [vmem:[%s7604_s30 + $0x340] sm:$0xf]  ;;  %v6731_v26 = vor.u32 %v6998_v18, %v6728_v19 }
 0x360   : > { %5070 = vmatpush.bf16.xpose.msrb.mxu2 %v6687_v61  ;;  %v6695_v32 = vor.u32 %v7122_v24, %v6694_v21 }
 0x361   : > { %v4565_v3 = vpop.f32.mrf.mxu3  ;;  %v4528_v5 = vpop.f32.mrf.mxu0 }
 0x362   : > { %v4552_v2 = vpop.f32.mrf.mxu2  ;;  %v4541_v6 = vpop.f32.mrf.mxu1  ;;  %v795_v5 = vld [vmem:[#allocation1 + $0x24] sm:$0xff] }
 0x363   : > { %v4553_v4 = vadd.f32 %v4552_v2, %v4540_v1  ;;  %v792_v1 = vld [vmem:[#allocation1 + $0x9] sm:$0xff]  ;;  %v793_v2 = vld [vmem:[#allocation1 + $0x12] sm:$0xff] }
 0x364   : > { %v796_v6 = vld [vmem:[#allocation1 + $0x2d] sm:$0xff] }
 0x365   : > { %v4566_v10 = vadd.f32 %v4565_v3, %v4553_v4  ;;  %v794_v4 = vld [vmem:[#allocation1 + $0x1b] sm:$0xff] }
 0x369   : > { %v4567_v23 = vpop.f32.mrf.mxu3  ;;  %v4578_v27 = vpop.f32.mrf.mxu0 }
 0x36a   : > { %v4554_v22 = vpop.f32.mrf.mxu2  ;;  %v4591_v28 = vpop.f32.mrf.mxu1  ;;  %v4579_v29 = vadd.f32 %v4578_v27, %v4566_v10  ;;  %v6734_v10 = vld [vmem:[%s7604_s30 + $0x368] sm:$0xf] }
 0x36c   : > { %v4592_v34 = vadd.f32 %v4591_v28, %v4579_v29  ;;  %4993 = vmatmul.bf16.vlgmr.msra.gmra.mxu0 %v781_v7  ;;  %5006 = vmatmul.bf16.vlgmr.msra.gmra.mxu1 %v782_v8  ;;  %v797_v7 = vld [vmem:[#allocation1 + $0x36] sm:$0xff]  ;;  %v798_v8 = vld [vmem:[#allocation1 + $0x3f] sm:$0xff] }
 0x36d   : > { %5096 = vmatpush.bf16.xpose.msra.mxu0 %v6695_v32  ;;  %5109 = vmatpush.bf16.xpose.msra.mxu1 %v6699_v33 }
 0x36e   : > { %5032 = vmatmul.bf16.vlgmr.msra.gmra.mxu3 %v784_v11  ;;  %v7127_v11 = vld [vmem:[%s7604_s30 + $0x764] sm:$0x10] }
 0x36f   : > { %5019 = vmatmul.bf16.vlgmr.msra.gmra.mxu2 %v783_v9  ;;  %5135 = vmatpush.bf16.xpose.msra.mxu3 %v6707_v31  ;;  %v268_v9 = vld [vmem:[%s7598_s5 + $0xd8] sm:$0xff]  ;;  %v6735_v23 = vor.u32 %v7127_v11, %v6734_v10  ;;  %v7130_v10 = vld [vmem:[%s7604_s30 + $0x77c] sm:$0x10]  ;;  %v7002_v11 = vld [vmem:[%s7604_s30 + $0x384] sm:$0xf] }
 0x370   : > { %5122 = vmatpush.bf16.xpose.msra.mxu2 %v6703_v30  ;;  %800 = vst [vmem:[#allocation1] ss:$9 sm:$0xff] %v268_v9 }
 0x371   : > { %v4617_v36 = vpop.f32.mrf.mxu3  ;;  %v4580_v38 = vpop.f32.mrf.mxu0 }
 0x372   : > { %v4604_v35 = vpop.f32.mrf.mxu2  ;;  %v4593_v39 = vpop.f32.mrf.mxu1  ;;  %v6742_v38 = vld [vmem:[%s7604_s30 + $0x370] sm:$0xf] }
 0x373   : > { %v4605_v37 = vadd.f32 %v4604_v35, %v4592_v34  ;;  %v6750_v34 = vld [vmem:[%s7604_s30 + $0x378] sm:$0xf]  ;;  %v6743_v49 = vor.u32 %v7128_v41, %v6742_v38 }
 0x374   : > { %v7129_v35 = vld [vmem:[%s7604_s30 + $0x774] sm:$0x10] }
 0x375   : > { %v4618_v40 = vadd.f32 %v4617_v36, %v4605_v37  ;;  %v7001_v36 = vld [vmem:[%s7604_s30 + $0x37c] sm:$0xf] }
 0x376   : > { %v6752_v37 = vld [vmem:[%s7604_s30 + $0x778] sm:$0x10] }
 0x377   : > { %v6755_v48 = vor.u32 %v7001_v36, %v6752_v37  ;;  %v6776_v36 = vld [vmem:[%s7604_s30 + $0x790] sm:$0x10] }
 0x379   : > { %v4619_v47 = vpop.f32.mrf.mxu3  ;;  %v4630_v51 = vpop.f32.mrf.mxu0 }
 0x37a   : > { %v4606_v46 = vpop.f32.mrf.mxu2  ;;  %v4643_v52 = vpop.f32.mrf.mxu1  ;;  %v4631_v53 = vadd.f32 %v4630_v51, %v4618_v40  ;;  %v6751_v47 = vor.u32 %v7129_v35, %v6750_v34  ;;  %v7132_v34 = vld [vmem:[%s7604_s30 + $0x78c] sm:$0x10]  ;;  %v7004_v35 = vld [vmem:[%s7604_s30 + $0x394] sm:$0xf] }
 0x37b   : > { %v6779_v43 = vor.u32 %v7004_v35, %v6776_v36 }
 0x37c   : > { %v4644_v58 = vadd.f32 %v4643_v52, %v4631_v53  ;;  %5045 = vmatmul.bf16.vlgmr.msrb.gmra.mxu0 %v785_v12  ;;  %5058 = vmatmul.bf16.vlgmr.msrb.gmra.mxu1 %v786_v13  ;;  %v6999_v12 = vld [vmem:[%s7604_s30 + $0x36c] sm:$0xf] }
 0x37d   : > { %5148 = vmatpush.bf16.xpose.msrb.mxu0 %v6711_v56  ;;  %5161 = vmatpush.bf16.xpose.msrb.mxu1 %v6715_v57  ;;  %v6736_v13 = vld [vmem:[%s7604_s30 + $0x768] sm:$0x10]  ;;  %v801_v57 = vld [vmem:[#allocation1] sm:$0xff] }
 0x37e   : > { %5084 = vmatmul.bf16.vlgmr.msrb.gmra.mxu3 %v788_v15  ;;  %v6739_v24 = vor.u32 %v6999_v12, %v6736_v13  ;;  %v6760_v12 = vld [vmem:[%s7604_s30 + $0x780] sm:$0x10] }
 0x37f   : > { %5071 = vmatmul.bf16.vlgmr.msrb.gmra.mxu2 %v787_v14  ;;  %5187 = vmatpush.bf16.xpose.msrb.mxu3 %v6723_v55  ;;  %v6726_v14 = vld [vmem:[%s7604_s30 + $0x360] sm:$0xf]  ;;  %v6763_v19 = vor.u32 %v7002_v11, %v6760_v12 }
 0x380   : > { %5174 = vmatpush.bf16.xpose.msrb.mxu2 %v6719_v54  ;;  %v6727_v25 = vor.u32 %v7126_v17, %v6726_v14 }
 0x381   : > { %v4669_v60 = vpop.f32.mrf.mxu3  ;;  %v4632_v62 = vpop.f32.mrf.mxu0 }
 0x382   : > { %v4656_v59 = vpop.f32.mrf.mxu2  ;;  %v4645_v63 = vpop.f32.mrf.mxu1  ;;  %v805_v62 = vld [vmem:[#allocation1 + $0x24] sm:$0xff] }
 0x383   : > { %v4657_v61 = vadd.f32 %v4656_v59, %v4644_v58  ;;  %v802_v58 = vld [vmem:[#allocation1 + $0x9] sm:$0xff]  ;;  %v803_v59 = vld [vmem:[#allocation1 + $0x12] sm:$0xff] }
 0x384   : > { %v806_v63 = vld [vmem:[#allocation1 + $0x2d] sm:$0xff] }
 0x385   : > { %v4670_v3 = vadd.f32 %v4669_v60, %v4657_v61  ;;  %v804_v61 = vld [vmem:[#allocation1 + $0x1b] sm:$0xff] }
 0x389   : > { %v4671_v16 = vpop.f32.mrf.mxu3  ;;  %v4682_v20 = vpop.f32.mrf.mxu0 }
 0x38a   : > { %v4658_v15 = vpop.f32.mrf.mxu2  ;;  %v4695_v21 = vpop.f32.mrf.mxu1  ;;  %v4683_v22 = vadd.f32 %v4682_v20, %v4670_v3  ;;  %v6766_v3 = vld [vmem:[%s7604_s30 + $0x388] sm:$0xf] }
 0x38c   : > { %v4696_v27 = vadd.f32 %v4695_v21, %v4683_v22  ;;  %5097 = vmatmul.bf16.vlgmr.msra.gmra.mxu0 %v791_v0  ;;  %5110 = vmatmul.bf16.vlgmr.msra.gmra.mxu1 %v792_v1  ;;  %v807_v0 = vld [vmem:[#allocation1 + $0x36] sm:$0xff]  ;;  %v808_v1 = vld [vmem:[#allocation1 + $0x3f] sm:$0xff] }
 0x38d   : > { %5200 = vmatpush.bf16.xpose.msra.mxu0 %v6727_v25  ;;  %5213 = vmatpush.bf16.xpose.msra.mxu1 %v6731_v26 }
 0x38e   : > { %5136 = vmatmul.bf16.vlgmr.msra.gmra.mxu3 %v794_v4  ;;  %v7131_v4 = vld [vmem:[%s7604_s30 + $0x784] sm:$0x10] }
 0x38f   : > { %5123 = vmatmul.bf16.vlgmr.msra.gmra.mxu2 %v793_v2  ;;  %5239 = vmatpush.bf16.xpose.msra.mxu3 %v6739_v24  ;;  %v269_v2 = vld [vmem:[%s7598_s5 + $0xe0] sm:$0xff]  ;;  %v6767_v16 = vor.u32 %v7131_v4, %v6766_v3 }
 0x390   : > { %5226 = vmatpush.bf16.xpose.msra.mxu2 %v6735_v23  ;;  %810 = vst [vmem:[#allocation1] ss:$9 sm:$0xff] %v269_v2  ;;  %v7134_v3 = vld [vmem:[%s7604_s30 + $0x79c] sm:$0x10]  ;;  %v7006_v4 = vld [vmem:[%s7604_s30 + $0x3a4] sm:$0xf] }
 0x391   : > { %v4721_v29 = vpop.f32.mrf.mxu3  ;;  %v4684_v31 = vpop.f32.mrf.mxu0 }
 0x392   : > { %v4708_v28 = vpop.f32.mrf.mxu2  ;;  %v4697_v32 = vpop.f32.mrf.mxu1  ;;  %v6774_v31 = vld [vmem:[%s7604_s30 + $0x390] sm:$0xf] }
 0x393   : > { %v4709_v30 = vadd.f32 %v4708_v28, %v4696_v27  ;;  %v6782_v27 = vld [vmem:[%s7604_s30 + $0x398] sm:$0xf]  ;;  %v6775_v42 = vor.u32 %v7132_v34, %v6774_v31 }
 0x394   : > { %v7133_v28 = vld [vmem:[%s7604_s30 + $0x794] sm:$0x10] }
 0x395   : > { %v4722_v33 = vadd.f32 %v4721_v29, %v4709_v30  ;;  %v7005_v29 = vld [vmem:[%s7604_s30 + $0x39c] sm:$0xf] }
 0x396   : > { %v6784_v30 = vld [vmem:[%s7604_s30 + $0x798] sm:$0x10] }
 0x397   : > { %v6787_v41 = vor.u32 %v7005_v29, %v6784_v30  ;;  %v6808_v29 = vld [vmem:[%s7604_s30 + $0x7b0] sm:$0x10] }
 0x399   : > { %v4723_v40 = vpop.f32.mrf.mxu3  ;;  %v4734_v44 = vpop.f32.mrf.mxu0 }
 0x39a   : > { %v4710_v39 = vpop.f32.mrf.mxu2  ;;  %v4747_v45 = vpop.f32.mrf.mxu1  ;;  %v4735_v46 = vadd.f32 %v4734_v44, %v4722_v33  ;;  %v6783_v40 = vor.u32 %v7133_v28, %v6782_v27  ;;  %v7136_v27 = vld [vmem:[%s7604_s30 + $0x7ac] sm:$0x10]  ;;  %v7008_v28 = vld [vmem:[%s7604_s30 + $0x3b4] sm:$0xf] }
 0x39b   : > { %v6811_v36 = vor.u32 %v7008_v28, %v6808_v29 }
 0x39c   : > { %v4748_v51 = vadd.f32 %v4747_v45, %v4735_v46  ;;  %5149 = vmatmul.bf16.vlgmr.msrb.gmra.mxu0 %v795_v5  ;;  %5162 = vmatmul.bf16.vlgmr.msrb.gmra.mxu1 %v796_v6  ;;  %v7003_v5 = vld [vmem:[%s7604_s30 + $0x38c] sm:$0xf] }
 0x39d   : > { %5252 = vmatpush.bf16.xpose.msrb.mxu0 %v6743_v49  ;;  %5265 = vmatpush.bf16.xpose.msrb.mxu1 %v6747_v50  ;;  %v6768_v6 = vld [vmem:[%s7604_s30 + $0x788] sm:$0x10]  ;;  %v811_v50 = vld [vmem:[#allocation1] sm:$0xff] }
 0x39e   : > { %5188 = vmatmul.bf16.vlgmr.msrb.gmra.mxu3 %v798_v8  ;;  %v6771_v17 = vor.u32 %v7003_v5, %v6768_v6  ;;  %v6792_v5 = vld [vmem:[%s7604_s30 + $0x7a0] sm:$0x10] }
 0x39f   : > { %5175 = vmatmul.bf16.vlgmr.msrb.gmra.mxu2 %v797_v7  ;;  %5291 = vmatpush.bf16.xpose.msrb.mxu3 %v6755_v48  ;;  %v6758_v7 = vld [vmem:[%s7604_s30 + $0x380] sm:$0xf]  ;;  %v6795_v12 = vor.u32 %v7006_v4, %v6792_v5 }
 0x3a0   : > { %5278 = vmatpush.bf16.xpose.msrb.mxu2 %v6751_v47  ;;  %v6759_v18 = vor.u32 %v7130_v10, %v6758_v7 }
 0x3a1   : > { %v4773_v53 = vpop.f32.mrf.mxu3  ;;  %v4736_v55 = vpop.f32.mrf.mxu0 }
 0x3a2   : > { %v4760_v52 = vpop.f32.mrf.mxu2  ;;  %v4749_v56 = vpop.f32.mrf.mxu1  ;;  %v815_v55 = vld [vmem:[#allocation1 + $0x24] sm:$0xff] }
 0x3a3   : > { %v4761_v54 = vadd.f32 %v4760_v52, %v4748_v51  ;;  %v812_v51 = vld [vmem:[#allocation1 + $0x9] sm:$0xff]  ;;  %v813_v52 = vld [vmem:[#allocation1 + $0x12] sm:$0xff] }
 0x3a4   : > { %v816_v56 = vld [vmem:[#allocation1 + $0x2d] sm:$0xff] }
 0x3a5   : > { %v4774_v60 = vadd.f32 %v4773_v53, %v4761_v54  ;;  %v814_v54 = vld [vmem:[#allocation1 + $0x1b] sm:$0xff] }
 0x3a9   : > { %v4775_v9 = vpop.f32.mrf.mxu3  ;;  %v4786_v13 = vpop.f32.mrf.mxu0 }
 0x3aa   : > { %v4762_v8 = vpop.f32.mrf.mxu2  ;;  %v4799_v14 = vpop.f32.mrf.mxu1  ;;  %v4787_v15 = vadd.f32 %v4786_v13, %v4774_v60  ;;  %v6798_v60 = vld [vmem:[%s7604_s30 + $0x3a8] sm:$0xf] }
 0x3ac   : > { %v4800_v20 = vadd.f32 %v4799_v14, %v4787_v15  ;;  %5201 = vmatmul.bf16.vlgmr.msra.gmra.mxu0 %v801_v57  ;;  %5214 = vmatmul.bf16.vlgmr.msra.gmra.mxu1 %v802_v58  ;;  %v817_v57 = vld [vmem:[#allocation1 + $0x36] sm:$0xff]  ;;  %v818_v58 = vld [vmem:[#allocation1 + $0x3f] sm:$0xff] }
 0x3ad   : > { %5304 = vmatpush.bf16.xpose.msra.mxu0 %v6759_v18  ;;  %5317 = vmatpush.bf16.xpose.msra.mxu1 %v6763_v19 }
 0x3ae   : > { %5240 = vmatmul.bf16.vlgmr.msra.gmra.mxu3 %v804_v61  ;;  %v7135_v61 = vld [vmem:[%s7604_s30 + $0x7a4] sm:$0x10] }
 0x3af   : > { %5227 = vmatmul.bf16.vlgmr.msra.gmra.mxu2 %v803_v59  ;;  %5343 = vmatpush.bf16.xpose.msra.mxu3 %v6771_v17  ;;  %v270_v59 = vld [vmem:[%s7598_s5 + $0xe8] sm:$0xff]  ;;  %v6799_v9 = vor.u32 %v7135_v61, %v6798_v60  ;;  %v7138_v60 = vld [vmem:[%s7604_s30 + $0x7bc] sm:$0x10]  ;;  %v7010_v61 = vld [vmem:[%s7604_s30 + $0x3c4] sm:$0xf] }
 0x3b0   : > { %5330 = vmatpush.bf16.xpose.msra.mxu2 %v6767_v16  ;;  %820 = vst [vmem:[#allocation1] ss:$9 sm:$0xff] %v270_v59 }
 0x3b1   : > { %v4825_v22 = vpop.f32.mrf.mxu3  ;;  %v4788_v24 = vpop.f32.mrf.mxu0 }
 0x3b2   : > { %v4812_v21 = vpop.f32.mrf.mxu2  ;;  %v4801_v25 = vpop.f32.mrf.mxu1  ;;  %v6806_v24 = vld [vmem:[%s7604_s30 + $0x3b0] sm:$0xf] }
 0x3b3   : > { %v4813_v23 = vadd.f32 %v4812_v21, %v4800_v20  ;;  %v6814_v20 = vld [vmem:[%s7604_s30 + $0x3b8] sm:$0xf]  ;;  %v6807_v35 = vor.u32 %v7136_v27, %v6806_v24 }
 0x3b4   : > { %v7137_v21 = vld [vmem:[%s7604_s30 + $0x7b4] sm:$0x10] }
 0x3b5   : > { %v4826_v26 = vadd.f32 %v4825_v22, %v4813_v23  ;;  %v7009_v22 = vld [vmem:[%s7604_s30 + $0x3bc] sm:$0xf] }
 0x3b6   : > { %v6816_v23 = vld [vmem:[%s7604_s30 + $0x7b8] sm:$0x10] }
 0x3b7   : > { %v6819_v34 = vor.u32 %v7009_v22, %v6816_v23  ;;  %v6840_v22 = vld [vmem:[%s7604_s30 + $0x7d0] sm:$0x10] }
 0x3b9   : > { %v4827_v33 = vpop.f32.mrf.mxu3  ;;  %v4838_v37 = vpop.f32.mrf.mxu0 }
 0x3ba   : > { %v4814_v32 = vpop.f32.mrf.mxu2  ;;  %v4851_v38 = vpop.f32.mrf.mxu1  ;;  %v4839_v39 = vadd.f32 %v4838_v37, %v4826_v26  ;;  %v6815_v33 = vor.u32 %v7137_v21, %v6814_v20  ;;  %v7140_v20 = vld [vmem:[%s7604_s30 + $0x7cc] sm:$0x10]  ;;  %v7012_v21 = vld [vmem:[%s7604_s30 + $0x3d4] sm:$0xf] }
 0x3bb   : > { %v6843_v29 = vor.u32 %v7012_v21, %v6840_v22 }
 0x3bc   : > { %v4852_v44 = vadd.f32 %v4851_v38, %v4839_v39  ;;  %5253 = vmatmul.bf16.vlgmr.msrb.gmra.mxu0 %v805_v62  ;;  %5266 = vmatmul.bf16.vlgmr.msrb.gmra.mxu1 %v806_v63  ;;  %v7007_v62 = vld [vmem:[%s7604_s30 + $0x3ac] sm:$0xf] }
 0x3bd   : > { %5356 = vmatpush.bf16.xpose.msrb.mxu0 %v6775_v42  ;;  %5369 = vmatpush.bf16.xpose.msrb.mxu1 %v6779_v43  ;;  %v6800_v63 = vld [vmem:[%s7604_s30 + $0x7a8] sm:$0x10]  ;;  %v821_v43 = vld [vmem:[#allocation1] sm:$0xff] }
 0x3be   : > { %5292 = vmatmul.bf16.vlgmr.msrb.gmra.mxu3 %v808_v1  ;;  %v6803_v10 = vor.u32 %v7007_v62, %v6800_v63  ;;  %v6824_v62 = vld [vmem:[%s7604_s30 + $0x7c0] sm:$0x10] }
 0x3bf   : > { %5279 = vmatmul.bf16.vlgmr.msrb.gmra.mxu2 %v807_v0  ;;  %5395 = vmatpush.bf16.xpose.msrb.mxu3 %v6787_v41  ;;  %v6790_v0 = vld [vmem:[%s7604_s30 + $0x3a0] sm:$0xf]  ;;  %v6827_v5 = vor.u32 %v7010_v61, %v6824_v62 }
 0x3c0   : > { %5382 = vmatpush.bf16.xpose.msrb.mxu2 %v6783_v40  ;;  %v6791_v11 = vor.u32 %v7134_v3, %v6790_v0 }
 0x3c1   : > { %v4877_v46 = vpop.f32.mrf.mxu3  ;;  %v4840_v48 = vpop.f32.mrf.mxu0 }
 0x3c2   : > { %v4864_v45 = vpop.f32.mrf.mxu2  ;;  %v4853_v49 = vpop.f32.mrf.mxu1  ;;  %v825_v48 = vld [vmem:[#allocation1 + $0x24] sm:$0xff] }
 0x3c3   : > { %v4865_v47 = vadd.f32 %v4864_v45, %v4852_v44  ;;  %v822_v44 = vld [vmem:[#allocation1 + $0x9] sm:$0xff]  ;;  %v823_v45 = vld [vmem:[#allocation1 + $0x12] sm:$0xff] }
 0x3c4   : > { %v826_v49 = vld [vmem:[#allocation1 + $0x2d] sm:$0xff] }
 0x3c5   : > { %v4878_v53 = vadd.f32 %v4877_v46, %v4865_v47  ;;  %v824_v47 = vld [vmem:[#allocation1 + $0x1b] sm:$0xff] }
 0x3c9   : > { %v4879_v2 = vpop.f32.mrf.mxu3  ;;  %v4890_v6 = vpop.f32.mrf.mxu0 }
 0x3ca   : > { %v4866_v1 = vpop.f32.mrf.mxu2  ;;  %v4903_v7 = vpop.f32.mrf.mxu1  ;;  %v4891_v8 = vadd.f32 %v4890_v6, %v4878_v53  ;;  %v6830_v53 = vld [vmem:[%s7604_s30 + $0x3c8] sm:$0xf] }
 0x3cc   : > { %v4904_v13 = vadd.f32 %v4903_v7, %v4891_v8  ;;  %5305 = vmatmul.bf16.vlgmr.msra.gmra.mxu0 %v811_v50  ;;  %5318 = vmatmul.bf16.vlgmr.msra.gmra.mxu1 %v812_v51  ;;  %v827_v50 = vld [vmem:[#allocation1 + $0x36] sm:$0xff]  ;;  %v828_v51 = vld [vmem:[#allocation1 + $0x3f] sm:$0xff] }
 0x3cd   : > { %5408 = vmatpush.bf16.xpose.msra.mxu0 %v6791_v11  ;;  %5421 = vmatpush.bf16.xpose.msra.mxu1 %v6795_v12 }
 0x3ce   : > { %5344 = vmatmul.bf16.vlgmr.msra.gmra.mxu3 %v814_v54  ;;  %v7139_v54 = vld [vmem:[%s7604_s30 + $0x7c4] sm:$0x10] }
 0x3cf   : > { %5331 = vmatmul.bf16.vlgmr.msra.gmra.mxu2 %v813_v52  ;;  %5447 = vmatpush.bf16.xpose.msra.mxu3 %v6803_v10  ;;  %v271_v52 = vld [vmem:[%s7598_s5 + $0xf0] sm:$0xff]  ;;  %v6831_v2 = vor.u32 %v7139_v54, %v6830_v53  ;;  %v7142_v53 = vld [vmem:[%s7604_s30 + $0x7dc] sm:$0x10]  ;;  %v7014_v54 = vld [vmem:[%s7604_s30 + $0x3e4] sm:$0xf] }
 0x3d0   : > { %5434 = vmatpush.bf16.xpose.msra.mxu2 %v6799_v9  ;;  %830 = vst [vmem:[#allocation1] ss:$9 sm:$0xff] %v271_v52 }
 0x3d1   : > { %v4929_v15 = vpop.f32.mrf.mxu3  ;;  %v4892_v17 = vpop.f32.mrf.mxu0 }
 0x3d2   : > { %v4916_v14 = vpop.f32.mrf.mxu2  ;;  %v4905_v18 = vpop.f32.mrf.mxu1  ;;  %v6838_v17 = vld [vmem:[%s7604_s30 + $0x3d0] sm:$0xf] }
 0x3d3   : > { %v4917_v16 = vadd.f32 %v4916_v14, %v4904_v13  ;;  %v6846_v13 = vld [vmem:[%s7604_s30 + $0x3d8] sm:$0xf]  ;;  %v6839_v28 = vor.u32 %v7140_v20, %v6838_v17 }
 0x3d4   : > { %v7141_v14 = vld [vmem:[%s7604_s30 + $0x7d4] sm:$0x10] }
 0x3d5   : > { %v4930_v19 = vadd.f32 %v4929_v15, %v4917_v16  ;;  %v7013_v15 = vld [vmem:[%s7604_s30 + $0x3dc] sm:$0xf] }
 0x3d6   : > { %v6848_v16 = vld [vmem:[%s7604_s30 + $0x7d8] sm:$0x10] }
 0x3d7   : > { %v6851_v27 = vor.u32 %v7013_v15, %v6848_v16  ;;  %v6872_v15 = vld [vmem:[%s7604_s30 + $0x7f0] sm:$0x10] }
 0x3d9   : > { %v4931_v26 = vpop.f32.mrf.mxu3  ;;  %v4942_v30 = vpop.f32.mrf.mxu0 }
 0x3da   : > { %v4918_v25 = vpop.f32.mrf.mxu2  ;;  %v4955_v31 = vpop.f32.mrf.mxu1  ;;  %v4943_v32 = vadd.f32 %v4942_v30, %v4930_v19  ;;  %v6847_v26 = vor.u32 %v7141_v14, %v6846_v13  ;;  %v7144_v13 = vld [vmem:[%s7604_s30 + $0x7ec] sm:$0x10]  ;;  %v7016_v14 = vld [vmem:[%s7604_s30 + $0x3f4] sm:$0xf] }
 0x3db   : > { %v6875_v22 = vor.u32 %v7016_v14, %v6872_v15 }
 0x3dc   : > { %v4956_v37 = vadd.f32 %v4955_v31, %v4943_v32  ;;  %5357 = vmatmul.bf16.vlgmr.msrb.gmra.mxu0 %v815_v55  ;;  %5370 = vmatmul.bf16.vlgmr.msrb.gmra.mxu1 %v816_v56  ;;  %v7011_v55 = vld [vmem:[%s7604_s30 + $0x3cc] sm:$0xf] }
 0x3dd   : > { %5460 = vmatpush.bf16.xpose.msrb.mxu0 %v6807_v35  ;;  %5473 = vmatpush.bf16.xpose.msrb.mxu1 %v6811_v36  ;;  %v6832_v56 = vld [vmem:[%s7604_s30 + $0x7c8] sm:$0x10]  ;;  %v831_v36 = vld [vmem:[#allocation1] sm:$0xff] }
 0x3de   : > { %5396 = vmatmul.bf16.vlgmr.msrb.gmra.mxu3 %v818_v58  ;;  %v6835_v3 = vor.u32 %v7011_v55, %v6832_v56  ;;  %v6856_v55 = vld [vmem:[%s7604_s30 + $0x7e0] sm:$0x10] }
 0x3df   : > { %5383 = vmatmul.bf16.vlgmr.msrb.gmra.mxu2 %v817_v57  ;;  %5499 = vmatpush.bf16.xpose.msrb.mxu3 %v6819_v34  ;;  %v6822_v57 = vld [vmem:[%s7604_s30 + $0x3c0] sm:$0xf]  ;;  %v6859_v62 = vor.u32 %v7014_v54, %v6856_v55 }
 0x3e0   : > { %5486 = vmatpush.bf16.xpose.msrb.mxu2 %v6815_v33  ;;  %v6823_v4 = vor.u32 %v7138_v60, %v6822_v57 }
 0x3e1   : > { %v4981_v39 = vpop.f32.mrf.mxu3  ;;  %v4944_v41 = vpop.f32.mrf.mxu0 }
 0x3e2   : > { %v4968_v38 = vpop.f32.mrf.mxu2  ;;  %v4957_v42 = vpop.f32.mrf.mxu1  ;;  %v835_v41 = vld [vmem:[#allocation1 + $0x24] sm:$0xff] }
 0x3e3   : > { %v4969_v40 = vadd.f32 %v4968_v38, %v4956_v37  ;;  %v832_v37 = vld [vmem:[#allocation1 + $0x9] sm:$0xff]  ;;  %v833_v38 = vld [vmem:[#allocation1 + $0x12] sm:$0xff] }
 0x3e4   : > { %v836_v42 = vld [vmem:[#allocation1 + $0x2d] sm:$0xff] }
 0x3e5   : > { %v4982_v46 = vadd.f32 %v4981_v39, %v4969_v40  ;;  %v834_v40 = vld [vmem:[#allocation1 + $0x1b] sm:$0xff] }
 0x3e9   : > { %v4983_v59 = vpop.f32.mrf.mxu3  ;;  %v4994_v63 = vpop.f32.mrf.mxu0 }
 0x3ea   : > { %v4970_v58 = vpop.f32.mrf.mxu2  ;;  %v5007_v0 = vpop.f32.mrf.mxu1  ;;  %v4995_v1 = vadd.f32 %v4994_v63, %v4982_v46  ;;  %v6862_v46 = vld [vmem:[%s7604_s30 + $0x3e8] sm:$0xf] }
 0x3ec   : > { %v5008_v6 = vadd.f32 %v5007_v0, %v4995_v1  ;;  %5409 = vmatmul.bf16.vlgmr.msra.gmra.mxu0 %v821_v43  ;;  %5422 = vmatmul.bf16.vlgmr.msra.gmra.mxu1 %v822_v44  ;;  %v837_v43 = vld [vmem:[#allocation1 + $0x36] sm:$0xff]  ;;  %v838_v44 = vld [vmem:[#allocation1 + $0x3f] sm:$0xff] }
 0x3ed   : > { %5512 = vmatpush.bf16.xpose.msra.mxu0 %v6823_v4  ;;  %5525 = vmatpush.bf16.xpose.msra.mxu1 %v6827_v5 }
 0x3ee   : > { %5448 = vmatmul.bf16.vlgmr.msra.gmra.mxu3 %v824_v47  ;;  %v7143_v47 = vld [vmem:[%s7604_s30 + $0x7e4] sm:$0x10] }
 0x3ef   : > { %5435 = vmatmul.bf16.vlgmr.msra.gmra.mxu2 %v823_v45  ;;  %5551 = vmatpush.bf16.xpose.msra.mxu3 %v6835_v3  ;;  %v272_v45 = vld [vmem:[%s7598_s5 + $0xf8] sm:$0xff]  ;;  %v6863_v59 = vor.u32 %v7143_v47, %v6862_v46 }
 0x3f0   : > { %5538 = vmatpush.bf16.xpose.msra.mxu2 %v6831_v2  ;;  %840 = vst [vmem:[#allocation1] ss:$9 sm:$0xff] %v272_v45 }
 0x3f1   : > { %v5033_v8 = vpop.f32.mrf.mxu3  ;;  %v4996_v10 = vpop.f32.mrf.mxu0 }
 0x3f2   : > { %v5020_v7 = vpop.f32.mrf.mxu2  ;;  %v5009_v11 = vpop.f32.mrf.mxu1  ;;  %v6870_v10 = vld [vmem:[%s7604_s30 + $0x3f0] sm:$0xf] }
 0x3f3   : > { %v5021_v9 = vadd.f32 %v5020_v7, %v5008_v6  ;;  %v6878_v6 = vld [vmem:[%s7604_s30 + $0x3f8] sm:$0xf]  ;;  %v6871_v21 = vor.u32 %v7144_v13, %v6870_v10 }
 0x3f4   : > { %v7145_v7 = vld [vmem:[%s7604_s30 + $0x7f4] sm:$0x10] }
 0x3f5   : > { %v5034_v12 = vadd.f32 %v5033_v8, %v5021_v9  ;;  %v7017_v8 = vld [vmem:[%s7604_s30 + $0x3fc] sm:$0xf] }
 0x3f6   : > { %v6880_v9 = vld [vmem:[%s7604_s30 + $0x7f8] sm:$0x10] }
 0x3f7   : > { %v6883_v20 = vor.u32 %v7017_v8, %v6880_v9  ;;  %v848_v54 = vld [vmem:[#allocation1 + $0x3f] sm:$0xff] }
 0x3f9   : > { %v5035_v19 = vpop.f32.mrf.mxu3  ;;  %v5046_v23 = vpop.f32.mrf.mxu0 }
 0x3fa   : > { %v5022_v18 = vpop.f32.mrf.mxu2  ;;  %v5059_v24 = vpop.f32.mrf.mxu1  ;;  %v5047_v25 = vadd.f32 %v5046_v23, %v5034_v12  ;;  %v6879_v19 = vor.u32 %v7145_v7, %v6878_v6 }
 0x3fc   : > { %v5060_v30 = vadd.f32 %v5059_v24, %v5047_v25  ;;  %5461 = vmatmul.bf16.vlgmr.msrb.gmra.mxu0 %v825_v48  ;;  %5474 = vmatmul.bf16.vlgmr.msrb.gmra.mxu1 %v826_v49  ;;  %v7015_v48 = vld [vmem:[%s7604_s30 + $0x3ec] sm:$0xf] }
 0x3fd   : > { %5564 = vmatpush.bf16.xpose.msrb.mxu0 %v6839_v28  ;;  %5577 = vmatpush.bf16.xpose.msrb.mxu1 %v6843_v29  ;;  %v6864_v49 = vld [vmem:[%s7604_s30 + $0x7e8] sm:$0x10] }
 0x3fe   : > { %5500 = vmatmul.bf16.vlgmr.msrb.gmra.mxu3 %v828_v51  ;;  %v6867_v60 = vor.u32 %v7015_v48, %v6864_v49 }
 0x3ff   : > { %5487 = vmatmul.bf16.vlgmr.msrb.gmra.mxu2 %v827_v50  ;;  %5603 = vmatpush.bf16.xpose.msrb.mxu3 %v6851_v27  ;;  %v6854_v50 = vld [vmem:[%s7604_s30 + $0x3e0] sm:$0xf] }
 0x400   : > { %5590 = vmatpush.bf16.xpose.msrb.mxu2 %v6847_v26  ;;  %v6855_v61 = vor.u32 %v7142_v53, %v6854_v50  ;;  %v845_v50 = vld [vmem:[#allocation1 + $0x24] sm:$0xff]  ;;  %v847_v53 = vld [vmem:[#allocation1 + $0x36] sm:$0xff] }
 0x401   : > { %v5085_v32 = vpop.f32.mrf.mxu3  ;;  %v5048_v34 = vpop.f32.mrf.mxu0 }
 0x402   : > { %v5072_v31 = vpop.f32.mrf.mxu2  ;;  %v5061_v35 = vpop.f32.mrf.mxu1  ;;  %v841_v34 = vld [vmem:[#allocation1] sm:$0xff] }
 0x403   : > { %v5073_v33 = vadd.f32 %v5072_v31, %v5060_v30  ;;  %v842_v35 = vld [vmem:[#allocation1 + $0x9] sm:$0xff] }
 0x405   : > { %v5086_v39 = vadd.f32 %v5085_v32, %v5073_v33 }
 0x409   : > { %v5087_v52 = vpop.f32.mrf.mxu3  ;;  %v5098_v56 = vpop.f32.mrf.mxu0 }
 0x40a   : > { %v5074_v51 = vpop.f32.mrf.mxu2  ;;  %v5111_v57 = vpop.f32.mrf.mxu1  ;;  %v5099_v58 = vadd.f32 %v5098_v56, %v5086_v39 }
 0x40b   : > { %v846_v51 = vld [vmem:[#allocation1 + $0x2d] sm:$0xff] }
 0x40c   : > { %v5112_v63 = vadd.f32 %v5111_v57, %v5099_v58  ;;  %5513 = vmatmul.bf16.vlgmr.msra.gmra.mxu0 %v831_v36  ;;  %5526 = vmatmul.bf16.vlgmr.msra.gmra.mxu1 %v832_v37  ;;  %v843_v37 = vld [vmem:[#allocation1 + $0x12] sm:$0xff] }
 0x40d   : > { %5616 = vmatpush.bf16.xpose.msra.mxu0 %v6855_v61  ;;  %5629 = vmatpush.bf16.xpose.msra.mxu1 %v6859_v62 }
 0x40e   : > { %5552 = vmatmul.bf16.vlgmr.msra.gmra.mxu3 %v834_v40 }
 0x40f   : > { %5539 = vmatmul.bf16.vlgmr.msra.gmra.mxu2 %v833_v38  ;;  %5655 = vmatpush.bf16.xpose.msra.mxu3 %v6867_v60  ;;  %v844_v38 = vld [vmem:[#allocation1 + $0x1b] sm:$0xff] }
 0x410   : > { %5642 = vmatpush.bf16.xpose.msra.mxu2 %v6863_v59 }
 0x411   : > { %v5137_v1 = vpop.f32.mrf.mxu3  ;;  %v5100_v3 = vpop.f32.mrf.mxu0 }
 0x412   : > { %v5124_v0 = vpop.f32.mrf.mxu2  ;;  %v5113_v4 = vpop.f32.mrf.mxu1 }
 0x413   : > { %v5125_v2 = vadd.f32 %v5124_v0, %v5112_v63 }
 0x415   : > { %v5138_v5 = vadd.f32 %v5137_v1, %v5125_v2 }
 0x419   : > { %v5139_v12 = vpop.f32.mrf.mxu3  ;;  %v5150_v16 = vpop.f32.mrf.mxu0 }
 0x41a   : > { %v5126_v11 = vpop.f32.mrf.mxu2  ;;  %v5163_v17 = vpop.f32.mrf.mxu1  ;;  %v5151_v18 = vadd.f32 %v5150_v16, %v5138_v5 }
 0x41c   : > { %v5164_v23 = vadd.f32 %v5163_v17, %v5151_v18  ;;  %5565 = vmatmul.bf16.vlgmr.msrb.gmra.mxu0 %v835_v41  ;;  %5578 = vmatmul.bf16.vlgmr.msrb.gmra.mxu1 %v836_v42 }
 0x41d   : > { %5668 = vmatpush.bf16.xpose.msrb.mxu0 %v6871_v21  ;;  %5681 = vmatpush.bf16.xpose.msrb.mxu1 %v6875_v22 }
 0x41e   : > { %5604 = vmatmul.bf16.vlgmr.msrb.gmra.mxu3 %v838_v44 }
 0x41f   : > { %5591 = vmatmul.bf16.vlgmr.msrb.gmra.mxu2 %v837_v43  ;;  %5707 = vmatpush.bf16.xpose.msrb.mxu3 %v6883_v20 }
 0x420   : > { %5694 = vmatpush.bf16.xpose.msrb.mxu2 %v6879_v19 }
 0x421   : > { %v5189_v25 = vpop.f32.mrf.mxu3  ;;  %v5152_v27 = vpop.f32.mrf.mxu0 }
 0x422   : > { %v5176_v24 = vpop.f32.mrf.mxu2  ;;  %v5165_v28 = vpop.f32.mrf.mxu1 }
 0x423   : > { %v5177_v26 = vadd.f32 %v5176_v24, %v5164_v23 }
 0x425   : > { %v5190_v29 = vadd.f32 %v5189_v25, %v5177_v26 }
 0x429   : > { %v5191_v31 = vpop.f32.mrf.mxu3  ;;  %v5202_v32 = vpop.f32.mrf.mxu0 }
 0x42a   : > { %v5178_v30 = vpop.f32.mrf.mxu2  ;;  %v5215_v33 = vpop.f32.mrf.mxu1  ;;  %v5203_v36 = vadd.f32 %v5202_v32, %v5190_v29 }
 0x42c   : > { %v5216_v39 = vadd.f32 %v5215_v33, %v5203_v36  ;;  %5617 = vmatmul.bf16.vlgmr.msra.gmra.mxu0 %v841_v34  ;;  %5630 = vmatmul.bf16.vlgmr.msra.gmra.mxu1 %v842_v35 }
 0x42e   : > { %5656 = vmatmul.bf16.vlgmr.msra.gmra.mxu3 %v844_v38 }
 0x42f   : > { %5643 = vmatmul.bf16.vlgmr.msra.gmra.mxu2 %v843_v37 }
 0x431   : > { %v5241_v41 = vpop.f32.mrf.mxu3  ;;  %v5204_v43 = vpop.f32.mrf.mxu0 }
 0x432   : > { %v5228_v40 = vpop.f32.mrf.mxu2  ;;  %v5217_v44 = vpop.f32.mrf.mxu1 }
 0x433   : > { %v5229_v42 = vadd.f32 %v5228_v40, %v5216_v39 }
 0x435   : > { %v5242_v45 = vadd.f32 %v5241_v41, %v5229_v42 }
 0x439   : > { %v5243_v47 = vpop.f32.mrf.mxu3  ;;  %v5254_v48 = vpop.f32.mrf.mxu0 }
 0x43a   : > { %v5230_v46 = vpop.f32.mrf.mxu2  ;;  %v5267_v49 = vpop.f32.mrf.mxu1  ;;  %v5255_v52 = vadd.f32 %v5254_v48, %v5242_v45 }
 0x43c   : > { %v5268_v55 = vadd.f32 %v5267_v49, %v5255_v52  ;;  %5669 = vmatmul.bf16.vlgmr.msrb.gmra.mxu0 %v845_v50  ;;  %5682 = vmatmul.bf16.vlgmr.msrb.gmra.mxu1 %v846_v51 }
 0x43e   : > { %5708 = vmatmul.bf16.vlgmr.msrb.gmra.mxu3 %v848_v54 }
 0x43f   : > { %5695 = vmatmul.bf16.vlgmr.msrb.gmra.mxu2 %v847_v53 }
 0x441   : > { %v5293_v57 = vpop.f32.mrf.mxu3  ;;  %v5256_v59 = vpop.f32.mrf.mxu0 }
 0x442   : > { %v5280_v56 = vpop.f32.mrf.mxu2  ;;  %v5269_v60 = vpop.f32.mrf.mxu1 }
 0x443   : > { %v5281_v58 = vadd.f32 %v5280_v56, %v5268_v55 }
 0x445   : > { %v5294_v61 = vadd.f32 %v5293_v57, %v5281_v58 }
 0x449   : > { %v5295_v63 = vpop.f32.mrf.mxu3  ;;  %v5306_v0 = vpop.f32.mrf.mxu0 }
 0x44a   : > { %v5282_v62 = vpop.f32.mrf.mxu2  ;;  %v5319_v1 = vpop.f32.mrf.mxu1  ;;  %v5307_v14 = vadd.f32 %v5306_v0, %v5294_v61 }
 0x44c   : > { %v5320_v19 = vadd.f32 %v5319_v1, %v5307_v14 }
 0x451   : > { %v5345_v3 = vpop.f32.mrf.mxu3  ;;  %v5308_v4 = vpop.f32.mrf.mxu0 }
 0x452   : > { %v5332_v2 = vpop.f32.mrf.mxu2  ;;  %v5321_v5 = vpop.f32.mrf.mxu1 }
 0x453   : > { %v5333_v20 = vadd.f32 %v5332_v2, %v5320_v19 }
 0x455   : > { %v5346_v23 = vadd.f32 %v5345_v3, %v5333_v20 }
 0x459   : > { %v5347_v7 = vpop.f32.mrf.mxu3  ;;  %v5358_v8 = vpop.f32.mrf.mxu0 }
 0x45a   : > { %v5334_v6 = vpop.f32.mrf.mxu2  ;;  %v5371_v9 = vpop.f32.mrf.mxu1  ;;  %v5359_v26 = vadd.f32 %v5358_v8, %v5346_v23 }
 0x45c   : > { %v5372_v27 = vadd.f32 %v5371_v9, %v5359_v26 }
 0x461   : > { %v5397_v11 = vpop.f32.mrf.mxu3  ;;  %v5360_v12 = vpop.f32.mrf.mxu0 }
 0x462   : > { %v5384_v10 = vpop.f32.mrf.mxu2  ;;  %v5373_v13 = vpop.f32.mrf.mxu1 }
 0x463   : > { %v5385_v30 = vadd.f32 %v5384_v10, %v5372_v27 }
 0x465   : > { %v5398_v33 = vadd.f32 %v5397_v11, %v5385_v30 }
 0x469   : > { %v5399_v16 = vpop.f32.mrf.mxu3  ;;  %v5410_v17 = vpop.f32.mrf.mxu0 }
 0x46a   : > { %v5386_v15 = vpop.f32.mrf.mxu2  ;;  %v5423_v18 = vpop.f32.mrf.mxu1  ;;  %v5411_v34 = vadd.f32 %v5410_v17, %v5398_v33 }
 0x46c   : > { %v5424_v39 = vadd.f32 %v5423_v18, %v5411_v34 }
 0x471   : > { %v5449_v22 = vpop.f32.mrf.mxu3  ;;  %v5412_v24 = vpop.f32.mrf.mxu0 }
 0x472   : > { %v5436_v21 = vpop.f32.mrf.mxu2  ;;  %v5425_v25 = vpop.f32.mrf.mxu1 }
 0x473   : > { %v5437_v40 = vadd.f32 %v5436_v21, %v5424_v39 }
 0x475   : > { %v5450_v43 = vadd.f32 %v5449_v22, %v5437_v40 }
 0x479   : > { %v5451_v29 = vpop.f32.mrf.mxu3  ;;  %v5462_v31 = vpop.f32.mrf.mxu0 }
 0x47a   : > { %v5438_v28 = vpop.f32.mrf.mxu2  ;;  %v5475_v32 = vpop.f32.mrf.mxu1  ;;  %v5463_v46 = vadd.f32 %v5462_v31, %v5450_v43  ;;  %v240_v29 = vld [vmem:[#allocation2] sm:$0x3] }
 0x47c   : > { %v5476_v47 = vadd.f32 %v5475_v32, %v5463_v46 }
 0x481   : > { %v5501_v36 = vpop.f32.mrf.mxu3  ;;  %v5464_v37 = vpop.f32.mrf.mxu0 }
 0x482   : > { %v5488_v35 = vpop.f32.mrf.mxu2  ;;  %v5477_v38 = vpop.f32.mrf.mxu1 }
 0x483   : > { %v5489_v50 = vadd.f32 %v5488_v35, %v5476_v47 }
 0x485   : > { %v5502_v53 = vadd.f32 %v5501_v36, %v5489_v50 }
 0x489   : > { %v5503_v42 = vpop.f32.mrf.mxu3  ;;  %v5514_v44 = vpop.f32.mrf.mxu0 }
 0x48a   : > { %v5490_v41 = vpop.f32.mrf.mxu2  ;;  %v5527_v45 = vpop.f32.mrf.mxu1  ;;  %v5515_v54 = vadd.f32 %v5514_v44, %v5502_v53 }
 0x48c   : > { %v5528_v59 = vadd.f32 %v5527_v45, %v5515_v54 }
 0x491   : > { %v5553_v49 = vpop.f32.mrf.mxu3  ;;  %v5516_v51 = vpop.f32.mrf.mxu0 }
 0x492   : > { %v5540_v48 = vpop.f32.mrf.mxu2  ;;  %v5529_v52 = vpop.f32.mrf.mxu1 }
 0x493   : > { %v5541_v60 = vadd.f32 %v5540_v48, %v5528_v59 }
 0x495   : > { %v5554_v63 = vadd.f32 %v5553_v49, %v5541_v60 }
 0x499   : > { %v5555_v56 = vpop.f32.mrf.mxu3  ;;  %v5566_v57 = vpop.f32.mrf.mxu0 }
 0x49a   : > { %v5542_v55 = vpop.f32.mrf.mxu2  ;;  %v5579_v58 = vpop.f32.mrf.mxu1  ;;  %v5567_v2 = vadd.f32 %v5566_v57, %v5554_v63 }
 0x49c   : > { %v5580_v3 = vadd.f32 %v5579_v58, %v5567_v2 }
 0x4a1   : > { %v5605_v62 = vpop.f32.mrf.mxu3  ;;  %v5568_v0 = vpop.f32.mrf.mxu0 }
 0x4a2   : > { %v5592_v61 = vpop.f32.mrf.mxu2  ;;  %v5581_v1 = vpop.f32.mrf.mxu1 }
 0x4a3   : > { %v5593_v6 = vadd.f32 %v5592_v61, %v5580_v3 }
 0x4a5   : > { %v5606_v9 = vadd.f32 %v5605_v62, %v5593_v6 }
 0x4a9   : > { %v5607_v5 = vpop.f32.mrf.mxu3  ;;  %v5618_v7 = vpop.f32.mrf.mxu0 }
 0x4aa   : > { %v5594_v4 = vpop.f32.mrf.mxu2  ;;  %v5631_v8 = vpop.f32.mrf.mxu1  ;;  %v5619_v10 = vadd.f32 %v5618_v7, %v5606_v9 }
 0x4ac   : > { %v5632_v15 = vadd.f32 %v5631_v8, %v5619_v10 }
 0x4b1   : > { %v5657_v12 = vpop.f32.mrf.mxu3  ;;  %v5620_v13 = vpop.f32.mrf.mxu0 }
 0x4b2   : > { %v5644_v11 = vpop.f32.mrf.mxu2  ;;  %v5633_v14 = vpop.f32.mrf.mxu1 }
 0x4b3   : > { %v5645_v16 = vadd.f32 %v5644_v11, %v5632_v15 }
 0x4b5   : > { %v5658_v19 = vadd.f32 %v5657_v12, %v5645_v16 }
 0x4b9   : > { %v5659_v18 = vpop.f32.mrf.mxu3  ;;  %v5670_v20 = vpop.f32.mrf.mxu0 }
 0x4ba   : > { %v5646_v17 = vpop.f32.mrf.mxu2  ;;  %v5683_v21 = vpop.f32.mrf.mxu1  ;;  %v5671_v22 = vadd.f32 %v5670_v20, %v5658_v19 }
 0x4bc   : > { %v5684_v23 = vadd.f32 %v5683_v21, %v5671_v22 }
 0x4c1   : > { %v5709_v25 = vpop.f32.mrf.mxu3  ;;  %v5672_v27 = vpop.f32.mrf.mxu0 }
 0x4c2   : > { %v5696_v24 = vpop.f32.mrf.mxu2  ;;  %v5685_v28 = vpop.f32.mrf.mxu1 }
 0x4c3   : > { %v5697_v26 = vadd.f32 %v5696_v24, %v5684_v23 }
 0x4c5   : > { %v5710_v30 = vadd.f32 %v5709_v25, %v5697_v26 }
 0x4c6   : > { %5719 = sbr.rel (%p6884_p7) target bundleno = 1234 (0x4d2), region = 44 }
 0x4c7   : > { %v5713_v31 = vadd.f32 %v5710_v30, %v240_v29 }
 0x4c9   : > { %5715 = vst.msk [vmem:[#allocation2] sm:$0x3] %vm5714_vm1, %v5713_v31  ;;  %v5711_v33 = vpop.f32.mrf.mxu3 }
 0x4ca   : > { %v5698_v32 = vpop.f32.mrf.mxu2 }
 0x4d0   : > { %v5720_v34 = vld [vmem:[#allocation2] sm:$0x3] }
 0x4d1   : > { %5721 = vst.msk [vmem:[%s226_s8] sm:$0x3] %vm5714_vm1, %v5720_v34 }
 0x4d2 PF: > { %s6886_s28 = sshll.u32 %s7431_s16, 1  ;;  %s5735_s27 = sshll.u32 %s226_s8, 4  ;;  %s5736_s27 = int_to_ptr.vmem [resolvable:$true] %s5735_s27 }
 0x4d3   : > { %s5733_s3 = scalar_lea.hbm %s8221_s2, %s6886_s28  ;;  %s5723_s15 = scalar_lea.sflag [#allocation5], %s224_s0 }
 0x4d4   : > { %s5737_s25 = sshll.u32 %s5733_s3, 4  ;;  %s7337_s4 = scalar_lea.hbm %s8221_s2, 4  ;;  %s5738_s25 = int_to_ptr.hbm [resolvable:$true] %s5737_s25 }
 0x4d5   : > { %s7331_s21 = sshra.s32 %s5738_s25, 4  ;;  %s7332_s21 = int_to_ptr.hbm [resolvable:$true] %s7331_s21 }
 0x4d6   : > { %s7333_s26 = scalar_lea.hbm %s7332_s21, 2  ;;  %p7338_p12 = scmp.lt.s32.totalorder %s7332_s21, %s8221_s2 }
 0x4d7   : > { %p7334_p9 = scmp.ne.s32.totalorder %s7332_s21, %s7333_s26  ;;  %p7339_p0 = scmp.lt.s32.totalorder %s7337_s4, %s7333_s26 }
 0x4d9   : > { %p7335_p10 = pnand %p7334_p9, %p7553_p13  ;;  %p7340_p1 = por %p7339_p0, %p7338_p12 }
 0x4db   : > { %p7336_p11 = pneg %p7335_p10 }
 0x4dd   : > { %p7341_p3 = pnand %p7340_p1, %p7336_p11 }
 0x4df   : > { %7344 = shalt.err (!%p7341_p3)
}
 0x4e0   : > { %7150 = dma.vmem_to_hbm [thread:$0]  (%p7553_p13), %s5736_s27, 32, %s5738_s25, %s5723_s15  }
 0x4e1 PF: > { %p7164_p4 = scmp.ge.s32.totalorder %s7443_s19, 2  ;;  %s5749_s22 = sand.u32 1, %s7403_s9  }
 0x4e2   : > { %s5750_s12 = scalar_lea.sflag [#allocation5], %s5749_s22 }
 0x4e3   : > { %p7160_p6 = pnand %p7164_p4, %p7569_p2 }
 0x4e5   : > { %p7161_p5 = pneg %p7160_p6 }
 0x4e7   : > { %7398 = dma.done.wait (%p7161_p5), %s5750_s12, 32  }
 0x4e8   : > { %7400 = vsyncadd (%p7161_p5), %s5750_s12, 4294967264  ;;  %s21_s19 = sadd.s32 1, %s7443_s19   ;;  %s8238_s6 = sld [smem:[#allocation16_spill]] }
 0x4e9   : > { %p18_p8 = scmp.ge.s32.totalorder %s21_s19, 8   ;;  %s8239_s15 = sld [smem:[#allocation12_spill]] }
 0x4ea   : > { %s8240_s16 = sld [smem:[#allocation13_spill]]  ;;  %s8243_s9 = smov %s7407_s10 }
 0x4eb   : > { %s8241_s17 = sld [smem:[#allocation14_spill]]  ;;  %s8244_s10 = smov %s7411_s11 }
 0x4ec   : > { %s8242_s18 = sld [smem:[#allocation15_spill]]  ;;  %s8245_s11 = smov %s7558_s7 }
 0x4ed   : > { %s8246_s12 = smov %s7419_s13  ;;  %s8247_s13 = smov %s7423_s14 }
 0x4ee   : > { %s8248_s14 = smov %s8238_s6  ;;  %20 = sbr.rel (!%p18_p8) target bundleno = 13 (0xd), region = 94 }
 0x4f3   :  { %5756 = vsyncpa [#allocation4], 1 }
 0x4f4   :  { %5758 = vsyncpa [#allocation4 + $0x1], 1 }
 0x4f5   :  { %5759 = vsyncpa [#allocation7], 1 }
 0x4f6   :  { %5761 = vsyncpa [#allocation7 + $0x1], 1 }
 0x4f7   :  { %5762 = vsyncpa [#allocation5], 1 }
 0x4f8   :  { %5764 = vsyncpa [#allocation5 + $0x1], 1 }

</bundles_post_ra>
